<compile_context>
chip_gen: v6e
topology: v6e:2x2x1
jax: 0.10.0
libtpu: 0.0.40
codegen_flags: <defaults>
</compile_context>

<pallas_src>
import functools

import jax
import jax.numpy as jnp
from jax.experimental import pallas as pl
from jax.experimental.pallas import tpu as pltpu

VSC_LATENT_DIM = 8
MM_DTYPE = jnp.bfloat16     # MXU-native operand dtype (accumulate in f32)


# ----------------------------------------------------------------------------
# Pallas kernels
# ----------------------------------------------------------------------------
def _mm_bias_act_kernel(x_ref, w_ref, b_ref, o_ref, *, activation):
    """Fused (M,K)@(K,N) + bias + activation on one tile (f32 accumulation)."""
    acc = jnp.dot(x_ref[...], w_ref[...], preferred_element_type=jnp.float32)
    acc = acc + b_ref[...]                        # (1, N) broadcasts over rows
    if activation == "relu":
        acc = jnp.maximum(acc, 0.0)
    elif activation == "sigmoid":
        acc = jax.nn.sigmoid(acc)
    o_ref[...] = acc.astype(o_ref.dtype)


def _latent_decode_kernel(h_ref, wmu_ref, bmu_ref, wlv_ref, blv_ref, eps_ref,
                          wdec_ref, bdec_ref, w1_ref, b1_ref,
                          mu_ref, lv_ref, d1_ref):
    """Fused latent path: mu, logvar, z = mu + eps*exp(0.5*logvar),
    d = z @ Wdec + bdec (fc_decode), d1 = relu(d @ W1 + b1) (ConvTranspose2d(64,32,7)
    applied to a 1x1 map is just a matmul).  Everything is tiny (M = 4*B rows),
    so one launch with full-array VMEM blocks."""
    h = h_ref[...]
    mu = jnp.dot(h, wmu_ref[...], preferred_element_type=jnp.float32) + bmu_ref[...]
    lv = jnp.dot(h, wlv_ref[...], preferred_element_type=jnp.float32) + blv_ref[...]
    mu_ref[...] = mu
    lv_ref[...] = lv
    z = mu + eps_ref[...] * jnp.exp(0.5 * lv)
    d = jnp.dot(z, wdec_ref[...], preferred_element_type=jnp.float32) + bdec_ref[...]
    d1 = jnp.dot(d, w1_ref[...], preferred_element_type=jnp.float32) + b1_ref[...]
    d1_ref[...] = jnp.maximum(d1, 0.0)


# ----------------------------------------------------------------------------
# Pallas wrappers
# ----------------------------------------------------------------------------
def pallas_matmul_bias_act(x, w, b2d, activation="none", max_tm=1024):
    """y = act(x @ w + b).  K and N are full-dim blocks; only M is tiled (and
    only for large M), so Mosaic does any sublane/lane padding inside VMEM."""
    M, K = x.shape
    K2, N = w.shape
    assert K == K2 and b2d.shape == (1, N)
    if M <= max_tm:
        grid_m, tm = 1, M                                  # full-dim M block
    else:
        grid_m = pl.cdiv(M, max_tm)                        # >= 2 -> megacore split
        tm = ((pl.cdiv(M, grid_m)) + 7) // 8 * 8           # multiple of 8

    return pl.pallas_call(
        functools.partial(_mm_bias_act_kernel, activation=activation),
        out_shape=jax.ShapeDtypeStruct((M, N), jnp.float32),
        grid=(grid_m,),
        in_specs=[
            pl.BlockSpec((tm, K), lambda i: (i, 0)),
            pl.BlockSpec((K, N), lambda i: (0, 0)),
            pl.BlockSpec((1, N), lambda i: (0, 0)),
        ],
        out_specs=pl.BlockSpec((tm, N), lambda i: (i, 0)),
        compiler_params=pltpu.CompilerParams(
            dimension_semantics=("parallel",)),
    )(x, w, b2d)


# ----------------------------------------------------------------------------
# Conv glue (im2col / polyphase interleave are layout plumbing; matmuls in Pallas)
# ----------------------------------------------------------------------------
def _im2col(x, k, stride):
    """NHWC -> (B*OH*OW, k*k*C) patches, per-row order (kh, kw, c).
    Uses whichever loop (kernel positions vs output windows) is shorter."""
    B, H, W, C = x.shape
    OH = (H - k) // stride + 1
    OW = (W - k) // stride + 1
    if k * k <= OH * OW:
        cols = [x[:, kh:kh + stride * (OH - 1) + 1:stride,
                  kw:kw + stride * (OW - 1) + 1:stride, :]
                for kh in range(k) for kw in range(k)]
        patches = jnp.stack(cols, axis=3)                  # (B, OH, OW, k*k, C)
    else:
        wins = [x[:, oh * stride:oh * stride + k, ow * stride:ow * stride + k, :]
                for oh in range(OH) for ow in range(OW)]
        patches = jnp.stack(wins, axis=1)                  # (B, OH*OW, k, k, C)
    return patches.reshape(B * OH * OW, k * k * C), (B, OH, OW)


def conv2d_nhwc(x, w_mat, b2d, k, stride, pad, activation):
    """Conv2d as im2col + fused Pallas matmul.  w_mat: (k*k*Cin, Cout) bf16."""
    x = x.astype(w_mat.dtype)
    if pad:
        x = jnp.pad(x, ((0, 0), (pad, pad), (pad, pad), (0, 0)))
    patches, (B, OH, OW) = _im2col(x, k, stride)
    y = pallas_matmul_bias_act(patches, w_mat, b2d, activation)
    return y.reshape(B, OH, OW, w_mat.shape[1])


def conv_transpose2d_s2_nhwc(x, w_comb, b2d, cout, activation):
    """ConvTranspose2d(k=3, stride=2, padding=1, output_padding=1) via a
    polyphase decomposition: one stride-1 matmul on the undilated input whose
    output columns are the 4 output phases [even/even|even/odd|odd/even|odd/odd]."""
    B, H, W, C = x.shape
    x = x.astype(w_comb.dtype)
    xp = jnp.pad(x, ((0, 0), (0, 1), (0, 1), (0, 0)))      # x[H]/x[:,W] = 0
    shifted = jnp.concatenate(
        [xp[:, 0:H, 0:W, :],      xp[:, 0:H, 1:W + 1, :],
         xp[:, 1:H + 1, 0:W, :],  xp[:, 1:H + 1, 1:W + 1, :]], axis=-1)
    y = pallas_matmul_bias_act(shifted.reshape(B * H * W, 4 * C),
                               w_comb, b2d, activation)    # (B*H*W, 4*cout)
    y = y.reshape(B, H, W, 2, 2, cout)                     # (.., rp, cp, c)
    y = jnp.transpose(y, (0, 1, 3, 2, 4, 5))               # (B, H, 2, W, 2, c)
    return y.reshape(B, 2 * H, 2 * W, cout)


# ----------------------------------------------------------------------------
# Parameters: PyTorch-layout init + one-time Pallas-ready conversion
# ----------------------------------------------------------------------------
def init_params(key):
    ks = jax.random.split(key, 9)
    s = 0.1
    L = VSC_LATENT_DIM
    return {
        "conv1_w": s * jax.random.normal(ks[0], (16, 1, 3, 3), jnp.float32),
        "conv1_b": jnp.zeros((16,), jnp.float32),
        "conv2_w": s * jax.random.normal(ks[1], (32, 16, 3, 3), jnp.float32),
        "conv2_b": jnp.zeros((32,), jnp.float32),
        "conv3_w": s * jax.random.normal(ks[2], (64, 32, 7, 7), jnp.float32),
        "conv3_b": jnp.zeros((64,), jnp.float32),
        "fc_mu_w": s * jax.random.normal(ks[3], (L, 64), jnp.float32),
        "fc_mu_b": jnp.zeros((L,), jnp.float32),
        "fc_lv_w": s * jax.random.normal(ks[4], (L, 64), jnp.float32),
        "fc_lv_b": jnp.zeros((L,), jnp.float32),
        "fc_dec_w": s * jax.random.normal(ks[5], (64, L), jnp.float32),
        "fc_dec_b": jnp.zeros((64,), jnp.float32),
        "deconv1_w": s * jax.random.normal(ks[6], (64, 32, 7, 7), jnp.float32),
        "deconv1_b": jnp.zeros((32,), jnp.float32),
        "deconv2_w": s * jax.random.normal(ks[7], (32, 16, 3, 3), jnp.float32),
        "deconv2_b": jnp.zeros((16,), jnp.float32),
        "deconv3_w": s * jax.random.normal(ks[8], (16, 1, 3, 3), jnp.float32),
        "deconv3_b": jnp.zeros((1,), jnp.float32),
    }


def _conv_weight_matrix(w_oihw, dtype):
    """(Cout, Cin, k, k) -> (k*k*Cin, Cout), row order (kh, kw, cin)."""
    k, cin, cout = w_oihw.shape[2], w_oihw.shape[1], w_oihw.shape[0]
    return jnp.transpose(w_oihw, (2, 3, 1, 0)).reshape(k * k * cin, cout).astype(dtype)


def _polyphase_weight(w_iokk, dtype):
    """PyTorch ConvTranspose2d weight (Cin, Cout, 3, 3) -> (4*Cin, 4*Cout)
    combined matmul weight.  Row blocks: shifted inputs [x(m,n)|x(m,n+1)|
    x(m+1,n)|x(m+1,n+1)]; column blocks: output phases [ee|eo|oe|oo]."""
    w = w_iokk
    cin, cout = w.shape[0], w.shape[1]
    zz = jnp.zeros((cin, cout), w.dtype)
    r00 = jnp.concatenate([w[:, :, 1, 1], w[:, :, 1, 2], w[:, :, 2, 1], w[:, :, 2, 2]], axis=1)
    r01 = jnp.concatenate([zz,            w[:, :, 1, 0], zz,            w[:, :, 2, 0]], axis=1)
    r10 = jnp.concatenate([zz,            zz,            w[:, :, 0, 1], w[:, :, 0, 2]], axis=1)
    r11 = jnp.concatenate([zz,            zz,            zz,            w[:, :, 0, 0]], axis=1)
    return jnp.concatenate([r00, r01, r10, r11], axis=0).astype(dtype)


def prepare_params(raw):
    """One-time conversion to Pallas-ready layouts (hoisted out of the forward)."""
    f32 = jnp.float32
    return {
        "conv1_wm": _conv_weight_matrix(raw["conv1_w"], MM_DTYPE),
        "conv1_b": raw["conv1_b"].reshape(1, -1).astype(f32),
        "conv2_wm": _conv_weight_matrix(raw["conv2_w"], MM_DTYPE),
        "conv2_b": raw["conv2_b"].reshape(1, -1).astype(f32),
        "conv3_wm": _conv_weight_matrix(raw["conv3_w"], MM_DTYPE),
        "conv3_b": raw["conv3_b"].reshape(1, -1).astype(f32),
        # latent path kept in f32 (tiny operands, single fused launch)
        "fc_mu_wm": raw["fc_mu_w"].T.astype(f32),
        "fc_mu_b": raw["fc_mu_b"].reshape(1, -1).astype(f32),
        "fc_lv_wm": raw["fc_lv_w"].T.astype(f32),
        "fc_lv_b": raw["fc_lv_b"].reshape(1, -1).astype(f32),
        "fc_dec_wm": raw["fc_dec_w"].T.astype(f32),
        "fc_dec_b": raw["fc_dec_b"].reshape(1, -1).astype(f32),
        # ConvTranspose2d(64, 32, 7) on a 1x1 map == matmul with (64, 32*49)
        "deconv1_wm": raw["deconv1_w"].reshape(64, 32 * 49).astype(f32),
        "deconv1_b2": jnp.repeat(raw["deconv1_b"], 49).reshape(1, -1).astype(f32),
        # stride-2 deconvs as polyphase combined matmuls
        "deconv2_wc": _polyphase_weight(raw["deconv2_w"], MM_DTYPE),
        "deconv2_b2": jnp.tile(raw["deconv2_b"], 4).reshape(1, -1).astype(f32),
        "deconv3_wc": _polyphase_weight(raw["deconv3_w"], MM_DTYPE),
        "deconv3_b2": jnp.tile(raw["deconv3_b"], 4).reshape(1, -1).astype(f32),
    }


# ----------------------------------------------------------------------------
# VSC forward
# ----------------------------------------------------------------------------
def vsc_forward(p, x_nchw, eps_key):
    L = p["fc_mu_wm"].shape[1]

    # ---- encoder ----
    x = jnp.transpose(x_nchw, (0, 2, 3, 1))                              # NCHW->NHWC
    h = conv2d_nhwc(x, p["conv1_wm"], p["conv1_b"], 3, 2, 1, "relu")     # (B,16,16,16)
    h = conv2d_nhwc(h, p["conv2_wm"], p["conv2_b"], 3, 2, 1, "relu")     # (B,8,8,32)
    h = conv2d_nhwc(h, p["conv3_wm"], p["conv3_b"], 7, 1, 0, "none")     # (B,2,2,64)
    # PyTorch Flatten() is over NCHW, then .view(-1, 64)
    h = jnp.transpose(h, (0, 3, 1, 2)).reshape(-1, 64)                   # (4B, 64)

    # ---- fused latent path (fc_mu / fc_logvar / reparam / fc_decode / deconv1) ----
    # TODO(synk): only the Gaussian mu/logvar branch exists in the reference VSC
    # forward; no spike/log-spike path to implement.
    eps = jax.random.normal(eps_key, (h.shape[0], L), jnp.float32)
    mu, logvar, d = pl.pallas_call(
        _latent_decode_kernel,
        out_shape=(
            jax.ShapeDtypeStruct((h.shape[0], L), jnp.float32),
            jax.ShapeDtypeStruct((h.shape[0], L), jnp.float32),
            jax.ShapeDtypeStruct((h.shape[0], p["deconv1_wm"].shape[1]), jnp.float32),
        ),
    )(h, p["fc_mu_wm"], p["fc_mu_b"], p["fc_lv_wm"], p["fc_lv_b"], eps,
      p["fc_dec_wm"], p["fc_dec_b"], p["deconv1_wm"], p["deconv1_b2"])

    # ---- decoder ----
    d = jnp.transpose(d.reshape(-1, 32, 7, 7), (0, 2, 3, 1))             # (4B,7,7,32)
    d = conv_transpose2d_s2_nhwc(d, p["deconv2_wc"], p["deconv2_b2"], 16, "relu")
    d = conv_transpose2d_s2_nhwc(d, p["deconv3_wc"], p["deconv3_b2"], 1, "sigmoid")
    x_recon = jnp.transpose(d, (0, 3, 1, 2))                             # (4B,1,28,28)
    return x_recon, mu, logvar


# ----------------------------------------------------------------------------
if __name__ == "__main__":
    B = 2
    key = jax.random.PRNGKey(0)
    k_x, k_p, k_eps = jax.random.split(key, 3)

    x = jax.random.uniform(k_x, (B, 1, 32, 32), dtype=jnp.float32)   # values in [0,1)
    params = prepare_params(init_params(k_p))

    fwd = jax.jit(vsc_forward)
    x_recon, mu, logvar = fwd(params, x, k_eps)
    jax.block_until_ready((x_recon, mu, logvar))

    assert x_recon.shape == (4 * B, 1, 28, 28), x_recon.shape
    assert mu.shape == (4 * B, VSC_LATENT_DIM), mu.shape
    assert logvar.shape == (4 * B, VSC_LATENT_DIM), logvar.shape
    assert bool(jnp.all(jnp.isfinite(x_recon)))
    assert bool(jnp.all((x_recon >= 0.0) & (x_recon <= 1.0)))
    assert bool(jnp.all(jnp.isfinite(mu))) and bool(jnp.all(jnp.isfinite(logvar)))

    print("KERNEL_OK")
</pallas_src>

<mosaic_0001>
module attributes {stable_mosaic.version = 11 : i64} {
  func.func @_mm_bias_act_kernel(%arg0: i32, %arg1: memref<512x9xbf16, #tpu.memory_space<vmem>>, %arg2: memref<9x16xbf16, #tpu.memory_space<vmem>>, %arg3: memref<1x16xf32, #tpu.memory_space<vmem>>, %arg4: memref<512x16xf32, #tpu.memory_space<vmem>>) attributes {dimension_semantics = [#tpu.dimension_semantics<parallel>], iteration_bounds = array<i64: 1>, scalar_prefetch = 0 : i64, scratch_operands = 0 : i64, tpu.core_type = #tpu.core_type<tc>, window_params = [{transform_indices = @transform_0, window_bounds = array<i64: 512, 9>}, {pipeline_mode = #tpu.pipeline_mode<synchronous>, transform_indices = @transform_1, window_bounds = array<i64: 9, 16>}, {pipeline_mode = #tpu.pipeline_mode<synchronous>, transform_indices = @transform_2, window_bounds = array<i64: 1, 16>}, {transform_indices = @transform_3, window_bounds = array<i64: 512, 16>}]} {
    %c0 = arith.constant 0 : index
    %c0_0 = arith.constant 0 : index
    %0 = vector.load %arg1[%c0, %c0_0] : memref<512x9xbf16, #tpu.memory_space<vmem>>, vector<512x9xbf16>
    %c0_1 = arith.constant 0 : index
    %c0_2 = arith.constant 0 : index
    %1 = vector.load %arg2[%c0_1, %c0_2] : memref<9x16xbf16, #tpu.memory_space<vmem>>, vector<9x16xbf16>
    %cst = arith.constant dense<0.000000e+00> : vector<512x16xf32>
    %2 = tpu.matmul %0, %1, %cst {dimension_numbers = #tpu.dot_dimension_numbers<[1], [0], [0], [1], [0, 0, 1, 1], [], []>} : vector<512x9xbf16>, vector<9x16xbf16>, vector<512x16xf32> -> vector<512x16xf32>
    %c0_3 = arith.constant 0 : index
    %c0_4 = arith.constant 0 : index
    %3 = vector.load %arg3[%c0_3, %c0_4] : memref<1x16xf32, #tpu.memory_space<vmem>>, vector<1x16xf32>
    %4 = vector.broadcast %3 : vector<1x16xf32> to vector<512x16xf32>
    %5 = arith.addf %2, %4 : vector<512x16xf32>
    %cst_5 = arith.constant 0.000000e+00 : f32
    %6 = vector.broadcast %cst_5 : f32 to vector<512x16xf32>
    %7 = arith.maximumf %5, %6 : vector<512x16xf32>
    %c0_6 = arith.constant 0 : index
    %c0_7 = arith.constant 0 : index
    %8 = vector.load %arg4[%c0_6, %c0_7] : memref<512x16xf32, #tpu.memory_space<vmem>>, vector<512x16xf32>
    tpu.vector_store %arg4[%c0_6, %c0_7], %7 {strides = array<i32>} : memref<512x16xf32, #tpu.memory_space<vmem>>, vector<512x16xf32>,
    return
  }
  func.func @transform_0(%arg0: i32) -> (i32, i32) {
    %c0_i32 = arith.constant 0 : i32
    %c0_i32_0 = arith.constant 0 : i32
    return %arg0, %c0_i32 : i32, i32
  }
  func.func @transform_1(%arg0: i32) -> (i32, i32) {
    %c0_i32 = arith.constant 0 : i32
    %c0_i32_0 = arith.constant 0 : i32
    %c0_i32_1 = arith.constant 0 : i32
    return %c0_i32, %c0_i32_0 : i32, i32
  }
  func.func @transform_2(%arg0: i32) -> (i32, i32) {
    %c0_i32 = arith.constant 0 : i32
    %c0_i32_0 = arith.constant 0 : i32
    %c0_i32_1 = arith.constant 0 : i32
    return %c0_i32, %c0_i32_0 : i32, i32
  }
  func.func @transform_3(%arg0: i32) -> (i32, i32) {
    %c0_i32 = arith.constant 0 : i32
    %c0_i32_0 = arith.constant 0 : i32
    return %arg0, %c0_i32 : i32, i32
  }
}

module attributes {stable_mosaic.version = 11 : i64} {
  func.func @_mm_bias_act_kernel(%arg0: i32, %arg1: memref<128x144xbf16, #tpu.memory_space<vmem>>, %arg2: memref<144x32xbf16, #tpu.memory_space<vmem>>, %arg3: memref<1x32xf32, #tpu.memory_space<vmem>>, %arg4: memref<128x32xf32, #tpu.memory_space<vmem>>) attributes {dimension_semantics = [#tpu.dimension_semantics<parallel>], iteration_bounds = array<i64: 1>, scalar_prefetch = 0 : i64, scratch_operands = 0 : i64, tpu.core_type = #tpu.core_type<tc>, window_params = [{transform_indices = @transform_0, window_bounds = array<i64: 128, 144>}, {pipeline_mode = #tpu.pipeline_mode<synchronous>, transform_indices = @transform_1, window_bounds = array<i64: 144, 32>}, {pipeline_mode = #tpu.pipeline_mode<synchronous>, transform_indices = @transform_2, window_bounds = array<i64: 1, 32>}, {transform_indices = @transform_3, window_bounds = array<i64: 128, 32>}]} {
    %c0 = arith.constant 0 : index
    %c0_0 = arith.constant 0 : index
    %0 = vector.load %arg1[%c0, %c0_0] : memref<128x144xbf16, #tpu.memory_space<vmem>>, vector<128x144xbf16>
    %c0_1 = arith.constant 0 : index
    %c0_2 = arith.constant 0 : index
    %1 = vector.load %arg2[%c0_1, %c0_2] : memref<144x32xbf16, #tpu.memory_space<vmem>>, vector<144x32xbf16>
    %cst = arith.constant dense<0.000000e+00> : vector<128x32xf32>
    %2 = tpu.matmul %0, %1, %cst {dimension_numbers = #tpu.dot_dimension_numbers<[1], [0], [0], [1], [0, 0, 1, 1], [], []>} : vector<128x144xbf16>, vector<144x32xbf16>, vector<128x32xf32> -> vector<128x32xf32>
    %c0_3 = arith.constant 0 : index
    %c0_4 = arith.constant 0 : index
    %3 = vector.load %arg3[%c0_3, %c0_4] : memref<1x32xf32, #tpu.memory_space<vmem>>, vector<1x32xf32>
    %4 = vector.broadcast %3 : vector<1x32xf32> to vector<128x32xf32>
    %5 = arith.addf %2, %4 : vector<128x32xf32>
    %cst_5 = arith.constant 0.000000e+00 : f32
    %6 = vector.broadcast %cst_5 : f32 to vector<128x32xf32>
    %7 = arith.maximumf %5, %6 : vector<128x32xf32>
    %c0_6 = arith.constant 0 : index
    %c0_7 = arith.constant 0 : index
    %8 = vector.load %arg4[%c0_6, %c0_7] : memref<128x32xf32, #tpu.memory_space<vmem>>, vector<128x32xf32>
    tpu.vector_store %arg4[%c0_6, %c0_7], %7 {strides = array<i32>} : memref<128x32xf32, #tpu.memory_space<vmem>>, vector<128x32xf32>,
    return
  }
  func.func @transform_0(%arg0: i32) -> (i32, i32) {
    %c0_i32 = arith.constant 0 : i32
    %c0_i32_0 = arith.constant 0 : i32
    return %arg0, %c0_i32 : i32, i32
  }
  func.func @transform_1(%arg0: i32) -> (i32, i32) {
    %c0_i32 = arith.constant 0 : i32
    %c0_i32_0 = arith.constant 0 : i32
    %c0_i32_1 = arith.constant 0 : i32
    return %c0_i32, %c0_i32_0 : i32, i32
  }
  func.func @transform_2(%arg0: i32) -> (i32, i32) {
    %c0_i32 = arith.constant 0 : i32
    %c0_i32_0 = arith.constant 0 : i32
    %c0_i32_1 = arith.constant 0 : i32
    return %c0_i32, %c0_i32_0 : i32, i32
  }
  func.func @transform_3(%arg0: i32) -> (i32, i32) {
    %c0_i32 = arith.constant 0 : i32
    %c0_i32_0 = arith.constant 0 : i32
    return %arg0, %c0_i32 : i32, i32
  }
}

module attributes {stable_mosaic.version = 11 : i64} {
  func.func @_mm_bias_act_kernel(%arg0: i32, %arg1: memref<8x1568xbf16, #tpu.memory_space<vmem>>, %arg2: memref<1568x64xbf16, #tpu.memory_space<vmem>>, %arg3: memref<1x64xf32, #tpu.memory_space<vmem>>, %arg4: memref<8x64xf32, #tpu.memory_space<vmem>>) attributes {dimension_semantics = [#tpu.dimension_semantics<parallel>], iteration_bounds = array<i64: 1>, scalar_prefetch = 0 : i64, scratch_operands = 0 : i64, tpu.core_type = #tpu.core_type<tc>, window_params = [{transform_indices = @transform_0, window_bounds = array<i64: 8, 1568>}, {pipeline_mode = #tpu.pipeline_mode<synchronous>, transform_indices = @transform_1, window_bounds = array<i64: 1568, 64>}, {pipeline_mode = #tpu.pipeline_mode<synchronous>, transform_indices = @transform_2, window_bounds = array<i64: 1, 64>}, {transform_indices = @transform_3, window_bounds = array<i64: 8, 64>}]} {
    %c0 = arith.constant 0 : index
    %c0_0 = arith.constant 0 : index
    %0 = vector.load %arg1[%c0, %c0_0] : memref<8x1568xbf16, #tpu.memory_space<vmem>>, vector<8x1568xbf16>
    %c0_1 = arith.constant 0 : index
    %c0_2 = arith.constant 0 : index
    %1 = vector.load %arg2[%c0_1, %c0_2] : memref<1568x64xbf16, #tpu.memory_space<vmem>>, vector<1568x64xbf16>
    %cst = arith.constant dense<0.000000e+00> : vector<8x64xf32>
    %2 = tpu.matmul %0, %1, %cst {dimension_numbers = #tpu.dot_dimension_numbers<[1], [0], [0], [1], [0, 0, 1, 1], [], []>} : vector<8x1568xbf16>, vector<1568x64xbf16>, vector<8x64xf32> -> vector<8x64xf32>
    %c0_3 = arith.constant 0 : index
    %c0_4 = arith.constant 0 : index
    %3 = vector.load %arg3[%c0_3, %c0_4] : memref<1x64xf32, #tpu.memory_space<vmem>>, vector<1x64xf32>
    %4 = vector.broadcast %3 : vector<1x64xf32> to vector<8x64xf32>
    %5 = arith.addf %2, %4 : vector<8x64xf32>
    %c0_5 = arith.constant 0 : index
    %c0_6 = arith.constant 0 : index
    %6 = vector.load %arg4[%c0_5, %c0_6] : memref<8x64xf32, #tpu.memory_space<vmem>>, vector<8x64xf32>
    tpu.vector_store %arg4[%c0_5, %c0_6], %5 {strides = array<i32>} : memref<8x64xf32, #tpu.memory_space<vmem>>, vector<8x64xf32>,
    return
  }
  func.func @transform_0(%arg0: i32) -> (i32, i32) {
    %c0_i32 = arith.constant 0 : i32
    %c0_i32_0 = arith.constant 0 : i32
    return %arg0, %c0_i32 : i32, i32
  }
  func.func @transform_1(%arg0: i32) -> (i32, i32) {
    %c0_i32 = arith.constant 0 : i32
    %c0_i32_0 = arith.constant 0 : i32
    %c0_i32_1 = arith.constant 0 : i32
    return %c0_i32, %c0_i32_0 : i32, i32
  }
  func.func @transform_2(%arg0: i32) -> (i32, i32) {
    %c0_i32 = arith.constant 0 : i32
    %c0_i32_0 = arith.constant 0 : i32
    %c0_i32_1 = arith.constant 0 : i32
    return %c0_i32, %c0_i32_0 : i32, i32
  }
  func.func @transform_3(%arg0: i32) -> (i32, i32) {
    %c0_i32 = arith.constant 0 : i32
    %c0_i32_0 = arith.constant 0 : i32
    return %arg0, %c0_i32 : i32, i32
  }
}

module attributes {stable_mosaic.version = 11 : i64} {
  func.func @_latent_decode_kernel(%arg0: memref<8x64xf32, #tpu.memory_space<vmem>>, %arg1: memref<64x8xf32, #tpu.memory_space<vmem>>, %arg2: memref<1x8xf32, #tpu.memory_space<vmem>>, %arg3: memref<64x8xf32, #tpu.memory_space<vmem>>, %arg4: memref<1x8xf32, #tpu.memory_space<vmem>>, %arg5: memref<8x8xf32, #tpu.memory_space<vmem>>, %arg6: memref<8x64xf32, #tpu.memory_space<vmem>>, %arg7: memref<1x64xf32, #tpu.memory_space<vmem>>, %arg8: memref<64x1568xf32, #tpu.memory_space<vmem>>, %arg9: memref<1x1568xf32, #tpu.memory_space<vmem>>, %arg10: memref<8x8xf32, #tpu.memory_space<vmem>>, %arg11: memref<8x8xf32, #tpu.memory_space<vmem>>, %arg12: memref<8x1568xf32, #tpu.memory_space<vmem>>) attributes {dimension_semantics = [], scalar_prefetch = 0 : i64, scratch_operands = 0 : i64, tpu.core_type = #tpu.core_type<tc>} {
    %c0 = arith.constant 0 : index
    %c0_0 = arith.constant 0 : index
    %0 = vector.load %arg0[%c0, %c0_0] : memref<8x64xf32, #tpu.memory_space<vmem>>, vector<8x64xf32>
    %c0_1 = arith.constant 0 : index
    %c0_2 = arith.constant 0 : index
    %1 = vector.load %arg1[%c0_1, %c0_2] : memref<64x8xf32, #tpu.memory_space<vmem>>, vector<64x8xf32>
    %cst = arith.constant dense<0.000000e+00> : vector<8x8xf32>
    %2 = tpu.matmul %0, %1, %cst {dimension_numbers = #tpu.dot_dimension_numbers<[1], [0], [0], [1], [0, 0, 1, 1], [], []>} : vector<8x64xf32>, vector<64x8xf32>, vector<8x8xf32> -> vector<8x8xf32>
    %c0_3 = arith.constant 0 : index
    %c0_4 = arith.constant 0 : index
    %3 = vector.load %arg2[%c0_3, %c0_4] : memref<1x8xf32, #tpu.memory_space<vmem>>, vector<1x8xf32>
    %4 = vector.broadcast %3 : vector<1x8xf32> to vector<8x8xf32>
    %5 = arith.addf %2, %4 : vector<8x8xf32>
    %c0_5 = arith.constant 0 : index
    %c0_6 = arith.constant 0 : index
    %6 = vector.load %arg3[%c0_5, %c0_6] : memref<64x8xf32, #tpu.memory_space<vmem>>, vector<64x8xf32>
    %cst_7 = arith.constant dense<0.000000e+00> : vector<8x8xf32>
    %7 = tpu.matmul %0, %6, %cst_7 {dimension_numbers = #tpu.dot_dimension_numbers<[1], [0], [0], [1], [0, 0, 1, 1], [], []>} : vector<8x64xf32>, vector<64x8xf32>, vector<8x8xf32> -> vector<8x8xf32>
    %c0_8 = arith.constant 0 : index
    %c0_9 = arith.constant 0 : index
    %8 = vector.load %arg4[%c0_8, %c0_9] : memref<1x8xf32, #tpu.memory_space<vmem>>, vector<1x8xf32>
    %9 = vector.broadcast %8 : vector<1x8xf32> to vector<8x8xf32>
    %10 = arith.addf %7, %9 : vector<8x8xf32>
    %c0_10 = arith.constant 0 : index
    %c0_11 = arith.constant 0 : index
    %11 = vector.load %arg10[%c0_10, %c0_11] : memref<8x8xf32, #tpu.memory_space<vmem>>, vector<8x8xf32>
    tpu.vector_store %arg10[%c0_10, %c0_11], %5 {strides = array<i32>} : memref<8x8xf32, #tpu.memory_space<vmem>>, vector<8x8xf32>,
    %c0_12 = arith.constant 0 : index
    %c0_13 = arith.constant 0 : index
    %12 = vector.load %arg11[%c0_12, %c0_13] : memref<8x8xf32, #tpu.memory_space<vmem>>, vector<8x8xf32>
    tpu.vector_store %arg11[%c0_12, %c0_13], %10 {strides = array<i32>} : memref<8x8xf32, #tpu.memory_space<vmem>>, vector<8x8xf32>,
    %c0_14 = arith.constant 0 : index
    %c0_15 = arith.constant 0 : index
    %13 = vector.load %arg5[%c0_14, %c0_15] : memref<8x8xf32, #tpu.memory_space<vmem>>, vector<8x8xf32>
    %cst_16 = arith.constant 5.000000e-01 : f32
    %14 = vector.broadcast %cst_16 : f32 to vector<8x8xf32>
    %15 = arith.mulf %14, %10 : vector<8x8xf32>
    %16 = math.exp %15 : vector<8x8xf32>
    %17 = arith.mulf %13, %16 : vector<8x8xf32>
    %18 = arith.addf %5, %17 : vector<8x8xf32>
    %c0_17 = arith.constant 0 : index
    %c0_18 = arith.constant 0 : index
    %19 = vector.load %arg6[%c0_17, %c0_18] : memref<8x64xf32, #tpu.memory_space<vmem>>, vector<8x64xf32>
    %cst_19 = arith.constant dense<0.000000e+00> : vector<8x64xf32>
    %20 = tpu.matmul %18, %19, %cst_19 {dimension_numbers = #tpu.dot_dimension_numbers<[1], [0], [0], [1], [0, 0, 1, 1], [], []>} : vector<8x8xf32>, vector<8x64xf32>, vector<8x64xf32> -> vector<8x64xf32>
    %c0_20 = arith.constant 0 : index
    %c0_21 = arith.constant 0 : index
    %21 = vector.load %arg7[%c0_20, %c0_21] : memref<1x64xf32, #tpu.memory_space<vmem>>, vector<1x64xf32>
    %22 = vector.broadcast %21 : vector<1x64xf32> to vector<8x64xf32>
    %23 = arith.addf %20, %22 : vector<8x64xf32>
    %c0_22 = arith.constant 0 : index
    %c0_23 = arith.constant 0 : index
    %24 = vector.load %arg8[%c0_22, %c0_23] : memref<64x1568xf32, #tpu.memory_space<vmem>>, vector<64x1568xf32>
    %cst_24 = arith.constant dense<0.000000e+00> : vector<8x1568xf32>
    %25 = tpu.matmul %23, %24, %cst_24 {dimension_numbers = #tpu.dot_dimension_numbers<[1], [0], [0], [1], [0, 0, 1, 1], [], []>} : vector<8x64xf32>, vector<64x1568xf32>, vector<8x1568xf32> -> vector<8x1568xf32>
    %c0_25 = arith.constant 0 : index
    %c0_26 = arith.constant 0 : index
    %26 = vector.load %arg9[%c0_25, %c0_26] : memref<1x1568xf32, #tpu.memory_space<vmem>>, vector<1x1568xf32>
    %27 = vector.broadcast %26 : vector<1x1568xf32> to vector<8x1568xf32>
    %28 = arith.addf %25, %27 : vector<8x1568xf32>
    %cst_27 = arith.constant 0.000000e+00 : f32
    %29 = vector.broadcast %cst_27 : f32 to vector<8x1568xf32>
    %30 = arith.maximumf %28, %29 : vector<8x1568xf32>
    %c0_28 = arith.constant 0 : index
    %c0_29 = arith.constant 0 : index
    %31 = vector.load %arg12[%c0_28, %c0_29] : memref<8x1568xf32, #tpu.memory_space<vmem>>, vector<8x1568xf32>
    tpu.vector_store %arg12[%c0_28, %c0_29], %30 {strides = array<i32>} : memref<8x1568xf32, #tpu.memory_space<vmem>>, vector<8x1568xf32>,
    return
  }
}

module attributes {stable_mosaic.version = 11 : i64} {
  func.func @_mm_bias_act_kernel(%arg0: i32, %arg1: memref<392x128xbf16, #tpu.memory_space<vmem>>, %arg2: memref<128x64xbf16, #tpu.memory_space<vmem>>, %arg3: memref<1x64xf32, #tpu.memory_space<vmem>>, %arg4: memref<392x64xf32, #tpu.memory_space<vmem>>) attributes {dimension_semantics = [#tpu.dimension_semantics<parallel>], iteration_bounds = array<i64: 1>, scalar_prefetch = 0 : i64, scratch_operands = 0 : i64, tpu.core_type = #tpu.core_type<tc>, window_params = [{transform_indices = @transform_0, window_bounds = array<i64: 392, 128>}, {pipeline_mode = #tpu.pipeline_mode<synchronous>, transform_indices = @transform_1, window_bounds = array<i64: 128, 64>}, {pipeline_mode = #tpu.pipeline_mode<synchronous>, transform_indices = @transform_2, window_bounds = array<i64: 1, 64>}, {transform_indices = @transform_3, window_bounds = array<i64: 392, 64>}]} {
    %c0 = arith.constant 0 : index
    %c0_0 = arith.constant 0 : index
    %0 = vector.load %arg1[%c0, %c0_0] : memref<392x128xbf16, #tpu.memory_space<vmem>>, vector<392x128xbf16>
    %c0_1 = arith.constant 0 : index
    %c0_2 = arith.constant 0 : index
    %1 = vector.load %arg2[%c0_1, %c0_2] : memref<128x64xbf16, #tpu.memory_space<vmem>>, vector<128x64xbf16>
    %cst = arith.constant dense<0.000000e+00> : vector<392x64xf32>
    %2 = tpu.matmul %0, %1, %cst {dimension_numbers = #tpu.dot_dimension_numbers<[1], [0], [0], [1], [0, 0, 1, 1], [], []>} : vector<392x128xbf16>, vector<128x64xbf16>, vector<392x64xf32> -> vector<392x64xf32>
    %c0_3 = arith.constant 0 : index
    %c0_4 = arith.constant 0 : index
    %3 = vector.load %arg3[%c0_3, %c0_4] : memref<1x64xf32, #tpu.memory_space<vmem>>, vector<1x64xf32>
    %4 = vector.broadcast %3 : vector<1x64xf32> to vector<392x64xf32>
    %5 = arith.addf %2, %4 : vector<392x64xf32>
    %cst_5 = arith.constant 0.000000e+00 : f32
    %6 = vector.broadcast %cst_5 : f32 to vector<392x64xf32>
    %7 = arith.maximumf %5, %6 : vector<392x64xf32>
    %c0_6 = arith.constant 0 : index
    %c0_7 = arith.constant 0 : index
    %8 = vector.load %arg4[%c0_6, %c0_7] : memref<392x64xf32, #tpu.memory_space<vmem>>, vector<392x64xf32>
    tpu.vector_store %arg4[%c0_6, %c0_7], %7 {strides = array<i32>} : memref<392x64xf32, #tpu.memory_space<vmem>>, vector<392x64xf32>,
    return
  }
  func.func @transform_0(%arg0: i32) -> (i32, i32) {
    %c0_i32 = arith.constant 0 : i32
    %c0_i32_0 = arith.constant 0 : i32
    return %arg0, %c0_i32 : i32, i32
  }
  func.func @transform_1(%arg0: i32) -> (i32, i32) {
    %c0_i32 = arith.constant 0 : i32
    %c0_i32_0 = arith.constant 0 : i32
    %c0_i32_1 = arith.constant 0 : i32
    return %c0_i32, %c0_i32_0 : i32, i32
  }
  func.func @transform_2(%arg0: i32) -> (i32, i32) {
    %c0_i32 = arith.constant 0 : i32
    %c0_i32_0 = arith.constant 0 : i32
    %c0_i32_1 = arith.constant 0 : i32
    return %c0_i32, %c0_i32_0 : i32, i32
  }
  func.func @transform_3(%arg0: i32) -> (i32, i32) {
    %c0_i32 = arith.constant 0 : i32
    %c0_i32_0 = arith.constant 0 : i32
    return %arg0, %c0_i32 : i32, i32
  }
}

module attributes {stable_mosaic.version = 11 : i64} {
  func.func @_mm_bias_act_kernel(%arg0: i32, %arg1: memref<784x64xbf16, #tpu.memory_space<vmem>>, %arg2: memref<64x4xbf16, #tpu.memory_space<vmem>>, %arg3: memref<1x4xf32, #tpu.memory_space<vmem>>, %arg4: memref<784x4xf32, #tpu.memory_space<vmem>>) attributes {dimension_semantics = [#tpu.dimension_semantics<parallel>], iteration_bounds = array<i64: 2>, scalar_prefetch = 0 : i64, scratch_operands = 0 : i64, tpu.core_type = #tpu.core_type<tc>, window_params = [{transform_indices = @transform_0, window_bounds = array<i64: 784, 64>}, {pipeline_mode = #tpu.pipeline_mode<synchronous>, transform_indices = @transform_1, window_bounds = array<i64: 64, 4>}, {pipeline_mode = #tpu.pipeline_mode<synchronous>, transform_indices = @transform_2, window_bounds = array<i64: 1, 4>}, {transform_indices = @transform_3, window_bounds = array<i64: 784, 4>}]} {
    %c0 = arith.constant 0 : index
    %c0_0 = arith.constant 0 : index
    %0 = vector.load %arg1[%c0, %c0_0] : memref<784x64xbf16, #tpu.memory_space<vmem>>, vector<784x64xbf16>
    %c0_1 = arith.constant 0 : index
    %c0_2 = arith.constant 0 : index
    %1 = vector.load %arg2[%c0_1, %c0_2] : memref<64x4xbf16, #tpu.memory_space<vmem>>, vector<64x4xbf16>
    %cst = arith.constant dense<0.000000e+00> : vector<784x4xf32>
    %2 = tpu.matmul %0, %1, %cst {dimension_numbers = #tpu.dot_dimension_numbers<[1], [0], [0], [1], [0, 0, 1, 1], [], []>} : vector<784x64xbf16>, vector<64x4xbf16>, vector<784x4xf32> -> vector<784x4xf32>
    %c0_3 = arith.constant 0 : index
    %c0_4 = arith.constant 0 : index
    %3 = vector.load %arg3[%c0_3, %c0_4] : memref<1x4xf32, #tpu.memory_space<vmem>>, vector<1x4xf32>
    %4 = vector.broadcast %3 : vector<1x4xf32> to vector<784x4xf32>
    %5 = arith.addf %2, %4 : vector<784x4xf32>
    %6 = arith.negf %5 : vector<784x4xf32>
    %7 = math.exp %6 : vector<784x4xf32>
    %cst_5 = arith.constant 1.000000e+00 : f32
    %8 = vector.broadcast %cst_5 : f32 to vector<784x4xf32>
    %9 = arith.addf %8, %7 : vector<784x4xf32>
    %10 = arith.divf %8, %9 : vector<784x4xf32>
    %c0_6 = arith.constant 0 : index
    %c0_7 = arith.constant 0 : index
    %11 = vector.load %arg4[%c0_6, %c0_7] : memref<784x4xf32, #tpu.memory_space<vmem>>, vector<784x4xf32>
    tpu.vector_store %arg4[%c0_6, %c0_7], %10 {strides = array<i32>} : memref<784x4xf32, #tpu.memory_space<vmem>>, vector<784x4xf32>,
    return
  }
  func.func @transform_0(%arg0: i32) -> (i32, i32) {
    %c0_i32 = arith.constant 0 : i32
    %c0_i32_0 = arith.constant 0 : i32
    return %arg0, %c0_i32 : i32, i32
  }
  func.func @transform_1(%arg0: i32) -> (i32, i32) {
    %c0_i32 = arith.constant 0 : i32
    %c0_i32_0 = arith.constant 0 : i32
    %c0_i32_1 = arith.constant 0 : i32
    return %c0_i32, %c0_i32_0 : i32, i32
  }
  func.func @transform_2(%arg0: i32) -> (i32, i32) {
    %c0_i32 = arith.constant 0 : i32
    %c0_i32_0 = arith.constant 0 : i32
    %c0_i32_1 = arith.constant 0 : i32
    return %c0_i32, %c0_i32_0 : i32, i32
  }
  func.func @transform_3(%arg0: i32) -> (i32, i32) {
    %c0_i32 = arith.constant 0 : i32
    %c0_i32_0 = arith.constant 0 : i32
    return %arg0, %c0_i32 : i32, i32
  }
}

</mosaic_0001>

<bundles_post_ra>
// kernel: vsc_forward.6
= control target key start
LH: loop header
LB: loop body
LE: loop exit
PB: predicated region body
PF: predicated region fallthrough
CT: control target
= control target key end

     0   :  { %8 = vsyncpa [#allocation3], 0  ;;  %s1537_s0 = inlined_call_operand.vmem [shape: bf16[512,9], index: 0, kind: input, shape index: {}]   ;;  %s1538_s1 = inlined_call_operand.hbm [shape: bf16[9,16], index: 1, kind: input, shape index: {}]   ;;  %s1539_s2 = inlined_call_operand.hbm [shape: f32[1,16], index: 2, kind: input, shape index: {}]   ;;  %s1540_s3 = inlined_call_operand.vmem [shape: f32[512,16], index: 3, kind: output, shape index: {}]  }
   0x1   :  { %9 = vsyncpa [#allocation5], 0  ;;  %s1056_s12 = smov [#allocation2]  }
   0x2   :  { %s17_s13 = sshll.u32 %s1056_s12, 4  ;;  %s18_s13 = int_to_ptr.vmem [resolvable:$true] %s17_s13 }
   0x3   :  { %s1020_s14 = scalar_lea.vmem %s18_s13, 128  ;;  %p1025_p1 = scmp.lt.s32.totalorder %s18_s13, %s18_s13 }
   0x4   :  { %p1021_p0 = scmp.ne.s32.totalorder %s18_s13, %s1020_s14  ;;  %p1026_p2 = scmp.lt.s32.totalorder %s1020_s14, %s1020_s14 }
   0x6   :  { %p1027_p3 = por %p1026_p2, %p1025_p1 }
   0x8   :  { %p1028_p4 = pnand %p1027_p3, %p1021_p0 }
   0xa   :  { %1031 = shalt.err (!%p1028_p4)
}
   0xb   :  { %s1057_s15 = smov 64   ;;  %s1058_s16 = smov 4  }
   0xc   :  { %23 = dma.hbm_to_vmem [thread:$0]  %s1538_s1, 128, %s18_s13, [#allocation3], %s1057_s15, %s1057_s15, %s1058_s16  }
   0xd   :  { %s1059_s19 = smov [#allocation4]  }
   0xe   :  { %s30_s20 = sshll.u32 %s1059_s19, 4  ;;  %s31_s20 = int_to_ptr.vmem [resolvable:$true] %s30_s20 }
   0xf   :  { %s1040_s21 = scalar_lea.vmem %s31_s20, 16  ;;  %s1044_s22 = scalar_lea.vmem %s31_s20, 32 }
  0x10   :  { %p1041_p5 = scmp.ne.s32.totalorder %s31_s20, %s1040_s21  ;;  %p1045_p6 = scmp.lt.s32.totalorder %s31_s20, %s31_s20 }
  0x11   :  { %p1046_p7 = scmp.lt.s32.totalorder %s1044_s22, %s1040_s21 }
  0x13   :  { %p1047_p8 = por %p1046_p7, %p1045_p6 }
  0x15   :  { %p1048_p9 = pnand %p1047_p8, %p1041_p5 }
  0x17   :  { %1051 = shalt.err (!%p1048_p9)
}
  0x18   :  { %33 = dma.hbm_to_vmem [thread:$0]  %s1539_s2, 16, %s31_s20, [#allocation5]  }
  0x19   :  { %1052 = dma.done.wait [#allocation3], 128  }
  0x1a   :  { %1053 = vsyncadd [#allocation3], 4294967168 }
  0x1b   :  { %1054 = dma.done.wait [#allocation5], 16  }
  0x1c   :  { %1055 = vsyncadd [#allocation5], 4294967280  ;;  %vm376_vm0 = vcmask 1043456   ;;  %vm377_vm1 = vcmask 1044480   ;;  %v1060_v0 = vmov 65535   ;;  %vm279_vm2 = vcmask 72704  }
  0x1d   :  { %v378_v1 = vsel %vm376_vm0, 4294967295, %v1060_v0  ;;  %v979_v3 = vld [vmem:[#allocation2] sm:$0x1f]   ;;  %v982_v7 = vld [vmem:[%s1537_s0 + $0x8] sm:$0xff]   ;;  %v984_v9 = vld [vmem:[%s1537_s0 + $0x10] sm:$0xff]   ;;  %vm736_vm3 = vcmask 130048  }
  0x1e   :  { %v379_v2 = vsel %vm377_vm1, %v378_v1, 0  ;;  %v980_v4 = vld [vmem:[%s1537_s0] sm:$0xff]   ;;  %v983_v8 = vld [vmem:[%s1537_s0 + $0x88] sm:$0xff]   ;;  %v985_v10 = vld [vmem:[%s1537_s0 + $0x90] sm:$0xff]  }
  0x1f   :  { %v381_v5 = vand.u32 %v979_v3, %v379_v2  ;;  %v981_v6 = vld [vmem:[%s1537_s0 + $0x80] sm:$0xff]   ;;  %908 = vmatprep.mubr.msk.bf16.mxu0 %vm279_vm2, %v980_v4  ;;  %v986_v11 = vld [vmem:[%s1537_s0 + $0x18] sm:$0xff]   ;;  %v990_v15 = vld [vmem:[%s1537_s0 + $0x28] sm:$0xff]  }
  0x20   :  { %940 = vmatprep.mubr.msk.bf16.mxu1 %vm279_vm2, %v981_v6  ;;  %v987_v12 = vld [vmem:[%s1537_s0 + $0x98] sm:$0xff]   ;;  %v988_v13 = vld [vmem:[%s1537_s0 + $0x20] sm:$0xff]   ;;  %v991_v16 = vld [vmem:[%s1537_s0 + $0xa8] sm:$0xff]  }
  0x21   :  { %906 = vmatprep.subr.bf16.mxu0 %v381_v5  ;;  %972 = vmatprep.subr.bf16.mxu1 %v381_v5  ;;  %v989_v14 = vld [vmem:[%s1537_s0 + $0xa0] sm:$0xff]   ;;  %v992_v17 = vld [vmem:[%s1537_s0 + $0x30] sm:$0xff]   ;;  %v994_v19 = vld [vmem:[%s1537_s0 + $0x38] sm:$0xff]  }
  0x22   :  { %907 = vmatpush3.bf16.msra.mxu0 %v381_v5  ;;  %973 = vmatpush3.bf16.msra.mxu1 %v381_v5  ;;  %v993_v18 = vld [vmem:[%s1537_s0 + $0xb0] sm:$0xff]   ;;  %v995_v20 = vld [vmem:[%s1537_s0 + $0xb8] sm:$0xff]   ;;  %v996_v21 = vld [vmem:[%s1537_s0 + $0x40] sm:$0xff]  }
  0x23   :  { %v997_v22 = vld [vmem:[%s1537_s0 + $0xc0] sm:$0xff]   ;;  %v998_v23 = vld [vmem:[%s1537_s0 + $0x48] sm:$0xff]   ;;  %v1000_v25 = vld [vmem:[%s1537_s0 + $0x50] sm:$0xff]  }
  0x24   :  { %v999_v24 = vld [vmem:[%s1537_s0 + $0xc8] sm:$0xff]   ;;  %v1001_v26 = vld [vmem:[%s1537_s0 + $0xd0] sm:$0xff]   ;;  %v1002_v27 = vld [vmem:[%s1537_s0 + $0x58] sm:$0xff]  }
  0x25   :  { %909 = vmatmul.mubr.msk.bf16.vlgmr.msra.gmra.mxu0 %vm279_vm2, %v982_v7  ;;  %941 = vmatmul.mubr.msk.bf16.vlgmr.msra.gmra.mxu1 %vm279_vm2, %v983_v8  ;;  %v1003_v28 = vld [vmem:[%s1537_s0 + $0xd8] sm:$0xff]   ;;  %v1004_v29 = vld [vmem:[%s1537_s0 + $0x60] sm:$0xff]   ;;  %v1006_v31 = vld [vmem:[%s1537_s0 + $0x68] sm:$0xff]  }
  0x26   :  { %912 = vmatprep.mubr.msk.bf16.mxu0 %vm279_vm2, %v984_v9  ;;  %944 = vmatprep.mubr.msk.bf16.mxu1 %vm279_vm2, %v985_v10  ;;  %v1005_v30 = vld [vmem:[%s1537_s0 + $0xe0] sm:$0xff]   ;;  %v1007_v32 = vld [vmem:[%s1537_s0 + $0xe8] sm:$0xff]   ;;  %v1008_v33 = vld [vmem:[%s1537_s0 + $0x70] sm:$0xff]  }
  0x27   :  { %v1009_v34 = vld [vmem:[%s1537_s0 + $0xf0] sm:$0xff]   ;;  %v1010_v35 = vld [vmem:[%s1537_s0 + $0x78] sm:$0xff]   ;;  %v1215_v37 = vld [vmem:[#allocation4] ss:$0 sm:$0xff] }
  0x28   :  { %v1011_v36 = vld [vmem:[%s1537_s0 + $0xf8] sm:$0xff]  }
  0x2d   :  { %913 = vmatmul.mubr.msk.bf16.gmra.mxu0 %vm279_vm2, %v986_v11  ;;  %945 = vmatmul.mubr.msk.bf16.gmra.mxu1 %vm279_vm2, %v987_v12 }
  0x2e   :  { %916 = vmatprep.mubr.msk.bf16.mxu0 %vm279_vm2, %v988_v13  ;;  %948 = vmatprep.mubr.msk.bf16.mxu1 %vm279_vm2, %v989_v14 }
  0x35   :  { %917 = vmatmul.mubr.msk.bf16.gmra.mxu0 %vm279_vm2, %v990_v15  ;;  %949 = vmatmul.mubr.msk.bf16.gmra.mxu1 %vm279_vm2, %v991_v16 }
  0x36   :  { %920 = vmatprep.mubr.msk.bf16.mxu0 %vm279_vm2, %v992_v17  ;;  %952 = vmatprep.mubr.msk.bf16.mxu1 %vm279_vm2, %v993_v18 }
  0x3d   :  { %921 = vmatmul.mubr.msk.bf16.gmra.mxu0 %vm279_vm2, %v994_v19  ;;  %953 = vmatmul.mubr.msk.bf16.gmra.mxu1 %vm279_vm2, %v995_v20 }
  0x3e   :  { %924 = vmatprep.mubr.msk.bf16.mxu0 %vm279_vm2, %v996_v21  ;;  %956 = vmatprep.mubr.msk.bf16.mxu1 %vm279_vm2, %v997_v22 }
  0x45   :  { %925 = vmatmul.mubr.msk.bf16.gmra.mxu0 %vm279_vm2, %v998_v23  ;;  %957 = vmatmul.mubr.msk.bf16.gmra.mxu1 %vm279_vm2, %v999_v24 }
  0x46   :  { %928 = vmatprep.mubr.msk.bf16.mxu0 %vm279_vm2, %v1000_v25  ;;  %960 = vmatprep.mubr.msk.bf16.mxu1 %vm279_vm2, %v1001_v26 }
  0x4d   :  { %929 = vmatmul.mubr.msk.bf16.gmra.mxu0 %vm279_vm2, %v1002_v27  ;;  %961 = vmatmul.mubr.msk.bf16.gmra.mxu1 %vm279_vm2, %v1003_v28 }
  0x4e   :  { %932 = vmatprep.mubr.msk.bf16.mxu0 %vm279_vm2, %v1004_v29  ;;  %964 = vmatprep.mubr.msk.bf16.mxu1 %vm279_vm2, %v1005_v30 }
  0x55   :  { %933 = vmatmul.mubr.msk.bf16.gmra.mxu0 %vm279_vm2, %v1006_v31  ;;  %965 = vmatmul.mubr.msk.bf16.gmra.mxu1 %vm279_vm2, %v1007_v32 }
  0x56   :  { %936 = vmatprep.mubr.msk.bf16.mxu0 %vm279_vm2, %v1008_v33  ;;  %968 = vmatprep.mubr.msk.bf16.mxu1 %vm279_vm2, %v1009_v34 }
  0x5d   :  { %937 = vmatmul.mubr.msk.bf16.gmra.mxu0 %vm279_vm2, %v1010_v35  ;;  %969 = vmatmul.mubr.msk.bf16.gmra.mxu1 %vm279_vm2, %v1011_v36 }
  0xe5   :  { %v910_v38 = vpop.f32.mrf.mxu0  ;;  %v942_v39 = vpop.f32.mrf.mxu1 }
  0xe6   :  { %v426_v40 = vadd.f32 %v910_v38, %v1215_v37  ;;  %v554_v41 = vadd.f32 %v942_v39, %v1215_v37 }
  0xe7   :  { %v417_v42 = vpop.f32.mrf.mxu0  ;;  %v545_v43 = vpop.f32.mrf.mxu1 }
  0xe8   :  { %v674_v44 = vmax.f32 %v426_v40, 0.0  ;;  %v706_v45 = vmax.f32 %v554_v41, 0.0  ;;  %v418_v46 = vadd.f32 %v1215_v37, %v417_v42  ;;  %v546_v47 = vadd.f32 %v1215_v37, %v545_v43 }
  0xe9   :  { %v911_v48 = vpop.f32.mrf.mxu0  ;;  %v943_v49 = vpop.f32.mrf.mxu1 }
  0xea   :  { %739 = vst.msk [vmem:[%s1540_s3 + $0x10] sm:$0xff] %vm736_vm3, %v674_v44  ;;  %771 = vst.msk [vmem:[%s1540_s3 + $0x110] sm:$0xff] %vm736_vm3, %v706_v45  ;;  %v672_v50 = vmax.f32 %v418_v46, 0.0  ;;  %v704_v51 = vmax.f32 %v546_v47, 0.0  ;;  %v429_v52 = vadd.f32 %v911_v48, %v1215_v37  ;;  %v557_v53 = vadd.f32 %v943_v49, %v1215_v37 }
  0xeb   :  { %v420_v54 = vpop.f32.mrf.mxu0  ;;  %v548_v55 = vpop.f32.mrf.mxu1 }
  0xec   :  { %737 = vst.msk [vmem:[%s1540_s3] sm:$0xff] %vm736_vm3, %v672_v50  ;;  %769 = vst.msk [vmem:[%s1540_s3 + $0x100] sm:$0xff] %vm736_vm3, %v704_v51  ;;  %v675_v56 = vmax.f32 %v429_v52, 0.0  ;;  %v707_v57 = vmax.f32 %v557_v53, 0.0  ;;  %v421_v58 = vadd.f32 %v1215_v37, %v420_v54  ;;  %v549_v59 = vadd.f32 %v1215_v37, %v548_v55 }
  0xed   :  { %v914_v60 = vpop.f32.mrf.mxu0  ;;  %v946_v61 = vpop.f32.mrf.mxu1 }
  0xee   :  { %740 = vst.msk [vmem:[%s1540_s3 + $0x18] sm:$0xff] %vm736_vm3, %v675_v56  ;;  %772 = vst.msk [vmem:[%s1540_s3 + $0x118] sm:$0xff] %vm736_vm3, %v707_v57  ;;  %v673_v62 = vmax.f32 %v421_v58, 0.0  ;;  %v705_v63 = vmax.f32 %v549_v59, 0.0  ;;  %v442_v0 = vadd.f32 %v914_v60, %v1215_v37  ;;  %v570_v1 = vadd.f32 %v946_v61, %v1215_v37 }
  0xef   :  { %v433_v2 = vpop.f32.mrf.mxu0  ;;  %v561_v3 = vpop.f32.mrf.mxu1 }
  0xf0   :  { %738 = vst.msk [vmem:[%s1540_s3 + $0x8] sm:$0xff] %vm736_vm3, %v673_v62  ;;  %770 = vst.msk [vmem:[%s1540_s3 + $0x108] sm:$0xff] %vm736_vm3, %v705_v63  ;;  %v678_v4 = vmax.f32 %v442_v0, 0.0  ;;  %v710_v5 = vmax.f32 %v570_v1, 0.0  ;;  %v434_v6 = vadd.f32 %v1215_v37, %v433_v2  ;;  %v562_v7 = vadd.f32 %v1215_v37, %v561_v3 }
  0xf1   :  { %v915_v8 = vpop.f32.mrf.mxu0  ;;  %v947_v9 = vpop.f32.mrf.mxu1 }
  0xf2   :  { %743 = vst.msk [vmem:[%s1540_s3 + $0x30] sm:$0xff] %vm736_vm3, %v678_v4  ;;  %775 = vst.msk [vmem:[%s1540_s3 + $0x130] sm:$0xff] %vm736_vm3, %v710_v5  ;;  %v676_v10 = vmax.f32 %v434_v6, 0.0  ;;  %v708_v11 = vmax.f32 %v562_v7, 0.0  ;;  %v445_v12 = vadd.f32 %v915_v8, %v1215_v37  ;;  %v573_v13 = vadd.f32 %v947_v9, %v1215_v37 }
  0xf3   :  { %v436_v14 = vpop.f32.mrf.mxu0  ;;  %v564_v15 = vpop.f32.mrf.mxu1 }
  0xf4   :  { %741 = vst.msk [vmem:[%s1540_s3 + $0x20] sm:$0xff] %vm736_vm3, %v676_v10  ;;  %773 = vst.msk [vmem:[%s1540_s3 + $0x120] sm:$0xff] %vm736_vm3, %v708_v11  ;;  %v679_v16 = vmax.f32 %v445_v12, 0.0  ;;  %v711_v17 = vmax.f32 %v573_v13, 0.0  ;;  %v437_v18 = vadd.f32 %v1215_v37, %v436_v14  ;;  %v565_v19 = vadd.f32 %v1215_v37, %v564_v15 }
  0xf5   :  { %v918_v20 = vpop.f32.mrf.mxu0  ;;  %v950_v21 = vpop.f32.mrf.mxu1 }
  0xf6   :  { %744 = vst.msk [vmem:[%s1540_s3 + $0x38] sm:$0xff] %vm736_vm3, %v679_v16  ;;  %776 = vst.msk [vmem:[%s1540_s3 + $0x138] sm:$0xff] %vm736_vm3, %v711_v17  ;;  %v677_v22 = vmax.f32 %v437_v18, 0.0  ;;  %v709_v23 = vmax.f32 %v565_v19, 0.0  ;;  %v458_v24 = vadd.f32 %v918_v20, %v1215_v37  ;;  %v586_v25 = vadd.f32 %v950_v21, %v1215_v37 }
  0xf7   :  { %v449_v26 = vpop.f32.mrf.mxu0  ;;  %v577_v27 = vpop.f32.mrf.mxu1 }
  0xf8   :  { %742 = vst.msk [vmem:[%s1540_s3 + $0x28] sm:$0xff] %vm736_vm3, %v677_v22  ;;  %774 = vst.msk [vmem:[%s1540_s3 + $0x128] sm:$0xff] %vm736_vm3, %v709_v23  ;;  %v682_v28 = vmax.f32 %v458_v24, 0.0  ;;  %v714_v29 = vmax.f32 %v586_v25, 0.0  ;;  %v450_v30 = vadd.f32 %v1215_v37, %v449_v26  ;;  %v578_v31 = vadd.f32 %v1215_v37, %v577_v27 }
  0xf9   :  { %v919_v32 = vpop.f32.mrf.mxu0  ;;  %v951_v33 = vpop.f32.mrf.mxu1 }
  0xfa   :  { %747 = vst.msk [vmem:[%s1540_s3 + $0x50] sm:$0xff] %vm736_vm3, %v682_v28  ;;  %779 = vst.msk [vmem:[%s1540_s3 + $0x150] sm:$0xff] %vm736_vm3, %v714_v29  ;;  %v680_v34 = vmax.f32 %v450_v30, 0.0  ;;  %v712_v35 = vmax.f32 %v578_v31, 0.0  ;;  %v461_v36 = vadd.f32 %v919_v32, %v1215_v37  ;;  %v589_v38 = vadd.f32 %v951_v33, %v1215_v37 }
  0xfb   :  { %v452_v39 = vpop.f32.mrf.mxu0  ;;  %v580_v40 = vpop.f32.mrf.mxu1 }
  0xfc   :  { %745 = vst.msk [vmem:[%s1540_s3 + $0x40] sm:$0xff] %vm736_vm3, %v680_v34  ;;  %777 = vst.msk [vmem:[%s1540_s3 + $0x140] sm:$0xff] %vm736_vm3, %v712_v35  ;;  %v683_v41 = vmax.f32 %v461_v36, 0.0  ;;  %v715_v42 = vmax.f32 %v589_v38, 0.0  ;;  %v453_v43 = vadd.f32 %v1215_v37, %v452_v39  ;;  %v581_v44 = vadd.f32 %v1215_v37, %v580_v40 }
  0xfd   :  { %v922_v45 = vpop.f32.mrf.mxu0  ;;  %v954_v46 = vpop.f32.mrf.mxu1 }
  0xfe   :  { %748 = vst.msk [vmem:[%s1540_s3 + $0x58] sm:$0xff] %vm736_vm3, %v683_v41  ;;  %780 = vst.msk [vmem:[%s1540_s3 + $0x158] sm:$0xff] %vm736_vm3, %v715_v42  ;;  %v681_v47 = vmax.f32 %v453_v43, 0.0  ;;  %v713_v48 = vmax.f32 %v581_v44, 0.0  ;;  %v474_v49 = vadd.f32 %v922_v45, %v1215_v37  ;;  %v602_v50 = vadd.f32 %v954_v46, %v1215_v37 }
  0xff   :  { %v465_v51 = vpop.f32.mrf.mxu0  ;;  %v593_v52 = vpop.f32.mrf.mxu1 }
 0x100   :  { %746 = vst.msk [vmem:[%s1540_s3 + $0x48] sm:$0xff] %vm736_vm3, %v681_v47  ;;  %778 = vst.msk [vmem:[%s1540_s3 + $0x148] sm:$0xff] %vm736_vm3, %v713_v48  ;;  %v686_v53 = vmax.f32 %v474_v49, 0.0  ;;  %v718_v54 = vmax.f32 %v602_v50, 0.0  ;;  %v466_v55 = vadd.f32 %v1215_v37, %v465_v51  ;;  %v594_v56 = vadd.f32 %v1215_v37, %v593_v52 }
 0x101   :  { %v923_v57 = vpop.f32.mrf.mxu0  ;;  %v955_v58 = vpop.f32.mrf.mxu1 }
 0x102   :  { %751 = vst.msk [vmem:[%s1540_s3 + $0x70] sm:$0xff] %vm736_vm3, %v686_v53  ;;  %783 = vst.msk [vmem:[%s1540_s3 + $0x170] sm:$0xff] %vm736_vm3, %v718_v54  ;;  %v684_v59 = vmax.f32 %v466_v55, 0.0  ;;  %v716_v60 = vmax.f32 %v594_v56, 0.0  ;;  %v477_v61 = vadd.f32 %v923_v57, %v1215_v37  ;;  %v605_v62 = vadd.f32 %v955_v58, %v1215_v37 }
 0x103   :  { %v468_v63 = vpop.f32.mrf.mxu0  ;;  %v596_v0 = vpop.f32.mrf.mxu1 }
 0x104   :  { %749 = vst.msk [vmem:[%s1540_s3 + $0x60] sm:$0xff] %vm736_vm3, %v684_v59  ;;  %781 = vst.msk [vmem:[%s1540_s3 + $0x160] sm:$0xff] %vm736_vm3, %v716_v60  ;;  %v687_v1 = vmax.f32 %v477_v61, 0.0  ;;  %v719_v2 = vmax.f32 %v605_v62, 0.0  ;;  %v469_v3 = vadd.f32 %v1215_v37, %v468_v63  ;;  %v597_v4 = vadd.f32 %v1215_v37, %v596_v0 }
 0x105   :  { %v926_v5 = vpop.f32.mrf.mxu0  ;;  %v958_v6 = vpop.f32.mrf.mxu1 }
 0x106   :  { %752 = vst.msk [vmem:[%s1540_s3 + $0x78] sm:$0xff] %vm736_vm3, %v687_v1  ;;  %784 = vst.msk [vmem:[%s1540_s3 + $0x178] sm:$0xff] %vm736_vm3, %v719_v2  ;;  %v685_v7 = vmax.f32 %v469_v3, 0.0  ;;  %v717_v8 = vmax.f32 %v597_v4, 0.0  ;;  %v490_v9 = vadd.f32 %v926_v5, %v1215_v37  ;;  %v618_v10 = vadd.f32 %v958_v6, %v1215_v37 }
 0x107   :  { %v481_v11 = vpop.f32.mrf.mxu0  ;;  %v609_v12 = vpop.f32.mrf.mxu1 }
 0x108   :  { %750 = vst.msk [vmem:[%s1540_s3 + $0x68] sm:$0xff] %vm736_vm3, %v685_v7  ;;  %782 = vst.msk [vmem:[%s1540_s3 + $0x168] sm:$0xff] %vm736_vm3, %v717_v8  ;;  %v690_v13 = vmax.f32 %v490_v9, 0.0  ;;  %v722_v14 = vmax.f32 %v618_v10, 0.0  ;;  %v482_v15 = vadd.f32 %v1215_v37, %v481_v11  ;;  %v610_v16 = vadd.f32 %v1215_v37, %v609_v12 }
 0x109   :  { %v927_v17 = vpop.f32.mrf.mxu0  ;;  %v959_v18 = vpop.f32.mrf.mxu1 }
 0x10a   :  { %755 = vst.msk [vmem:[%s1540_s3 + $0x90] sm:$0xff] %vm736_vm3, %v690_v13  ;;  %787 = vst.msk [vmem:[%s1540_s3 + $0x190] sm:$0xff] %vm736_vm3, %v722_v14  ;;  %v688_v19 = vmax.f32 %v482_v15, 0.0  ;;  %v720_v20 = vmax.f32 %v610_v16, 0.0  ;;  %v493_v21 = vadd.f32 %v927_v17, %v1215_v37  ;;  %v621_v22 = vadd.f32 %v959_v18, %v1215_v37 }
 0x10b   :  { %v484_v23 = vpop.f32.mrf.mxu0  ;;  %v612_v24 = vpop.f32.mrf.mxu1 }
 0x10c   :  { %753 = vst.msk [vmem:[%s1540_s3 + $0x80] sm:$0xff] %vm736_vm3, %v688_v19  ;;  %785 = vst.msk [vmem:[%s1540_s3 + $0x180] sm:$0xff] %vm736_vm3, %v720_v20  ;;  %v691_v25 = vmax.f32 %v493_v21, 0.0  ;;  %v723_v26 = vmax.f32 %v621_v22, 0.0  ;;  %v485_v27 = vadd.f32 %v1215_v37, %v484_v23  ;;  %v613_v28 = vadd.f32 %v1215_v37, %v612_v24 }
 0x10d   :  { %v930_v29 = vpop.f32.mrf.mxu0  ;;  %v962_v30 = vpop.f32.mrf.mxu1 }
 0x10e   :  { %756 = vst.msk [vmem:[%s1540_s3 + $0x98] sm:$0xff] %vm736_vm3, %v691_v25  ;;  %788 = vst.msk [vmem:[%s1540_s3 + $0x198] sm:$0xff] %vm736_vm3, %v723_v26  ;;  %v689_v31 = vmax.f32 %v485_v27, 0.0  ;;  %v721_v32 = vmax.f32 %v613_v28, 0.0  ;;  %v506_v33 = vadd.f32 %v930_v29, %v1215_v37  ;;  %v634_v34 = vadd.f32 %v962_v30, %v1215_v37 }
 0x10f   :  { %v497_v35 = vpop.f32.mrf.mxu0  ;;  %v625_v36 = vpop.f32.mrf.mxu1 }
 0x110   :  { %754 = vst.msk [vmem:[%s1540_s3 + $0x88] sm:$0xff] %vm736_vm3, %v689_v31  ;;  %786 = vst.msk [vmem:[%s1540_s3 + $0x188] sm:$0xff] %vm736_vm3, %v721_v32  ;;  %v694_v38 = vmax.f32 %v506_v33, 0.0  ;;  %v726_v39 = vmax.f32 %v634_v34, 0.0  ;;  %v498_v40 = vadd.f32 %v1215_v37, %v497_v35  ;;  %v626_v41 = vadd.f32 %v1215_v37, %v625_v36 }
 0x111   :  { %v931_v42 = vpop.f32.mrf.mxu0  ;;  %v963_v43 = vpop.f32.mrf.mxu1 }
 0x112   :  { %759 = vst.msk [vmem:[%s1540_s3 + $0xb0] sm:$0xff] %vm736_vm3, %v694_v38  ;;  %791 = vst.msk [vmem:[%s1540_s3 + $0x1b0] sm:$0xff] %vm736_vm3, %v726_v39  ;;  %v692_v44 = vmax.f32 %v498_v40, 0.0  ;;  %v724_v45 = vmax.f32 %v626_v41, 0.0  ;;  %v509_v46 = vadd.f32 %v931_v42, %v1215_v37  ;;  %v637_v47 = vadd.f32 %v963_v43, %v1215_v37 }
 0x113   :  { %v500_v48 = vpop.f32.mrf.mxu0  ;;  %v628_v49 = vpop.f32.mrf.mxu1 }
 0x114   :  { %757 = vst.msk [vmem:[%s1540_s3 + $0xa0] sm:$0xff] %vm736_vm3, %v692_v44  ;;  %789 = vst.msk [vmem:[%s1540_s3 + $0x1a0] sm:$0xff] %vm736_vm3, %v724_v45  ;;  %v695_v50 = vmax.f32 %v509_v46, 0.0  ;;  %v727_v51 = vmax.f32 %v637_v47, 0.0  ;;  %v501_v52 = vadd.f32 %v1215_v37, %v500_v48  ;;  %v629_v53 = vadd.f32 %v1215_v37, %v628_v49 }
 0x115   :  { %v934_v54 = vpop.f32.mrf.mxu0  ;;  %v966_v55 = vpop.f32.mrf.mxu1 }
 0x116   :  { %760 = vst.msk [vmem:[%s1540_s3 + $0xb8] sm:$0xff] %vm736_vm3, %v695_v50  ;;  %792 = vst.msk [vmem:[%s1540_s3 + $0x1b8] sm:$0xff] %vm736_vm3, %v727_v51  ;;  %v693_v56 = vmax.f32 %v501_v52, 0.0  ;;  %v725_v57 = vmax.f32 %v629_v53, 0.0  ;;  %v522_v58 = vadd.f32 %v934_v54, %v1215_v37  ;;  %v650_v59 = vadd.f32 %v966_v55, %v1215_v37 }
 0x117   :  { %v513_v60 = vpop.f32.mrf.mxu0  ;;  %v641_v61 = vpop.f32.mrf.mxu1 }
 0x118   :  { %758 = vst.msk [vmem:[%s1540_s3 + $0xa8] sm:$0xff] %vm736_vm3, %v693_v56  ;;  %790 = vst.msk [vmem:[%s1540_s3 + $0x1a8] sm:$0xff] %vm736_vm3, %v725_v57  ;;  %v698_v62 = vmax.f32 %v522_v58, 0.0  ;;  %v730_v63 = vmax.f32 %v650_v59, 0.0  ;;  %v514_v0 = vadd.f32 %v1215_v37, %v513_v60  ;;  %v642_v1 = vadd.f32 %v1215_v37, %v641_v61 }
 0x119   :  { %v935_v2 = vpop.f32.mrf.mxu0  ;;  %v967_v3 = vpop.f32.mrf.mxu1 }
 0x11a   :  { %763 = vst.msk [vmem:[%s1540_s3 + $0xd0] sm:$0xff] %vm736_vm3, %v698_v62  ;;  %795 = vst.msk [vmem:[%s1540_s3 + $0x1d0] sm:$0xff] %vm736_vm3, %v730_v63  ;;  %v696_v4 = vmax.f32 %v514_v0, 0.0  ;;  %v728_v5 = vmax.f32 %v642_v1, 0.0  ;;  %v525_v6 = vadd.f32 %v935_v2, %v1215_v37  ;;  %v653_v7 = vadd.f32 %v967_v3, %v1215_v37 }
 0x11b   :  { %v516_v8 = vpop.f32.mrf.mxu0  ;;  %v644_v9 = vpop.f32.mrf.mxu1 }
 0x11c   :  { %761 = vst.msk [vmem:[%s1540_s3 + $0xc0] sm:$0xff] %vm736_vm3, %v696_v4  ;;  %793 = vst.msk [vmem:[%s1540_s3 + $0x1c0] sm:$0xff] %vm736_vm3, %v728_v5  ;;  %v699_v10 = vmax.f32 %v525_v6, 0.0  ;;  %v731_v11 = vmax.f32 %v653_v7, 0.0  ;;  %v517_v12 = vadd.f32 %v1215_v37, %v516_v8  ;;  %v645_v13 = vadd.f32 %v1215_v37, %v644_v9 }
 0x11d   :  { %v938_v14 = vpop.f32.mrf.mxu0  ;;  %v970_v15 = vpop.f32.mrf.mxu1 }
 0x11e   :  { %764 = vst.msk [vmem:[%s1540_s3 + $0xd8] sm:$0xff] %vm736_vm3, %v699_v10  ;;  %796 = vst.msk [vmem:[%s1540_s3 + $0x1d8] sm:$0xff] %vm736_vm3, %v731_v11  ;;  %v697_v16 = vmax.f32 %v517_v12, 0.0  ;;  %v729_v17 = vmax.f32 %v645_v13, 0.0  ;;  %v538_v18 = vadd.f32 %v938_v14, %v1215_v37  ;;  %v666_v19 = vadd.f32 %v970_v15, %v1215_v37 }
 0x11f   :  { %v529_v20 = vpop.f32.mrf.mxu0  ;;  %v657_v21 = vpop.f32.mrf.mxu1 }
 0x120   :  { %762 = vst.msk [vmem:[%s1540_s3 + $0xc8] sm:$0xff] %vm736_vm3, %v697_v16  ;;  %794 = vst.msk [vmem:[%s1540_s3 + $0x1c8] sm:$0xff] %vm736_vm3, %v729_v17  ;;  %v702_v22 = vmax.f32 %v538_v18, 0.0  ;;  %v734_v23 = vmax.f32 %v666_v19, 0.0  ;;  %v530_v24 = vadd.f32 %v1215_v37, %v529_v20  ;;  %v658_v25 = vadd.f32 %v1215_v37, %v657_v21 }
 0x121   :  { %v939_v26 = vpop.f32.mrf.mxu0  ;;  %v971_v27 = vpop.f32.mrf.mxu1 }
 0x122   :  { %767 = vst.msk [vmem:[%s1540_s3 + $0xf0] sm:$0xff] %vm736_vm3, %v702_v22  ;;  %799 = vst.msk [vmem:[%s1540_s3 + $0x1f0] sm:$0xff] %vm736_vm3, %v734_v23  ;;  %v700_v28 = vmax.f32 %v530_v24, 0.0  ;;  %v732_v29 = vmax.f32 %v658_v25, 0.0  ;;  %v541_v30 = vadd.f32 %v939_v26, %v1215_v37  ;;  %v669_v31 = vadd.f32 %v971_v27, %v1215_v37 }
 0x123   :  { %v532_v32 = vpop.f32.mrf.mxu0  ;;  %v660_v33 = vpop.f32.mrf.mxu1 }
 0x124   :  { %765 = vst.msk [vmem:[%s1540_s3 + $0xe0] sm:$0xff] %vm736_vm3, %v700_v28  ;;  %797 = vst.msk [vmem:[%s1540_s3 + $0x1e0] sm:$0xff] %vm736_vm3, %v732_v29  ;;  %v703_v34 = vmax.f32 %v541_v30, 0.0  ;;  %v735_v35 = vmax.f32 %v669_v31, 0.0  ;;  %v533_v36 = vadd.f32 %v1215_v37, %v532_v32  ;;  %v661_v38 = vadd.f32 %v1215_v37, %v660_v33 }
 0x126   :  { %768 = vst.msk [vmem:[%s1540_s3 + $0xf8] sm:$0xff] %vm736_vm3, %v703_v34  ;;  %800 = vst.msk [vmem:[%s1540_s3 + $0x1f8] sm:$0xff] %vm736_vm3, %v735_v35  ;;  %v701_v39 = vmax.f32 %v533_v36, 0.0  ;;  %v733_v40 = vmax.f32 %v661_v38, 0.0 }
 0x128   :  { %766 = vst.msk [vmem:[%s1540_s3 + $0xe8] sm:$0xff] %vm736_vm3, %v701_v39  ;;  %798 = vst.msk [vmem:[%s1540_s3 + $0x1e8] sm:$0xff] %vm736_vm3, %v733_v40 }
 0x129   :  { %805 = vsyncpa [#allocation3], 1 }
 0x12a   :  { %806 = vsyncpa [#allocation5], 1 }

// kernel: vsc_forward.7
= control target key start
LH: loop header
LB: loop body
LE: loop exit
PB: predicated region body
PF: predicated region fallthrough
CT: control target
= control target key end

     0   :  { %v427_v0 = vmov 0   ;;  %vm182_vm0 = vcmask 130048   ;;  %vm320_vm1 = vcmask 261120   ;;  %s616_s1 = inlined_call_operand.vmem [shape: bf16[144,32], index: 1, kind: input, shape index: {}]   ;;  %s617_s0 = inlined_call_operand.vmem [shape: bf16[128,144], index: 0, kind: input, shape index: {}]   ;;  %s618_s2 = inlined_call_operand.vmem [shape: f32[1,32], index: 2, kind: input, shape index: {}]   ;;  %s619_s3 = inlined_call_operand.vmem [shape: f32[128,32], index: 3, kind: output, shape index: {}]  }
   0x1   :  { %207 = vmatprep.subr.bf16.mxu0 %v427_v0  ;;  %375 = vmatprep.subr.bf16.mxu1 %v427_v0  ;;  %v394_v1 = vld [vmem:[%s616_s1 + $0x38] sm:$0xff]   ;;  %v395_v2 = vld [vmem:[%s616_s1 + $0x30] sm:$0xff]   ;;  %v396_v3 = vld [vmem:[%s616_s1 + $0x28] sm:$0xff]  }
   0x2   :  { %208 = vmatpush1.bf16.msra.mxu0 %v394_v1  ;;  %384 = vmatpush1.bf16.msra.mxu1 %v394_v1  ;;  %v397_v4 = vld [vmem:[%s616_s1 + $0x20] sm:$0xff]   ;;  %v398_v7 = vld [vmem:[%s616_s1 + $0x18] sm:$0xff]   ;;  %v399_v8 = vld [vmem:[%s616_s1 + $0x10] sm:$0xff]  }
   0x3   :  { %209 = vmatprep.subr.bf16.mxu0 %v427_v0  ;;  %376 = vmatprep.subr.bf16.mxu1 %v427_v0  ;;  %v405_v5 = vld [vmem:[%s617_s0 + $0x4] ss:$8 sps:$4 sm:$0xff]   ;;  %v403_v12 = vld [vmem:[%s617_s0] ss:$8 sps:$4 sm:$0xff]   ;;  %v409_v14 = vld [vmem:[%s617_s0 + $0x14] ss:$8 sps:$4 sm:$0xff]  }
   0x4   :  { %v408_v6 = vld [vmem:[%s617_s0 + $0x44] ss:$8 sps:$4 sm:$0xff]   ;;  %367 = vmatprep.mubr.msk.bf16.mxu0 %vm182_vm0, %v405_v5  ;;  %v406_v13 = vld [vmem:[%s617_s0 + $0x40] ss:$8 sps:$4 sm:$0xff]   ;;  %v411_v15 = vld [vmem:[%s617_s0 + $0x54] ss:$8 sps:$4 sm:$0xff]  }
   0x5   :  { %371 = vmatprep.mubr.msk.bf16.mxu1 %vm182_vm0, %v408_v6  ;;  %v400_v9 = vld [vmem:[%s616_s1 + $0x8] sm:$0xff]   ;;  %v401_v10 = vld [vmem:[%s616_s1] sm:$0xff]   ;;  %v413_v16 = vld [vmem:[%s617_s0 + $0x10] ss:$8 sps:$4 sm:$0xff]  }
   0x6   :  { %210 = vmatpush1.bf16.msra.mxu0 %v395_v2  ;;  %385 = vmatpush1.bf16.msra.mxu1 %v395_v2  ;;  %v402_v11 = vld [vmem:[%s616_s1 + $0x40] sm:$0xff]   ;;  %v414_v17 = vld [vmem:[%s617_s0 + $0x50] ss:$8 sps:$4 sm:$0xff]   ;;  %v421_v22 = vld [vmem:[%s617_s0 + $0x34] ss:$8 sps:$4 sm:$0xff]  }
   0x7   :  { %211 = vmatprep.subr.bf16.mxu0 %v427_v0  ;;  %377 = vmatprep.subr.bf16.mxu1 %v427_v0  ;;  %v415_v18 = vld [vmem:[%s617_s0 + $0x24] ss:$8 sps:$4 sm:$0xff]   ;;  %v419_v20 = vld [vmem:[%s617_s0 + $0x20] ss:$8 sps:$4 sm:$0xff]   ;;  %v423_v23 = vld [vmem:[%s617_s0 + $0x74] ss:$8 sps:$4 sm:$0xff]  }
   0x8   :  { %v417_v19 = vld [vmem:[%s617_s0 + $0x64] ss:$8 sps:$4 sm:$0xff]   ;;  %v420_v21 = vld [vmem:[%s617_s0 + $0x60] ss:$8 sps:$4 sm:$0xff]   ;;  %v425_v24 = vld [vmem:[%s617_s0 + $0x30] ss:$8 sps:$4 sm:$0xff]  }
   0x9   :  { %v426_v25 = vld [vmem:[%s617_s0 + $0x70] ss:$8 sps:$4 sm:$0xff]   ;;  %v534_v26 = vld [vmem:[%s618_s2] ss:$0 sm:$0xff] }
   0xa   :  { %212 = vmatpush1.bf16.msra.mxu0 %v396_v3  ;;  %386 = vmatpush1.bf16.msra.mxu1 %v396_v3 }
   0xb   :  { %213 = vmatprep.subr.bf16.mxu0 %v427_v0  ;;  %378 = vmatprep.subr.bf16.mxu1 %v427_v0 }
   0xe   :  { %214 = vmatpush1.bf16.msra.mxu0 %v397_v4  ;;  %387 = vmatpush1.bf16.msra.mxu1 %v397_v4 }
   0xf   :  { %215 = vmatprep.subr.bf16.mxu0 %v427_v0  ;;  %379 = vmatprep.subr.bf16.mxu1 %v427_v0 }
  0x12   :  { %216 = vmatpush1.bf16.msra.mxu0 %v398_v7  ;;  %388 = vmatpush1.bf16.msra.mxu1 %v398_v7 }
  0x13   :  { %217 = vmatprep.subr.bf16.mxu0 %v427_v0  ;;  %380 = vmatprep.subr.bf16.mxu1 %v427_v0 }
  0x16   :  { %218 = vmatpush1.bf16.msra.mxu0 %v399_v8  ;;  %389 = vmatpush1.bf16.msra.mxu1 %v399_v8 }
  0x17   :  { %219 = vmatprep.subr.bf16.mxu0 %v427_v0  ;;  %381 = vmatprep.subr.bf16.mxu1 %v427_v0 }
  0x1a   :  { %220 = vmatpush1.bf16.msra.mxu0 %v400_v9  ;;  %390 = vmatpush1.bf16.msra.mxu1 %v400_v9 }
  0x1b   :  { %221 = vmatprep.subr.bf16.mxu0 %v427_v0  ;;  %382 = vmatprep.subr.bf16.mxu1 %v427_v0 }
  0x1e   :  { %222 = vmatpush1.bf16.msra.mxu0 %v401_v10  ;;  %391 = vmatpush1.bf16.msra.mxu1 %v401_v10 }
  0x1f   :  { %237 = vmatprep.subr.bf16.mxu0 %v427_v0  ;;  %383 = vmatprep.subr.bf16.mxu1 %v427_v0 }
  0x22   :  { %238 = vmatpush2.bf16.msra.mxu0 %v402_v11  ;;  %392 = vmatpush2.bf16.msra.mxu1 %v402_v11 }
  0x25   :  { %240 = vmatmul.mubr.bf16.vlgmr.msra.gmra.mxu0 %v403_v12  ;;  %272 = vmatmul.mubr.bf16.vlgmr.msra.gmra.mxu1 %v406_v13 }
  0x26   :  { %368 = vmatprep.mubr.msk.bf16.mxu0 %vm182_vm0, %v409_v14  ;;  %372 = vmatprep.mubr.msk.bf16.mxu1 %vm182_vm0, %v411_v15 }
  0x2d   :  { %248 = vmatmul.mubr.bf16.gmra.mxu0 %v413_v16  ;;  %280 = vmatmul.mubr.bf16.gmra.mxu1 %v414_v17 }
  0x2e   :  { %369 = vmatprep.mubr.msk.bf16.mxu0 %vm182_vm0, %v415_v18  ;;  %373 = vmatprep.mubr.msk.bf16.mxu1 %vm182_vm0, %v417_v19 }
  0x35   :  { %256 = vmatmul.mubr.bf16.gmra.mxu0 %v419_v20  ;;  %288 = vmatmul.mubr.bf16.gmra.mxu1 %v420_v21 }
  0x36   :  { %370 = vmatprep.mubr.msk.bf16.mxu0 %vm182_vm0, %v421_v22  ;;  %374 = vmatprep.mubr.msk.bf16.mxu1 %vm182_vm0, %v423_v23 }
  0x3d   :  { %264 = vmatmul.mubr.bf16.gmra.mxu0 %v425_v24  ;;  %296 = vmatmul.mubr.bf16.gmra.mxu1 %v426_v25 }
  0xe5   :  { %v241_v27 = vpop.f32.mrf.mxu0  ;;  %v273_v28 = vpop.f32.mrf.mxu1 }
  0xe6   :  { %v242_v29 = vadd.f32 %v534_v26, %v241_v27  ;;  %v274_v30 = vadd.f32 %v534_v26, %v273_v28 }
  0xe7   :  { %v243_v31 = vpop.f32.mrf.mxu0  ;;  %v275_v32 = vpop.f32.mrf.mxu1 }
  0xe8   :  { %v304_v33 = vmax.f32 %v242_v29, 0.0  ;;  %v312_v34 = vmax.f32 %v274_v30, 0.0 }
  0xe9   :  { %v244_v35 = vpop.f32.mrf.mxu0  ;;  %v276_v36 = vpop.f32.mrf.mxu1 }
  0xea   :  { %321 = vst.msk [vmem:[%s619_s3] sm:$0xff] %vm320_vm1, %v304_v33  ;;  %329 = vst.msk [vmem:[%s619_s3 + $0x40] sm:$0xff] %vm320_vm1, %v312_v34  ;;  %v245_v37 = vadd.f32 %v534_v26, %v244_v35  ;;  %v277_v38 = vadd.f32 %v534_v26, %v276_v36 }
  0xeb   :  { %v246_v39 = vpop.f32.mrf.mxu0  ;;  %v278_v40 = vpop.f32.mrf.mxu1 }
  0xec   :  { %v305_v41 = vmax.f32 %v245_v37, 0.0  ;;  %v313_v42 = vmax.f32 %v277_v38, 0.0 }
  0xed   :  { %v249_v43 = vpop.f32.mrf.mxu0  ;;  %v281_v44 = vpop.f32.mrf.mxu1 }
  0xee   :  { %322 = vst.msk [vmem:[%s619_s3 + $0x8] sm:$0xff] %vm320_vm1, %v305_v41  ;;  %330 = vst.msk [vmem:[%s619_s3 + $0x48] sm:$0xff] %vm320_vm1, %v313_v42  ;;  %v250_v45 = vadd.f32 %v534_v26, %v249_v43  ;;  %v282_v46 = vadd.f32 %v534_v26, %v281_v44 }
  0xef   :  { %v251_v47 = vpop.f32.mrf.mxu0  ;;  %v283_v48 = vpop.f32.mrf.mxu1 }
  0xf0   :  { %v306_v49 = vmax.f32 %v250_v45, 0.0  ;;  %v314_v50 = vmax.f32 %v282_v46, 0.0 }
  0xf1   :  { %v252_v51 = vpop.f32.mrf.mxu0  ;;  %v284_v52 = vpop.f32.mrf.mxu1 }
  0xf2   :  { %323 = vst.msk [vmem:[%s619_s3 + $0x10] sm:$0xff] %vm320_vm1, %v306_v49  ;;  %331 = vst.msk [vmem:[%s619_s3 + $0x50] sm:$0xff] %vm320_vm1, %v314_v50  ;;  %v253_v53 = vadd.f32 %v534_v26, %v252_v51  ;;  %v285_v54 = vadd.f32 %v534_v26, %v284_v52 }
  0xf3   :  { %v254_v55 = vpop.f32.mrf.mxu0  ;;  %v286_v56 = vpop.f32.mrf.mxu1 }
  0xf4   :  { %v307_v57 = vmax.f32 %v253_v53, 0.0  ;;  %v315_v58 = vmax.f32 %v285_v54, 0.0 }
  0xf5   :  { %v257_v59 = vpop.f32.mrf.mxu0  ;;  %v289_v60 = vpop.f32.mrf.mxu1 }
  0xf6   :  { %324 = vst.msk [vmem:[%s619_s3 + $0x18] sm:$0xff] %vm320_vm1, %v307_v57  ;;  %332 = vst.msk [vmem:[%s619_s3 + $0x58] sm:$0xff] %vm320_vm1, %v315_v58  ;;  %v258_v61 = vadd.f32 %v534_v26, %v257_v59  ;;  %v290_v62 = vadd.f32 %v534_v26, %v289_v60 }
  0xf7   :  { %v259_v63 = vpop.f32.mrf.mxu0  ;;  %v291_v0 = vpop.f32.mrf.mxu1 }
  0xf8   :  { %v308_v1 = vmax.f32 %v258_v61, 0.0  ;;  %v316_v2 = vmax.f32 %v290_v62, 0.0 }
  0xf9   :  { %v260_v3 = vpop.f32.mrf.mxu0  ;;  %v292_v4 = vpop.f32.mrf.mxu1 }
  0xfa   :  { %325 = vst.msk [vmem:[%s619_s3 + $0x20] sm:$0xff] %vm320_vm1, %v308_v1  ;;  %333 = vst.msk [vmem:[%s619_s3 + $0x60] sm:$0xff] %vm320_vm1, %v316_v2  ;;  %v261_v5 = vadd.f32 %v534_v26, %v260_v3  ;;  %v293_v6 = vadd.f32 %v534_v26, %v292_v4 }
  0xfb   :  { %v262_v7 = vpop.f32.mrf.mxu0  ;;  %v294_v8 = vpop.f32.mrf.mxu1 }
  0xfc   :  { %v309_v9 = vmax.f32 %v261_v5, 0.0  ;;  %v317_v10 = vmax.f32 %v293_v6, 0.0 }
  0xfd   :  { %v265_v11 = vpop.f32.mrf.mxu0  ;;  %v297_v12 = vpop.f32.mrf.mxu1 }
  0xfe   :  { %326 = vst.msk [vmem:[%s619_s3 + $0x28] sm:$0xff] %vm320_vm1, %v309_v9  ;;  %334 = vst.msk [vmem:[%s619_s3 + $0x68] sm:$0xff] %vm320_vm1, %v317_v10  ;;  %v266_v13 = vadd.f32 %v534_v26, %v265_v11  ;;  %v298_v14 = vadd.f32 %v534_v26, %v297_v12 }
  0xff   :  { %v267_v15 = vpop.f32.mrf.mxu0  ;;  %v299_v16 = vpop.f32.mrf.mxu1 }
 0x100   :  { %v310_v17 = vmax.f32 %v266_v13, 0.0  ;;  %v318_v18 = vmax.f32 %v298_v14, 0.0 }
 0x101   :  { %v268_v19 = vpop.f32.mrf.mxu0  ;;  %v300_v20 = vpop.f32.mrf.mxu1 }
 0x102   :  { %327 = vst.msk [vmem:[%s619_s3 + $0x30] sm:$0xff] %vm320_vm1, %v310_v17  ;;  %335 = vst.msk [vmem:[%s619_s3 + $0x70] sm:$0xff] %vm320_vm1, %v318_v18  ;;  %v269_v21 = vadd.f32 %v534_v26, %v268_v19  ;;  %v301_v22 = vadd.f32 %v534_v26, %v300_v20 }
 0x103   :  { %v270_v23 = vpop.f32.mrf.mxu0  ;;  %v302_v24 = vpop.f32.mrf.mxu1 }
 0x104   :  { %v311_v25 = vmax.f32 %v269_v21, 0.0  ;;  %v319_v27 = vmax.f32 %v301_v22, 0.0 }
 0x106   :  { %328 = vst.msk [vmem:[%s619_s3 + $0x38] sm:$0xff] %vm320_vm1, %v311_v25  ;;  %336 = vst.msk [vmem:[%s619_s3 + $0x78] sm:$0xff] %vm320_vm1, %v319_v27 }

// kernel: vsc_forward.8
= control target key start
LH: loop header
LB: loop body
LE: loop exit
PB: predicated region body
PF: predicated region fallthrough
CT: control target
= control target key end

     0   :  { %vm1518_vm0 = vmmov 0   ;;  %vm858_vm1 = vcmask 261120   ;;  %vm1142_vm2 = vcmask 523264   ;;  %s1860_s1 = inlined_call_operand.vmem [shape: bf16[1568,64], index: 1, kind: input, shape index: {}]   ;;  %s1861_s0 = inlined_call_operand.vmem [shape: bf16[8,1568], index: 0, kind: input, shape index: {}]   ;;  %s1862_s2 = inlined_call_operand.vmem [shape: f32[1,64], index: 2, kind: input, shape index: {}]   ;;  %s1863_s3 = inlined_call_operand.vmem [shape: f32[8,64], index: 3, kind: output, shape index: {}]  }
   0x1   :  { %v1406_v0 = vld [vmem:[%s1860_s1 + $0x78] sm:$0xff]   ;;  %v1410_v4 = vld [vmem:[%s1860_s1 + $0x70] sm:$0xff]   ;;  %v1414_v8 = vld [vmem:[%s1860_s1 + $0x68] sm:$0xff]  }
   0x2   :  { %v1407_v1 = vld [vmem:[%s1860_s1 + $0xf8] sm:$0xff]   ;;  %1261 = vmatprep.subr.bf16.mxu0 %v1406_v0  ;;  %v1411_v5 = vld [vmem:[%s1860_s1 + $0xf0] sm:$0xff]   ;;  %v1415_v9 = vld [vmem:[%s1860_s1 + $0xe8] sm:$0xff]  }
   0x3   :  { %v1408_v2 = vld [vmem:[%s1860_s1 + $0x38] sm:$0xff]   ;;  %1283 = vmatprep.subr.bf16.mxu1 %v1407_v1  ;;  %v1412_v6 = vld [vmem:[%s1860_s1 + $0x30] sm:$0xff]   ;;  %v1416_v10 = vld [vmem:[%s1860_s1 + $0x28] sm:$0xff]  }
   0x4   :  { %v1409_v3 = vld [vmem:[%s1860_s1 + $0xb8] sm:$0xff]   ;;  %1262 = vmatpush3.bf16.msra.mxu0 %v1408_v2  ;;  %v1413_v7 = vld [vmem:[%s1860_s1 + $0xb0] sm:$0xff]   ;;  %v1417_v11 = vld [vmem:[%s1860_s1 + $0xa8] sm:$0xff]  }
   0x5   :  { %1284 = vmatpush3.bf16.msra.mxu1 %v1409_v3  ;;  %1263 = vmatprep.subr.bf16.mxu0 %v1410_v4  ;;  %v1418_v12 = vld [vmem:[%s1860_s1 + $0x60] sm:$0xff]   ;;  %v1422_v16 = vld [vmem:[%s1860_s1 + $0x58] sm:$0xff]   ;;  %v1426_v20 = vld [vmem:[%s1860_s1 + $0x50] sm:$0xff]  }
   0x6   :  { %1285 = vmatprep.subr.bf16.mxu1 %v1411_v5  ;;  %v1419_v13 = vld [vmem:[%s1860_s1 + $0xe0] sm:$0xff]   ;;  %v1423_v17 = vld [vmem:[%s1860_s1 + $0xd8] sm:$0xff]   ;;  %v1427_v21 = vld [vmem:[%s1860_s1 + $0xd0] sm:$0xff]  }
   0x7   :  { %v1420_v14 = vld [vmem:[%s1860_s1 + $0x20] sm:$0xff]   ;;  %v1424_v18 = vld [vmem:[%s1860_s1 + $0x18] sm:$0xff]   ;;  %v1428_v22 = vld [vmem:[%s1860_s1 + $0x10] sm:$0xff]  }
   0x8   :  { %1264 = vmatpush3.bf16.msra.mxu0 %v1412_v6  ;;  %v1421_v15 = vld [vmem:[%s1860_s1 + $0xa0] sm:$0xff]   ;;  %v1425_v19 = vld [vmem:[%s1860_s1 + $0x98] sm:$0xff]   ;;  %v1429_v23 = vld [vmem:[%s1860_s1 + $0x90] sm:$0xff]  }
   0x9   :  { %1286 = vmatpush3.bf16.msra.mxu1 %v1413_v7  ;;  %1265 = vmatprep.subr.bf16.mxu0 %v1414_v8  ;;  %v1430_v24 = vld [vmem:[%s1860_s1 + $0x48] sm:$0xff]   ;;  %v1434_v28 = vld [vmem:[%s1860_s1 + $0x40] sm:$0xff]   ;;  %v1442_v38 = vld [vmem:[%s1860_s1 + $0x178] sm:$0xff]  }
   0xa   :  { %1287 = vmatprep.subr.bf16.mxu1 %v1415_v9  ;;  %v1431_v25 = vld [vmem:[%s1860_s1 + $0xc8] sm:$0xff]   ;;  %v1435_v29 = vld [vmem:[%s1860_s1 + $0xc0] sm:$0xff]   ;;  %v1443_v39 = vld [vmem:[%s1860_s1 + $0x1f8] sm:$0xff]  }
   0xb   :  { %v1432_v26 = vld [vmem:[%s1860_s1 + $0x8] sm:$0xff]   ;;  %v1436_v30 = vld [vmem:[%s1860_s1] sm:$0xff]   ;;  %v1444_v40 = vld [vmem:[%s1860_s1 + $0x138] sm:$0xff]  }
   0xc   :  { %1266 = vmatpush3.bf16.msra.mxu0 %v1416_v10  ;;  %v1433_v27 = vld [vmem:[%s1860_s1 + $0x88] sm:$0xff]   ;;  %v1437_v31 = vld [vmem:[%s1860_s1 + $0x80] sm:$0xff]   ;;  %v1445_v41 = vld [vmem:[%s1860_s1 + $0x1b8] sm:$0xff]  }
   0xd   :  { %1288 = vmatpush3.bf16.msra.mxu1 %v1417_v11  ;;  %1267 = vmatprep.subr.bf16.mxu0 %v1418_v12  ;;  %v15_v32 = vld [vmem:[%s1861_s0] sm:$0xff]  ;;  %v16_v33 = vld [vmem:[%s1861_s0 + $0x8] sm:$0xff]  ;;  %v1446_v42 = vld [vmem:[%s1860_s1 + $0x170] sm:$0xff]  }
   0xe   :  { %1289 = vmatprep.subr.bf16.mxu1 %v1419_v13  ;;  %v1149_v34 = vcombine.low %v15_v32, %v15_v32  ;;  %v1150_v35 = vcombine.high %v15_v32, %v15_v32  ;;  %v1151_v36 = vcombine.low %v16_v33, %v16_v33  ;;  %v1152_v37 = vcombine.high %v16_v33, %v16_v33  ;;  %v1447_v43 = vld [vmem:[%s1860_s1 + $0x1f0] sm:$0xff]   ;;  %v1450_v46 = vld [vmem:[%s1860_s1 + $0x168] sm:$0xff]   ;;  %v1454_v50 = vld [vmem:[%s1860_s1 + $0x160] sm:$0xff]  }
   0xf   :  { %v1448_v44 = vld [vmem:[%s1860_s1 + $0x130] sm:$0xff]   ;;  %v1451_v47 = vld [vmem:[%s1860_s1 + $0x1e8] sm:$0xff]   ;;  %v1455_v51 = vld [vmem:[%s1860_s1 + $0x1e0] sm:$0xff]  }
  0x10   :  { %1268 = vmatpush3.bf16.msra.mxu0 %v1420_v14  ;;  %894 = vmatprep.mubr.bf16.mxu0 %v1150_v35  ;;  %v1449_v45 = vld [vmem:[%s1860_s1 + $0x1b0] sm:$0xff]   ;;  %v1452_v48 = vld [vmem:[%s1860_s1 + $0x128] sm:$0xff]   ;;  %v1456_v52 = vld [vmem:[%s1860_s1 + $0x120] sm:$0xff]  }
  0x11   :  { %1290 = vmatpush3.bf16.msra.mxu1 %v1421_v15  ;;  %1269 = vmatprep.subr.bf16.mxu0 %v1422_v16  ;;  %v1453_v49 = vld [vmem:[%s1860_s1 + $0x1a8] sm:$0xff]   ;;  %v1457_v53 = vld [vmem:[%s1860_s1 + $0x1a0] sm:$0xff]   ;;  %v1458_v54 = vld [vmem:[%s1860_s1 + $0x158] sm:$0xff]  }
  0x12   :  { %1291 = vmatprep.subr.bf16.mxu1 %v1423_v17  ;;  %934 = vmatprep.mubr.bf16.mxu1 %v1152_v37  ;;  %v1459_v55 = vld [vmem:[%s1860_s1 + $0x1d8] sm:$0xff]   ;;  %v1462_v58 = vld [vmem:[%s1860_s1 + $0x150] sm:$0xff]   ;;  %v1466_v62 = vld [vmem:[%s1860_s1 + $0x148] sm:$0xff]  }
  0x13   :  { %v1460_v56 = vld [vmem:[%s1860_s1 + $0x118] sm:$0xff]   ;;  %v1463_v59 = vld [vmem:[%s1860_s1 + $0x1d0] sm:$0xff]   ;;  %v1467_v63 = vld [vmem:[%s1860_s1 + $0x1c8] sm:$0xff]  }
  0x14   :  { %1270 = vmatpush3.bf16.msra.mxu0 %v1424_v18  ;;  %v1461_v57 = vld [vmem:[%s1860_s1 + $0x198] sm:$0xff]   ;;  %v1464_v60 = vld [vmem:[%s1860_s1 + $0x110] sm:$0xff]   ;;  %v1468_v0 = vld [vmem:[%s1860_s1 + $0x108] sm:$0xff]  }
  0x15   :  { %1292 = vmatpush3.bf16.msra.mxu1 %v1425_v19  ;;  %1271 = vmatprep.subr.bf16.mxu0 %v1426_v20  ;;  %v1465_v61 = vld [vmem:[%s1860_s1 + $0x190] sm:$0xff]   ;;  %v1469_v1 = vld [vmem:[%s1860_s1 + $0x188] sm:$0xff]   ;;  %v1470_v2 = vld [vmem:[%s1860_s1 + $0x140] sm:$0xff]  }
  0x16   :  { %1293 = vmatprep.subr.bf16.mxu1 %v1427_v21  ;;  %v1471_v3 = vld [vmem:[%s1860_s1 + $0x1c0] sm:$0xff]   ;;  %v17_v6 = vld [vmem:[%s1861_s0 + $0x10] sm:$0xff]  ;;  %v18_v9 = vld [vmem:[%s1861_s0 + $0x18] sm:$0xff] }
  0x17   :  { %v1472_v4 = vld [vmem:[%s1860_s1 + $0x100] sm:$0xff]   ;;  %v1153_v7 = vcombine.low %v17_v6, %v17_v6  ;;  %v1154_v8 = vcombine.high %v17_v6, %v17_v6  ;;  %v1155_v10 = vcombine.low %v18_v9, %v18_v9  ;;  %v1156_v11 = vcombine.high %v18_v9, %v18_v9  ;;  %v1478_v12 = vld [vmem:[%s1860_s1 + $0x278] sm:$0xff]   ;;  %v1482_v16 = vld [vmem:[%s1860_s1 + $0x270] sm:$0xff]  }
  0x18   :  { %1272 = vmatpush3.bf16.msra.mxu0 %v1428_v22  ;;  %v1473_v5 = vld [vmem:[%s1860_s1 + $0x180] sm:$0xff]   ;;  %v1479_v13 = vld [vmem:[%s1860_s1 + $0x2f8] sm:$0xff]   ;;  %v1483_v17 = vld [vmem:[%s1860_s1 + $0x2f0] sm:$0xff]  }
  0x19   :  { %1294 = vmatpush3.bf16.msra.mxu1 %v1429_v23  ;;  %1273 = vmatprep.subr.bf16.mxu0 %v1430_v24  ;;  %v1480_v14 = vld [vmem:[%s1860_s1 + $0x238] sm:$0xff]   ;;  %v1484_v18 = vld [vmem:[%s1860_s1 + $0x230] sm:$0xff]   ;;  %v1486_v20 = vld [vmem:[%s1860_s1 + $0x268] sm:$0xff]  }
  0x1a   :  { %1295 = vmatprep.subr.bf16.mxu1 %v1431_v25  ;;  %v1481_v15 = vld [vmem:[%s1860_s1 + $0x2b8] sm:$0xff]   ;;  %v1485_v19 = vld [vmem:[%s1860_s1 + $0x2b0] sm:$0xff]   ;;  %v1487_v21 = vld [vmem:[%s1860_s1 + $0x2e8] sm:$0xff]  }
  0x1b   :  { %v1488_v22 = vld [vmem:[%s1860_s1 + $0x228] sm:$0xff]   ;;  %v1490_v24 = vld [vmem:[%s1860_s1 + $0x260] sm:$0xff]   ;;  %v1498_v32 = vld [vmem:[%s1860_s1 + $0x250] sm:$0xff]  }
  0x1c   :  { %1274 = vmatpush3.bf16.msra.mxu0 %v1432_v26  ;;  %v1489_v23 = vld [vmem:[%s1860_s1 + $0x2a8] sm:$0xff]   ;;  %v1491_v25 = vld [vmem:[%s1860_s1 + $0x2e0] sm:$0xff]   ;;  %v1499_v33 = vld [vmem:[%s1860_s1 + $0x2d0] sm:$0xff]  }
  0x1d   :  { %1296 = vmatpush3.bf16.msra.mxu1 %v1433_v27  ;;  %1275 = vmatprep.subr.bf16.mxu0 %v1434_v28  ;;  %v1492_v26 = vld [vmem:[%s1860_s1 + $0x220] sm:$0xff]   ;;  %v1494_v28 = vld [vmem:[%s1860_s1 + $0x258] sm:$0xff]   ;;  %v1501_v35 = vld [vmem:[%s1860_s1 + $0x290] sm:$0xff]  }
  0x1e   :  { %1297 = vmatprep.subr.bf16.mxu1 %v1435_v29  ;;  %v1493_v27 = vld [vmem:[%s1860_s1 + $0x2a0] sm:$0xff]   ;;  %v1495_v29 = vld [vmem:[%s1860_s1 + $0x2d8] sm:$0xff]   ;;  %v1503_v37 = vld [vmem:[%s1860_s1 + $0x2c8] sm:$0xff]  }
  0x20   :  { %1276 = vmatpush3.bf16.msra.mxu0 %v1436_v30  ;;  %v1496_v30 = vld [vmem:[%s1860_s1 + $0x218] sm:$0xff]  }
  0x21   :  { %1298 = vmatpush3.bf16.msra.mxu1 %v1437_v31  ;;  %1305 = vmatprep.subr.bf16.mxu0 %v1442_v38  ;;  %v1497_v31 = vld [vmem:[%s1860_s1 + $0x298] sm:$0xff]   ;;  %v1504_v38 = vld [vmem:[%s1860_s1 + $0x208] sm:$0xff]  }
  0x22   :  { %1327 = vmatprep.subr.bf16.mxu1 %v1443_v39  ;;  %v1505_v39 = vld [vmem:[%s1860_s1 + $0x288] sm:$0xff]  }
  0x23   :  { %895 = vmatmul.mubr.bf16.vlgmr.msra.gmra.mxu0 %v1149_v34  ;;  %v1500_v34 = vld [vmem:[%s1860_s1 + $0x210] sm:$0xff]  }
  0x24   :  { %935 = vmatmul.mubr.bf16.vlgmr.msra.gmra.mxu1 %v1151_v36  ;;  %1306 = vmatpush3.bf16.msra.mxu0 %v1444_v40  ;;  %v1502_v36 = vld [vmem:[%s1860_s1 + $0x248] sm:$0xff]   ;;  %v1506_v40 = vld [vmem:[%s1860_s1 + $0x240] sm:$0xff]  }
  0x25   :  { %1328 = vmatpush3.bf16.msra.mxu1 %v1445_v41  ;;  %1307 = vmatprep.subr.bf16.mxu0 %v1446_v42  ;;  %v1507_v41 = vld [vmem:[%s1860_s1 + $0x2c0] sm:$0xff]  }
  0x26   :  { %1329 = vmatprep.subr.bf16.mxu1 %v1447_v43  ;;  %974 = vmatprep.mubr.bf16.mxu0 %v1154_v8  ;;  %v1508_v42 = vld [vmem:[%s1860_s1 + $0x200] sm:$0xff]  }
  0x27   :  { %1014 = vmatprep.mubr.bf16.mxu1 %v1156_v11  ;;  %v1509_v43 = vld [vmem:[%s1860_s1 + $0x280] sm:$0xff]  }
  0x28   :  { %1308 = vmatpush3.bf16.msra.mxu0 %v1448_v44  ;;  %v19_v44 = vld [vmem:[%s1861_s0 + $0x20] sm:$0xff] }
  0x29   :  { %1330 = vmatpush3.bf16.msra.mxu1 %v1449_v45  ;;  %1309 = vmatprep.subr.bf16.mxu0 %v1450_v46  ;;  %v20_v45 = vld [vmem:[%s1861_s0 + $0x28] sm:$0xff]  ;;  %v1157_v46 = vcombine.low %v19_v44, %v19_v44 }
  0x2a   :  { %1331 = vmatprep.subr.bf16.mxu1 %v1451_v47  ;;  %v1158_v47 = vcombine.high %v19_v44, %v19_v44 }
  0x2c   :  { %1310 = vmatpush3.bf16.msra.mxu0 %v1452_v48  ;;  %v1159_v48 = vcombine.low %v20_v45, %v20_v45 }
  0x2d   :  { %1332 = vmatpush3.bf16.msra.mxu1 %v1453_v49  ;;  %1311 = vmatprep.subr.bf16.mxu0 %v1454_v50  ;;  %v1160_v49 = vcombine.high %v20_v45, %v20_v45  ;;  %v1514_v50 = vld [vmem:[%s1860_s1 + $0x308] sm:$0xff]  }
  0x2e   :  { %1333 = vmatprep.subr.bf16.mxu1 %v1455_v51  ;;  %v1517_v51 = vmov 0.0  }
  0x30   :  { %1312 = vmatpush3.bf16.msra.mxu0 %v1456_v52  ;;  %v1515_v52 = vld [vmem:[%s1860_s1 + $0x300] sm:$0xff]  }
  0x31   :  { %1334 = vmatpush3.bf16.msra.mxu1 %v1457_v53  ;;  %1313 = vmatprep.subr.bf16.mxu0 %v1458_v54  ;;  %v1516_v53 = vld [vmem:[%s1861_s0 + $0x30] ss:$0 sps:$4 sm:$0xff]  }
  0x32   :  { %1335 = vmatprep.subr.bf16.mxu1 %v1459_v55 }
  0x34   :  { %1314 = vmatpush3.bf16.msra.mxu0 %v1460_v56 }
  0x35   :  { %1336 = vmatpush3.bf16.msra.mxu1 %v1461_v57  ;;  %1315 = vmatprep.subr.bf16.mxu0 %v1462_v58 }
  0x36   :  { %1337 = vmatprep.subr.bf16.mxu1 %v1463_v59 }
  0x38   :  { %1316 = vmatpush3.bf16.msra.mxu0 %v1464_v60 }
  0x39   :  { %1338 = vmatpush3.bf16.msra.mxu1 %v1465_v61  ;;  %1317 = vmatprep.subr.bf16.mxu0 %v1466_v62 }
  0x3a   :  { %1339 = vmatprep.subr.bf16.mxu1 %v1467_v63 }
  0x3c   :  { %1318 = vmatpush3.bf16.msra.mxu0 %v1468_v0 }
  0x3d   :  { %1340 = vmatpush3.bf16.msra.mxu1 %v1469_v1  ;;  %1319 = vmatprep.subr.bf16.mxu0 %v1470_v2 }
  0x3e   :  { %1341 = vmatprep.subr.bf16.mxu1 %v1471_v3 }
  0x40   :  { %1320 = vmatpush3.bf16.msra.mxu0 %v1472_v4 }
  0x41   :  { %1342 = vmatpush3.bf16.msra.mxu1 %v1473_v5  ;;  %1349 = vmatprep.subr.bf16.mxu0 %v1478_v12 }
  0x42   :  { %1371 = vmatprep.subr.bf16.mxu1 %v1479_v13 }
  0x43   :  { %975 = vmatmul.mubr.bf16.vlgmr.msra.gmra.mxu0 %v1153_v7  ;;  %v1148_v7 = vld [vmem:[%s1862_s2] ss:$0 sm:$0xff] }
  0x44   :  { %1015 = vmatmul.mubr.bf16.vlgmr.msra.gmra.mxu1 %v1155_v10  ;;  %1350 = vmatpush3.bf16.msra.mxu0 %v1480_v14 }
  0x45   :  { %1372 = vmatpush3.bf16.msra.mxu1 %v1481_v15  ;;  %1351 = vmatprep.subr.bf16.mxu0 %v1482_v16 }
  0x46   :  { %1373 = vmatprep.subr.bf16.mxu1 %v1483_v17  ;;  %1054 = vmatprep.mubr.bf16.mxu0 %v1158_v47 }
  0x47   :  { %1094 = vmatprep.mubr.bf16.mxu1 %v1160_v49 }
  0x48   :  { %1352 = vmatpush3.bf16.msra.mxu0 %v1484_v18 }
  0x49   :  { %1374 = vmatpush3.bf16.msra.mxu1 %v1485_v19  ;;  %1353 = vmatprep.subr.bf16.mxu0 %v1486_v20 }
  0x4a   :  { %1375 = vmatprep.subr.bf16.mxu1 %v1487_v21 }
  0x4c   :  { %1354 = vmatpush3.bf16.msra.mxu0 %v1488_v22 }
  0x4d   :  { %1376 = vmatpush3.bf16.msra.mxu1 %v1489_v23  ;;  %1355 = vmatprep.subr.bf16.mxu0 %v1490_v24 }
  0x4e   :  { %1377 = vmatprep.subr.bf16.mxu1 %v1491_v25 }
  0x50   :  { %1356 = vmatpush3.bf16.msra.mxu0 %v1492_v26 }
  0x51   :  { %1378 = vmatpush3.bf16.msra.mxu1 %v1493_v27  ;;  %1357 = vmatprep.subr.bf16.mxu0 %v1494_v28 }
  0x52   :  { %1379 = vmatprep.subr.bf16.mxu1 %v1495_v29 }
  0x54   :  { %1358 = vmatpush3.bf16.msra.mxu0 %v1496_v30 }
  0x55   :  { %1380 = vmatpush3.bf16.msra.mxu1 %v1497_v31  ;;  %1359 = vmatprep.subr.bf16.mxu0 %v1498_v32 }
  0x56   :  { %1381 = vmatprep.subr.bf16.mxu1 %v1499_v33 }
  0x58   :  { %1360 = vmatpush3.bf16.msra.mxu0 %v1500_v34 }
  0x59   :  { %1382 = vmatpush3.bf16.msra.mxu1 %v1501_v35  ;;  %1361 = vmatprep.subr.bf16.mxu0 %v1502_v36 }
  0x5a   :  { %1383 = vmatprep.subr.bf16.mxu1 %v1503_v37 }
  0x5c   :  { %1362 = vmatpush3.bf16.msra.mxu0 %v1504_v38 }
  0x5d   :  { %1384 = vmatpush3.bf16.msra.mxu1 %v1505_v39  ;;  %1363 = vmatprep.subr.bf16.mxu0 %v1506_v40 }
  0x5e   :  { %1385 = vmatprep.subr.bf16.mxu1 %v1507_v41 }
  0x60   :  { %1364 = vmatpush3.bf16.msra.mxu0 %v1508_v42 }
  0x61   :  { %1386 = vmatpush3.bf16.msra.mxu1 %v1509_v43  ;;  %1396 = vmatprep.subr.bf16.mxu0 %v1517_v51 }
  0x63   :  { %1055 = vmatmul.mubr.bf16.vlgmr.msra.gmra.mxu0 %v1157_v46 }
  0x64   :  { %1095 = vmatmul.mubr.bf16.vlgmr.msra.gmra.mxu1 %v1159_v48  ;;  %1397 = vmatpush3.bf16.msra.mxu0 %v1514_v50 }
  0x65   :  { %1398 = vmatprep.subr.bf16.mxu0 %v1517_v51  ;;  %1400 = vmatprep.mubr.msk.bf16.mxu0 %vm1518_vm0, %v1517_v51 }
  0x68   :  { %1399 = vmatpush3.bf16.msra.mxu0 %v1515_v52 }
  0x6b   :  { %1401 = vmatmul.mubr.msk.bf16.vlgmr.msra.gmra.mxu0 %vm858_vm1, %v1516_v53 }
  0xe3   :  { %v1277_v54 = vpop.f32.mrf.mxu0 }
  0xe4   :  { %v1299_v55 = vpop.f32.mrf.mxu1 }
  0xe5   :  { %v1278_v56 = vpop.f32.mrf.mxu0 }
  0xe6   :  { %v1300_v57 = vpop.f32.mrf.mxu1  ;;  %v1279_v6 = vadd.f32 %v1278_v56, %v1277_v54 }
  0xe7   :  { %v1280_v58 = vpop.f32.mrf.mxu0  ;;  %v1301_v9 = vadd.f32 %v1300_v57, %v1299_v55 }
  0xe8   :  { %v1302_v59 = vpop.f32.mrf.mxu1  ;;  %v897_v8 = vadd.f32 %v1279_v6, %v1148_v7 }
  0xe9   :  { %v1281_v60 = vpop.f32.mrf.mxu0 }
  0xea   :  { %v1303_v61 = vpop.f32.mrf.mxu1  ;;  %v937_v11 = vadd.f32 %v1301_v9, %v897_v8 }
 0x103   :  { %v1321_v62 = vpop.f32.mrf.mxu0 }
 0x104   :  { %v1343_v63 = vpop.f32.mrf.mxu1 }
 0x105   :  { %v1322_v0 = vpop.f32.mrf.mxu0 }
 0x106   :  { %v1344_v1 = vpop.f32.mrf.mxu1  ;;  %v1323_v10 = vadd.f32 %v1322_v0, %v1321_v62 }
 0x107   :  { %v1324_v2 = vpop.f32.mrf.mxu0  ;;  %v1345_v13 = vadd.f32 %v1344_v1, %v1343_v63 }
 0x108   :  { %v1346_v3 = vpop.f32.mrf.mxu1  ;;  %v977_v12 = vadd.f32 %v1323_v10, %v937_v11 }
 0x109   :  { %v1325_v4 = vpop.f32.mrf.mxu0 }
 0x10a   :  { %v1347_v5 = vpop.f32.mrf.mxu1  ;;  %v1017_v17 = vadd.f32 %v1345_v13, %v977_v12 }
 0x123   :  { %v1365_v14 = vpop.f32.mrf.mxu0 }
 0x124   :  { %v1387_v15 = vpop.f32.mrf.mxu1 }
 0x125   :  { %v1366_v16 = vpop.f32.mrf.mxu0 }
 0x126   :  { %v1367_v18 = vadd.f32 %v1366_v16, %v1365_v14  ;;  %v1388_v19 = vpop.f32.mrf.mxu1 }
 0x127   :  { %v1389_v20 = vadd.f32 %v1388_v19, %v1387_v15  ;;  %v1368_v21 = vpop.f32.mrf.mxu0 }
 0x128   :  { %v1057_v22 = vadd.f32 %v1367_v18, %v1017_v17  ;;  %v1390_v23 = vpop.f32.mrf.mxu1 }
 0x129   :  { %v1369_v24 = vpop.f32.mrf.mxu0 }
 0x12a   :  { %v1391_v25 = vpop.f32.mrf.mxu1  ;;  %v1097_v26 = vadd.f32 %v1389_v20, %v1057_v22 }
 0x12b   :  { %v1136_v27 = vpop.f32.mrf.mxu0 }
 0x12c   :  { %v1137_v28 = vadd.f32 %v1136_v27, %v1097_v26 }
 0x12d   :  { %v1402_v29 = vpop.f32.mrf.mxu0 }
 0x12e   :  { %1143 = vst.msk [vmem:[%s1863_s3] sm:$0xff] %vm1142_vm2, %v1137_v28 }
 0x12f   :  { %v1139_v30 = vpop.f32.mrf.mxu0 }
 0x131   :  { %v1403_v31 = vpop.f32.mrf.mxu0 }

// kernel: vsc_forward.9
= control target key start
LH: loop header
LB: loop body
LE: loop exit
PB: predicated region body
PF: predicated region fallthrough
CT: control target
= control target key end

     0   :  { %18 = vsyncpa [#allocation3], 0  ;;  %v1190_v1 = vmov 0.0   ;;  %vm1191_vm0 = vmmov 0   ;;  %s1758_s0 = inlined_call_operand.vmem [shape: f32[8,64], index: 0, kind: input, shape index: {}]   ;;  %s1759_s1 = inlined_call_operand.vmem [shape: f32[64,8], index: 1, kind: input, shape index: {}]   ;;  %s1760_s2 = inlined_call_operand.vmem [shape: f32[1,8], index: 2, kind: input, shape index: {}]   ;;  %s1761_s3 = inlined_call_operand.vmem [shape: f32[64,8], index: 3, kind: input, shape index: {}]   ;;  %s1762_s4 = inlined_call_operand.vmem [shape: f32[1,8], index: 4, kind: input, shape index: {}]   ;;  %s1763_s5 = inlined_call_operand.vmem [shape: f32[8,8], index: 5, kind: input, shape index: {}]   ;;  %s1764_s6 = inlined_call_operand.vmem [shape: f32[8,64], index: 6, kind: input, shape index: {}]   ;;  %s1765_s7 = inlined_call_operand.vmem [shape: f32[1,64], index: 7, kind: input, shape index: {}]   ;;  %s1766_s8 = inlined_call_operand.vmem [shape: f32[64,1568], index: 8, kind: input, shape index: {}]   ;;  %s1767_s9 = inlined_call_operand.vmem [shape: f32[1,1568], index: 9, kind: input, shape index: {}]   ;;  %s1768_s10 = inlined_call_operand.hbm [shape: f32[8,8], index: 10, kind: output, shape index: {0}]   ;;  %s1769_s11 = inlined_call_operand.hbm [shape: f32[8,8], index: 11, kind: output, shape index: {1}]   ;;  %s1770_s12 = inlined_call_operand.vmem [shape: f32[8,1568], index: 12, kind: output, shape index: {2}]  }
   0x1   :  { %v137_v0 = vld [vmem:[%s1761_s3 + $0x38] sm:$0xff]  ;;  %1097 = vmatprep.subr.mxu1 %v1190_v1  ;;  %v136_v2 = vld [vmem:[%s1761_s3 + $0x30] sm:$0xff]  ;;  %1113 = vmatprep.mubr.msk.f32.mxu1 %vm1191_vm0, %v1190_v1  ;;  %v135_v3 = vld [vmem:[%s1761_s3 + $0x28] sm:$0xff] }
   0x2   :  { %1098 = vmatpush3.msra.mxu1 %v137_v0  ;;  %1078 = vmatprep.subr.mxu0 %v1190_v1  ;;  %v48_v4 = vld [vmem:[%s1759_s1 + $0x38] sm:$0xff]  ;;  %v47_v5 = vld [vmem:[%s1759_s1 + $0x30] sm:$0xff]  ;;  %v134_v6 = vld [vmem:[%s1761_s3 + $0x20] sm:$0xff] }
   0x3   :  { %1099 = vmatprep.subr.mxu1 %v1190_v1  ;;  %1094 = vmatprep.mubr.msk.f32.mxu0 %vm1191_vm0, %v1190_v1  ;;  %v46_v7 = vld [vmem:[%s1759_s1 + $0x28] sm:$0xff] }
   0x4   :  { %1100 = vmatpush3.msra.mxu1 %v136_v2  ;;  %1079 = vmatpush3.msra.mxu0 %v48_v4 }
   0x5   :  { %1101 = vmatprep.subr.mxu1 %v1190_v1  ;;  %1080 = vmatprep.subr.mxu0 %v1190_v1 }
   0x6   :  { %1102 = vmatpush3.msra.mxu1 %v135_v3  ;;  %1081 = vmatpush3.msra.mxu0 %v47_v5 }
   0x7   :  { %19 = vsyncpa [#allocation5], 0  ;;  %1103 = vmatprep.subr.mxu1 %v1190_v1  ;;  %v133_v8 = vld [vmem:[%s1761_s3 + $0x18] sm:$0xff]  ;;  %1082 = vmatprep.subr.mxu0 %v1190_v1  ;;  %v45_v9 = vld [vmem:[%s1759_s1 + $0x20] sm:$0xff]  ;;  %vm56_vm1 = vcmask 523264   ;;  %vm215_vm2 = vcmask 64512  }
   0x8   :  { %1104 = vmatpush3.msra.mxu1 %v134_v6  ;;  %1083 = vmatpush3.msra.mxu0 %v46_v7  ;;  %v132_v10 = vld [vmem:[%s1761_s3 + $0x10] sm:$0xff]  ;;  %v44_v11 = vld [vmem:[%s1759_s1 + $0x18] sm:$0xff]  ;;  %v131_v12 = vld [vmem:[%s1761_s3 + $0x8] sm:$0xff]  ;;  %s1193_s30 = smov [#allocation4]  }
   0x9   :  { %1105 = vmatprep.subr.mxu1 %v1190_v1  ;;  %1084 = vmatprep.subr.mxu0 %v1190_v1  ;;  %v43_v13 = vld [vmem:[%s1759_s1 + $0x10] sm:$0xff]  ;;  %v130_v14 = vld [vmem:[%s1761_s3] sm:$0xff]  ;;  %v42_v15 = vld [vmem:[%s1759_s1 + $0x8] sm:$0xff]  ;;  %s1020_s13 = sshll.u32 %s1193_s30, 4  ;;  %s1021_s13 = int_to_ptr.vmem [resolvable:$true] %s1020_s13 }
   0xa   :  { %1106 = vmatpush3.msra.mxu1 %v133_v8  ;;  %1085 = vmatpush3.msra.mxu0 %v45_v9  ;;  %v40_v16 = vld [vmem:[%s1758_s0] sm:$0xff]  ;;  %v399_v20 = vld [vmem:[%s1766_s8 + $0x2f0] sm:$0xff]  ;;  %v396_v21 = vld [vmem:[%s1766_s8 + $0x2d8] sm:$0xff] }
   0xb   :  { %1107 = vmatprep.subr.mxu1 %v1190_v1  ;;  %1086 = vmatprep.subr.mxu0 %v1190_v1  ;;  %v41_v17 = vld [vmem:[%s1759_s1] sm:$0xff]  ;;  %v384_v22 = vld [vmem:[%s1766_s8 + $0x278] sm:$0xff]  ;;  %v383_v23 = vld [vmem:[%s1766_s8 + $0x270] sm:$0xff] }
   0xc   :  { %1108 = vmatpush3.msra.mxu1 %v132_v10  ;;  %1087 = vmatpush3.msra.mxu0 %v44_v11  ;;  %v224_v18 = vld [vmem:[%s1764_s6] sm:$0xff]  ;;  %v371_v24 = vld [vmem:[%s1766_s8 + $0x210] sm:$0xff]  ;;  %v370_v25 = vld [vmem:[%s1766_s8 + $0x208] sm:$0xff] }
   0xd   :  { %1109 = vmatprep.subr.mxu1 %v1190_v1  ;;  %1088 = vmatprep.subr.mxu0 %v1190_v1  ;;  %v397_v19 = vld [vmem:[%s1766_s8 + $0x2e0] sm:$0xff]  ;;  %v358_v26 = vld [vmem:[%s1766_s8 + $0x1a8] sm:$0xff]  ;;  %v344_v29 = vld [vmem:[%s1766_s8 + $0x138] sm:$0xff] }
   0xe   :  { %1110 = vmatpush3.msra.mxu1 %v131_v12  ;;  %1089 = vmatpush3.msra.mxu0 %v43_v13  ;;  %v357_v27 = vld [vmem:[%s1766_s8 + $0x1a0] sm:$0xff]  ;;  %v332_v30 = vld [vmem:[%s1766_s8 + $0xd8] sm:$0xff]  ;;  %v331_v31 = vld [vmem:[%s1766_s8 + $0xd0] sm:$0xff] }
   0xf   :  { %1111 = vmatprep.subr.mxu1 %v1190_v1  ;;  %1090 = vmatprep.subr.mxu0 %v1190_v1  ;;  %v345_v28 = vld [vmem:[%s1766_s8 + $0x140] sm:$0xff]  ;;  %v319_v32 = vld [vmem:[%s1766_s8 + $0x70] sm:$0xff]  ;;  %v318_v33 = vld [vmem:[%s1766_s8 + $0x68] sm:$0xff] }
  0x10   :  { %1112 = vmatpush3.msra.mxu1 %v130_v14  ;;  %1091 = vmatpush3.msra.mxu0 %v42_v15  ;;  %v1038_v34 = vld [vmem:[%s1762_s4] ss:$0 sm:$0xff]  ;;  %v398_v48 = vld [vmem:[%s1766_s8 + $0x2e8] sm:$0xff]  ;;  %v372_v52 = vld [vmem:[%s1766_s8 + $0x218] sm:$0xff]  ;;  %s1192_s4 = smov [#allocation2]  }
  0x11   :  { %1114 = vmatmul.mubr.msk.f32.vlgmr.msra.gmra.mxu1 %vm56_vm1, %v40_v16  ;;  %1092 = vmatprep.subr.mxu0 %v1190_v1  ;;  %v1036_v36 = vld [vmem:[%s1760_s2] ss:$0 sm:$0xff]  ;;  %v386_v49 = vld [vmem:[%s1766_s8 + $0x288] sm:$0xff]  ;;  %v360_v53 = vld [vmem:[%s1766_s8 + $0x1b8] sm:$0xff]  ;;  %s1010_s2 = sshll.u32 %s1192_s4, 4  ;;  %s1011_s2 = int_to_ptr.vmem [resolvable:$true] %s1010_s2 }
  0x12   :  { %1093 = vmatpush3.msra.mxu0 %v41_v17  ;;  %545 = vmatprep.mubr.f32.mxu1 %v1190_v1  ;;  %v218_v44 = vld [vmem:[%s1763_s5] sm:$0xff]  ;;  %v359_v54 = vld [vmem:[%s1766_s8 + $0x1b0] sm:$0xff]  ;;  %v346_v56 = vld [vmem:[%s1766_s8 + $0x148] sm:$0xff]  ;;  %s1146_s14 = scalar_lea.vmem %s1011_s2, 128  ;;  %p1151_p1 = scmp.lt.s32.totalorder %s1011_s2, %s1011_s2 }
  0x13   :  { %1095 = vmatmul.mubr.msk.f32.vlgmr.msra.gmra.mxu0 %vm56_vm1, %v40_v16  ;;  %1116 = vmatprep.subr.mxu0 %v1190_v1  ;;  %v385_v50 = vld [vmem:[%s1766_s8 + $0x280] sm:$0xff]  ;;  %v347_v55 = vld [vmem:[%s1766_s8 + $0x150] sm:$0xff]  ;;  %v334_v57 = vld [vmem:[%s1766_s8 + $0xe8] sm:$0xff]  ;;  %p1147_p0 = scmp.ne.s32.totalorder %s1011_s2, %s1146_s14  ;;  %p1152_p2 = scmp.lt.s32.totalorder %s1146_s14, %s1146_s14 }
  0x14   :  { %1118 = vmatprep.mubr.msk.f32.mxu0 %vm1191_vm0, %v1190_v1  ;;  %1117 = vmatpush3.msra.mxu0 %v224_v18  ;;  %v373_v51 = vld [vmem:[%s1766_s8 + $0x220] sm:$0xff]  ;;  %v320_v60 = vld [vmem:[%s1766_s8 + $0x78] sm:$0xff]  ;;  %v306_v61 = vld [vmem:[%s1766_s8 + $0x8] sm:$0xff] }
  0x15   :  { %497 = vmatprep.subr.mxu1 %v397_v19  ;;  %568 = vmatprep.subr.mxu0 %v399_v20  ;;  %v333_v58 = vld [vmem:[%s1766_s8 + $0xe0] sm:$0xff]  ;;  %v308_v62 = vld [vmem:[%s1766_s8 + $0x18] sm:$0xff]  ;;  %v307_v0 = vld [vmem:[%s1766_s8 + $0x10] sm:$0xff]  ;;  %p1153_p3 = por %p1152_p2, %p1151_p1 }
  0x16   :  { %498 = vmatpush1.msra.mxu1 %v396_v21  ;;  %v321_v59 = vld [vmem:[%s1766_s8 + $0x80] sm:$0xff]  ;;  %v403_v3 = vld [vmem:[%s1766_s8 + $0x310] sm:$0xff]  ;;  %v400_v7 = vld [vmem:[%s1766_s8 + $0x2f8] sm:$0xff] }
  0x17   :  { %499 = vmatprep.subr.mxu1 %v384_v22  ;;  %v305_v63 = vld [vmem:[%s1766_s8] sm:$0xff]  ;;  %v402_v8 = vld [vmem:[%s1766_s8 + $0x308] sm:$0xff]  ;;  %v388_v10 = vld [vmem:[%s1766_s8 + $0x298] sm:$0xff]  ;;  %p1154_p4 = pnand %p1153_p3, %p1147_p0 }
  0x18   :  { %500 = vmatpush1.msra.mxu1 %v383_v23  ;;  %v401_v2 = vld [vmem:[%s1766_s8 + $0x300] sm:$0xff]  ;;  %v390_v11 = vld [vmem:[%s1766_s8 + $0x2a8] sm:$0xff]  ;;  %v387_v12 = vld [vmem:[%s1766_s8 + $0x290] sm:$0xff] }
  0x19   :  { %501 = vmatprep.subr.mxu1 %v371_v24  ;;  %v1040_v4 = vld [vmem:[%s1765_s7] ss:$0 sm:$0xff]  ;;  %v375_v14 = vld [vmem:[%s1766_s8 + $0x230] sm:$0xff]  ;;  %v374_v16 = vld [vmem:[%s1766_s8 + $0x228] sm:$0xff] }
  0x1a   :  { %502 = vmatpush1.msra.mxu1 %v370_v25  ;;  %v389_v13 = vld [vmem:[%s1766_s8 + $0x2a0] sm:$0xff]  ;;  %v376_v17 = vld [vmem:[%s1766_s8 + $0x238] sm:$0xff]  ;;  %v362_v18 = vld [vmem:[%s1766_s8 + $0x1c8] sm:$0xff] }
  0x1b   :  { %503 = vmatprep.subr.mxu1 %v358_v26  ;;  %v377_v15 = vld [vmem:[%s1766_s8 + $0x240] sm:$0xff]  ;;  %v364_v19 = vld [vmem:[%s1766_s8 + $0x1d8] sm:$0xff]  ;;  %v363_v21 = vld [vmem:[%s1766_s8 + $0x1d0] sm:$0xff] }
  0x1c   :  { %504 = vmatpush1.msra.mxu1 %v357_v27  ;;  %v361_v20 = vld [vmem:[%s1766_s8 + $0x1c0] sm:$0xff]  ;;  %v351_v23 = vld [vmem:[%s1766_s8 + $0x170] sm:$0xff]  ;;  %v348_v24 = vld [vmem:[%s1766_s8 + $0x158] sm:$0xff] }
  0x1d   :  { %505 = vmatprep.subr.mxu1 %v345_v28  ;;  %v349_v22 = vld [vmem:[%s1766_s8 + $0x160] sm:$0xff]  ;;  %v350_v25 = vld [vmem:[%s1766_s8 + $0x168] sm:$0xff]  ;;  %v336_v26 = vld [vmem:[%s1766_s8 + $0xf8] sm:$0xff] }
  0x1e   :  { %506 = vmatpush1.msra.mxu1 %v344_v29  ;;  %v338_v27 = vld [vmem:[%s1766_s8 + $0x108] sm:$0xff]  ;;  %v335_v28 = vld [vmem:[%s1766_s8 + $0xf0] sm:$0xff]  ;;  %v337_v29 = vld [vmem:[%s1766_s8 + $0x100] sm:$0xff] }
  0x1f   :  { %507 = vmatprep.subr.mxu1 %v332_v30  ;;  %v323_v30 = vld [vmem:[%s1766_s8 + $0x90] sm:$0xff] }
  0x20   :  { %508 = vmatpush1.msra.mxu1 %v331_v31  ;;  %v325_v31 = vld [vmem:[%s1766_s8 + $0xa0] sm:$0xff] }
  0x21   :  { %509 = vmatprep.subr.mxu1 %v319_v32  ;;  %v322_v32 = vld [vmem:[%s1766_s8 + $0x88] sm:$0xff] }
  0x22   :  { %510 = vmatpush1.msra.mxu1 %v318_v33  ;;  %v324_v33 = vld [vmem:[%s1766_s8 + $0x98] sm:$0xff] }
  0x23   :  { %511 = vmatprep.subr.mxu1 %v306_v61  ;;  %v341_v61 = vld [vmem:[%s1766_s8 + $0x120] sm:$0xff] }
  0x24   :  { %512 = vmatpush1.msra.mxu1 %v305_v63  ;;  %v329_v63 = vld [vmem:[%s1766_s8 + $0xc0] sm:$0xff] }
  0x25   :  { %639 = vmatprep.subr.mxu1 %v401_v2  ;;  %v328_v2 = vld [vmem:[%s1766_s8 + $0xb8] sm:$0xff] }
  0xd1   :  { %v211_v35 = vpop.f32.mrf.mxu1 }
  0xd2   :  { %v212_v37 = vadd.f32 %v1038_v34, %v211_v35  ;;  %v310_v34 = vld [vmem:[%s1766_s8 + $0x28] sm:$0xff]  ;;  %v312_v35 = vld [vmem:[%s1766_s8 + $0x38] sm:$0xff] }
  0xd3   :  { %v1115_v38 = vpop.f32.mrf.mxu1  ;;  %v126_v39 = vpop.f32.mrf.mxu0 }
  0xd4   :  { %v219_v40 = vmul.f32 0.5, %v212_v37  ;;  %v127_v41 = vadd.f32 %v1036_v36, %v126_v39  ;;  %217 = vst.msk [vmem:[#allocation4] sm:$0xff] %vm215_vm2, %v212_v37  ;;  %v309_v36 = vld [vmem:[%s1766_s8 + $0x20] sm:$0xff]  ;;  %v311_v37 = vld [vmem:[%s1766_s8 + $0x30] sm:$0xff] }
  0xd5   :  { %v1096_v42 = vpop.f32.mrf.mxu0  ;;  %v405_v38 = vld [vmem:[%s1766_s8 + $0x320] sm:$0xff]  ;;  %v407_v39 = vld [vmem:[%s1766_s8 + $0x330] sm:$0xff] }
  0xd6   :  { %v220_v43 = vmul.f32 1.442695, %v219_v40  ;;  %216 = vst.msk [vmem:[#allocation2] sm:$0xff] %vm215_vm2, %v127_v41  ;;  %v404_v40 = vld [vmem:[%s1766_s8 + $0x318] sm:$0xff] }
  0xd7   :  { %v392_v42 = vld [vmem:[%s1766_s8 + $0x2b8] sm:$0xff] }
  0xd8   :  { %1144 = vpow2.f32 %v220_v43  ;;  %v394_v43 = vld [vmem:[%s1766_s8 + $0x2c8] sm:$0xff] }
  0xe5   :  { %v1145_v45 = vpop.eup %1144 }
  0xe6   :  { %v222_v46 = vmul.f32 %v1145_v45, %v218_v44  ;;  %v391_v44 = vld [vmem:[%s1766_s8 + $0x2b0] sm:$0xff]  ;;  %v393_v45 = vld [vmem:[%s1766_s8 + $0x2c0] sm:$0xff] }
  0xe8   :  { %v223_v47 = vadd.f32 %v222_v46, %v127_v41  ;;  %v406_v41 = vld [vmem:[%s1766_s8 + $0x328] sm:$0xff]  ;;  %v379_v46 = vld [vmem:[%s1766_s8 + $0x250] sm:$0xff] }
  0xea   :  { %1119 = vmatmul.mubr.msk.f32.vlgmr.msra.gmra.mxu0 %vm215_vm2, %v223_v47  ;;  %v381_v47 = vld [vmem:[%s1766_s8 + $0x260] sm:$0xff] }
  0xeb   :  { %569 = vmatpush1.msra.mxu0 %v398_v48  ;;  %616 = vmatprep.mubr.f32.mxu0 %v1190_v1  ;;  %v378_v48 = vld [vmem:[%s1766_s8 + $0x248] sm:$0xff] }
  0xec   :  { %570 = vmatprep.subr.mxu0 %v386_v49  ;;  %v380_v49 = vld [vmem:[%s1766_s8 + $0x258] sm:$0xff] }
  0xed   :  { %571 = vmatpush1.msra.mxu0 %v385_v50  ;;  %v366_v50 = vld [vmem:[%s1766_s8 + $0x1e8] sm:$0xff] }
  0xee   :  { %572 = vmatprep.subr.mxu0 %v373_v51  ;;  %v368_v51 = vld [vmem:[%s1766_s8 + $0x1f8] sm:$0xff] }
  0xef   :  { %573 = vmatpush1.msra.mxu0 %v372_v52  ;;  %v365_v52 = vld [vmem:[%s1766_s8 + $0x1e0] sm:$0xff] }
  0xf0   :  { %574 = vmatprep.subr.mxu0 %v360_v53  ;;  %v367_v53 = vld [vmem:[%s1766_s8 + $0x1f0] sm:$0xff] }
  0xf1   :  { %575 = vmatpush1.msra.mxu0 %v359_v54  ;;  %v353_v54 = vld [vmem:[%s1766_s8 + $0x180] sm:$0xff] }
  0xf2   :  { %576 = vmatprep.subr.mxu0 %v347_v55  ;;  %v355_v55 = vld [vmem:[%s1766_s8 + $0x190] sm:$0xff] }
  0xf3   :  { %577 = vmatpush1.msra.mxu0 %v346_v56  ;;  %v352_v56 = vld [vmem:[%s1766_s8 + $0x178] sm:$0xff] }
  0xf4   :  { %578 = vmatprep.subr.mxu0 %v334_v57  ;;  %v354_v57 = vld [vmem:[%s1766_s8 + $0x188] sm:$0xff] }
  0xf5   :  { %579 = vmatpush1.msra.mxu0 %v333_v58  ;;  %v340_v58 = vld [vmem:[%s1766_s8 + $0x118] sm:$0xff] }
  0xf6   :  { %580 = vmatprep.subr.mxu0 %v321_v59  ;;  %v342_v59 = vld [vmem:[%s1766_s8 + $0x128] sm:$0xff] }
  0xf7   :  { %581 = vmatpush1.msra.mxu0 %v320_v60  ;;  %v339_v60 = vld [vmem:[%s1766_s8 + $0x110] sm:$0xff] }
  0xf8   :  { %582 = vmatprep.subr.mxu0 %v308_v62  ;;  %v327_v62 = vld [vmem:[%s1766_s8 + $0xb0] sm:$0xff] }
  0xf9   :  { %583 = vmatpush1.msra.mxu0 %v307_v0  ;;  %v326_v0 = vld [vmem:[%s1766_s8 + $0xa8] sm:$0xff] }
  0xfa   :  { %710 = vmatprep.subr.mxu0 %v403_v3  ;;  %v314_v3 = vld [vmem:[%s1766_s8 + $0x48] sm:$0xff] }
 0x1aa   :  { %v301_v5 = vpop.f32.mrf.mxu0 }
 0x1ab   :  { %v1457_v6 = vadd.f32 %v1040_v4, %v301_v5  ;;  %v316_v4 = vld [vmem:[%s1766_s8 + $0x58] sm:$0xff]  ;;  %v313_v5 = vld [vmem:[%s1766_s8 + $0x40] sm:$0xff] }
 0x1ac   :  { %v1120_v9 = vpop.f32.mrf.mxu0 }
 0x1ad   :  { %1042 = vmatmul.mubr.msk.f32.vlgmr.msra.gmra.mxu1 %vm56_vm1, %v1457_v6  ;;  %1043 = vmatmul.mubr.msk.f32.vlgmr.msra.gmra.mxu0 %vm56_vm1, %v1457_v6  ;;  %v395_v9 = vld [vmem:[%s1766_s8 + $0x2d0] sm:$0xff] }
 0x1ae   :  { %640 = vmatpush1.msra.mxu1 %v400_v7  ;;  %711 = vmatpush1.msra.mxu0 %v402_v8  ;;  %v315_v7 = vld [vmem:[%s1766_s8 + $0x50] sm:$0xff]  ;;  %v408_v8 = vld [vmem:[%s1766_s8 + $0x338] sm:$0xff] }
 0x1af   :  { %641 = vmatprep.subr.mxu1 %v388_v10  ;;  %712 = vmatprep.subr.mxu0 %v390_v11  ;;  %v382_v10 = vld [vmem:[%s1766_s8 + $0x268] sm:$0xff]  ;;  %v369_v11 = vld [vmem:[%s1766_s8 + $0x200] sm:$0xff] }
 0x1b0   :  { %642 = vmatpush1.msra.mxu1 %v387_v12  ;;  %713 = vmatpush1.msra.mxu0 %v389_v13  ;;  %v356_v12 = vld [vmem:[%s1766_s8 + $0x198] sm:$0xff]  ;;  %v343_v13 = vld [vmem:[%s1766_s8 + $0x130] sm:$0xff] }
 0x1b1   :  { %643 = vmatprep.subr.mxu1 %v375_v14  ;;  %714 = vmatprep.subr.mxu0 %v377_v15  ;;  %v330_v14 = vld [vmem:[%s1766_s8 + $0xc8] sm:$0xff]  ;;  %v317_v15 = vld [vmem:[%s1766_s8 + $0x60] sm:$0xff] }
 0x1b2   :  { %644 = vmatpush1.msra.mxu1 %v374_v16  ;;  %715 = vmatpush1.msra.mxu0 %v376_v17 }
 0x1b3   :  { %645 = vmatprep.subr.mxu1 %v362_v18  ;;  %716 = vmatprep.subr.mxu0 %v364_v19 }
 0x1b4   :  { %646 = vmatpush1.msra.mxu1 %v361_v20  ;;  %717 = vmatpush1.msra.mxu0 %v363_v21 }
 0x1b5   :  { %647 = vmatprep.subr.mxu1 %v349_v22  ;;  %718 = vmatprep.subr.mxu0 %v351_v23 }
 0x1b6   :  { %648 = vmatpush1.msra.mxu1 %v348_v24  ;;  %719 = vmatpush1.msra.mxu0 %v350_v25 }
 0x1b7   :  { %649 = vmatprep.subr.mxu1 %v336_v26  ;;  %720 = vmatprep.subr.mxu0 %v338_v27 }
 0x1b8   :  { %650 = vmatpush1.msra.mxu1 %v335_v28  ;;  %721 = vmatpush1.msra.mxu0 %v337_v29 }
 0x1b9   :  { %651 = vmatprep.subr.mxu1 %v323_v30  ;;  %722 = vmatprep.subr.mxu0 %v325_v31 }
 0x1ba   :  { %652 = vmatpush1.msra.mxu1 %v322_v32  ;;  %723 = vmatpush1.msra.mxu0 %v324_v33 }
 0x1bb   :  { %653 = vmatprep.subr.mxu1 %v310_v34  ;;  %724 = vmatprep.subr.mxu0 %v312_v35 }
 0x1bc   :  { %654 = vmatpush1.msra.mxu1 %v309_v36  ;;  %687 = vmatprep.mubr.f32.mxu1 %v1190_v1 }
 0x1bd   :  { %725 = vmatpush1.msra.mxu0 %v311_v37  ;;  %758 = vmatprep.mubr.f32.mxu0 %v1190_v1 }
 0x1be   :  { %1044 = vmatmul.mubr.msk.f32.vlgmr.msra.gmra.mxu1 %vm56_vm1, %v1457_v6  ;;  %1045 = vmatmul.mubr.msk.f32.vlgmr.msra.gmra.mxu0 %vm56_vm1, %v1457_v6 }
 0x1bf   :  { %781 = vmatprep.subr.mxu1 %v405_v38  ;;  %852 = vmatprep.subr.mxu0 %v407_v39 }
 0x1c0   :  { %782 = vmatpush1.msra.mxu1 %v404_v40  ;;  %853 = vmatpush1.msra.mxu0 %v406_v41 }
 0x1c1   :  { %783 = vmatprep.subr.mxu1 %v392_v42  ;;  %854 = vmatprep.subr.mxu0 %v394_v43 }
 0x1c2   :  { %784 = vmatpush1.msra.mxu1 %v391_v44  ;;  %855 = vmatpush1.msra.mxu0 %v393_v45 }
 0x1c3   :  { %785 = vmatprep.subr.mxu1 %v379_v46  ;;  %856 = vmatprep.subr.mxu0 %v381_v47 }
 0x1c4   :  { %786 = vmatpush1.msra.mxu1 %v378_v48  ;;  %857 = vmatpush1.msra.mxu0 %v380_v49 }
 0x1c5   :  { %787 = vmatprep.subr.mxu1 %v366_v50  ;;  %858 = vmatprep.subr.mxu0 %v368_v51 }
 0x1c6   :  { %788 = vmatpush1.msra.mxu1 %v365_v52  ;;  %859 = vmatpush1.msra.mxu0 %v367_v53 }
 0x1c7   :  { %789 = vmatprep.subr.mxu1 %v353_v54  ;;  %860 = vmatprep.subr.mxu0 %v355_v55 }
 0x1c8   :  { %790 = vmatpush1.msra.mxu1 %v352_v56  ;;  %861 = vmatpush1.msra.mxu0 %v354_v57 }
 0x1c9   :  { %791 = vmatprep.subr.mxu1 %v340_v58  ;;  %862 = vmatprep.subr.mxu0 %v342_v59 }
 0x1ca   :  { %792 = vmatpush1.msra.mxu1 %v339_v60  ;;  %863 = vmatpush1.msra.mxu0 %v341_v61 }
 0x1cb   :  { %793 = vmatprep.subr.mxu1 %v327_v62  ;;  %864 = vmatprep.subr.mxu0 %v329_v63 }
 0x1cc   :  { %794 = vmatpush1.msra.mxu1 %v326_v0  ;;  %865 = vmatpush1.msra.mxu0 %v328_v2 }
 0x1cd   :  { %795 = vmatprep.subr.mxu1 %v314_v3  ;;  %866 = vmatprep.subr.mxu0 %v316_v4 }
 0x1ce   :  { %796 = vmatpush1.msra.mxu1 %v313_v5  ;;  %829 = vmatprep.mubr.f32.mxu1 %v1190_v1 }
 0x1cf   :  { %867 = vmatpush1.msra.mxu0 %v315_v7  ;;  %900 = vmatprep.mubr.f32.mxu0 %v1190_v1 }
 0x1d0   :  { %1046 = vmatmul.mubr.msk.f32.vlgmr.msra.gmra.mxu1 %vm56_vm1, %v1457_v6  ;;  %1047 = vmatmul.mubr.msk.f32.vlgmr.msra.gmra.mxu0 %vm56_vm1, %v1457_v6 }
 0x1d1   :  { %1121 = vmatprep.subr.mxu1 %v1190_v1  ;;  %1137 = vmatprep.mubr.msk.f32.mxu1 %vm1191_vm0, %v1190_v1 }
 0x1d2   :  { %1122 = vmatpush3.msra.mxu1 %v408_v8 }
 0x1d3   :  { %1123 = vmatprep.subr.mxu1 %v1190_v1 }
 0x1d4   :  { %1124 = vmatpush3.msra.mxu1 %v395_v9 }
 0x1d5   :  { %1125 = vmatprep.subr.mxu1 %v1190_v1 }
 0x1d6   :  { %1126 = vmatpush3.msra.mxu1 %v382_v10 }
 0x1d7   :  { %1127 = vmatprep.subr.mxu1 %v1190_v1 }
 0x1d8   :  { %1128 = vmatpush3.msra.mxu1 %v369_v11 }
 0x1d9   :  { %1129 = vmatprep.subr.mxu1 %v1190_v1 }
 0x1da   :  { %1130 = vmatpush3.msra.mxu1 %v356_v12 }
 0x1db   :  { %1131 = vmatprep.subr.mxu1 %v1190_v1 }
 0x1dc   :  { %1132 = vmatpush3.msra.mxu1 %v343_v13 }
 0x1dd   :  { %1133 = vmatprep.subr.mxu1 %v1190_v1 }
 0x1de   :  { %1134 = vmatpush3.msra.mxu1 %v330_v14 }
 0x1df   :  { %1135 = vmatprep.subr.mxu1 %v1190_v1 }
 0x1e0   :  { %1136 = vmatpush3.msra.mxu1 %v317_v15 }
 0x1e1   :  { %1138 = vmatmul.mubr.msk.f32.vlgmr.msra.gmra.mxu1 %vm56_vm1, %v1457_v6 }
 0x1e2   :  { %1157 = shalt.err (!%p1154_p4)
}
 0x1e3   :  { %1013 = dma.vmem_to_hbm [thread:$0]  %s1011_s2, 128, %s1768_s10, [#allocation3]  }
 0x1e4   :  { %s1166_s16 = scalar_lea.vmem %s1021_s13, 128  ;;  %p1171_p6 = scmp.lt.s32.totalorder %s1021_s13, %s1021_s13 }
 0x1e5   :  { %p1167_p5 = scmp.ne.s32.totalorder %s1021_s13, %s1166_s16  ;;  %p1172_p7 = scmp.lt.s32.totalorder %s1166_s16, %s1166_s16 }
 0x1e7   :  { %p1173_p8 = por %p1172_p7, %p1171_p6 }
 0x1e9   :  { %p1174_p9 = pnand %p1173_p8, %p1167_p5 }
 0x1eb   :  { %1177 = shalt.err (!%p1174_p9)
}
 0x1ec   :  { %1023 = dma.vmem_to_hbm [thread:$0]  %s1021_s13, 128, %s1769_s11, [#allocation5]   ;;  %v413_v1 = vlaneseq  ;;  %v409_v18 = vld [vmem:[%s1767_s9] sm:$0xff]  ;;  %v410_v57 = vld [vmem:[%s1767_s9 + $0x8] sm:$0x1f]  ;;  %vm1002_vm3 = vcmask 261120  }
 0x1ee   :  { %v1703_v6 = vshrl.u32 %v413_v1, 7 }
 0x1f0   :  { %v415_v16 = vsub.s32 0, %v1703_v6  ;;  %v423_v17 = vsub.s32 2, %v1703_v6  ;;  %v419_v19 = vsub.s32 1, %v1703_v6  ;;  %v427_v20 = vsub.s32 3, %v1703_v6 }
 0x1f1   :  { %v431_v37 = vsub.s32 4, %v1703_v6  ;;  %v439_v38 = vsub.s32 6, %v1703_v6  ;;  %v435_v39 = vsub.s32 5, %v1703_v6  ;;  %v443_v40 = vsub.s32 7, %v1703_v6 }
 0x1f2   :  { %v416_v21 = vrot.slane %v409_v18, %v415_v16  ;;  %v424_v22 = vrot.slane %v409_v18, %v423_v17  ;;  %v420_v23 = vrot.slane %v409_v18, %v419_v19  ;;  %v428_v24 = vrot.slane %v409_v18, %v427_v20 }
 0x1f3   :  { %v432_v41 = vrot.slane %v409_v18, %v431_v37  ;;  %v440_v42 = vrot.slane %v409_v18, %v439_v38  ;;  %v436_v43 = vrot.slane %v409_v18, %v435_v39  ;;  %v444_v44 = vrot.slane %v409_v18, %v443_v40 }
 0x1f4   :  { %v448_v58 = vrot.slane %v410_v57, %v415_v16  ;;  %v456_v59 = vrot.slane %v410_v57, %v423_v17  ;;  %v452_v60 = vrot.slane %v410_v57, %v419_v19  ;;  %v460_v61 = vrot.slane %v410_v57, %v427_v20 }
 0x1f5   :  { %v464_v12 = vrot.slane %v410_v57, %v431_v37 }
 0x26d   :  { %v547_v25 = vpop.f32.mrf.mxu1  ;;  %v618_v26 = vpop.f32.mrf.mxu0 }
 0x26e   :  { %v548_v27 = vadd.f32 %v547_v25, %v416_v21  ;;  %v619_v28 = vadd.f32 %v618_v26, %v424_v22 }
 0x26f   :  { %v549_v29 = vpop.f32.mrf.mxu1  ;;  %v620_v30 = vpop.f32.mrf.mxu0 }
 0x270   :  { %v977_v31 = vmax.f32 %v548_v27, 0.0  ;;  %v979_v32 = vmax.f32 %v619_v28, 0.0  ;;  %v550_v33 = vadd.f32 %v549_v29, %v420_v23  ;;  %v621_v34 = vadd.f32 %v620_v30, %v428_v24 }
 0x272   :  { %990 = vst [vmem:[%s1770_s12] sm:$0xff] %v977_v31  ;;  %992 = vst [vmem:[%s1770_s12 + $0x10] sm:$0xff] %v979_v32  ;;  %v978_v35 = vmax.f32 %v550_v33, 0.0  ;;  %v980_v36 = vmax.f32 %v621_v34, 0.0 }
 0x274   :  { %991 = vst [vmem:[%s1770_s12 + $0x8] sm:$0xff] %v978_v35  ;;  %993 = vst [vmem:[%s1770_s12 + $0x18] sm:$0xff] %v980_v36 }
 0x27e   :  { %v689_v45 = vpop.f32.mrf.mxu1  ;;  %v760_v46 = vpop.f32.mrf.mxu0 }
 0x27f   :  { %v690_v47 = vadd.f32 %v689_v45, %v432_v41  ;;  %v761_v48 = vadd.f32 %v760_v46, %v440_v42 }
 0x280   :  { %v691_v49 = vpop.f32.mrf.mxu1  ;;  %v762_v50 = vpop.f32.mrf.mxu0 }
 0x281   :  { %v981_v51 = vmax.f32 %v690_v47, 0.0  ;;  %v983_v52 = vmax.f32 %v761_v48, 0.0  ;;  %v692_v53 = vadd.f32 %v691_v49, %v436_v43  ;;  %v763_v54 = vadd.f32 %v762_v50, %v444_v44 }
 0x283   :  { %994 = vst [vmem:[%s1770_s12 + $0x20] sm:$0xff] %v981_v51  ;;  %996 = vst [vmem:[%s1770_s12 + $0x30] sm:$0xff] %v983_v52  ;;  %v982_v55 = vmax.f32 %v692_v53, 0.0  ;;  %v984_v56 = vmax.f32 %v763_v54, 0.0 }
 0x285   :  { %995 = vst [vmem:[%s1770_s12 + $0x28] sm:$0xff] %v982_v55  ;;  %997 = vst [vmem:[%s1770_s12 + $0x38] sm:$0xff] %v984_v56 }
 0x290   :  { %v831_v62 = vpop.f32.mrf.mxu1  ;;  %v902_v63 = vpop.f32.mrf.mxu0 }
 0x291   :  { %v832_v0 = vadd.f32 %v831_v62, %v448_v58  ;;  %v903_v2 = vadd.f32 %v902_v63, %v456_v59 }
 0x292   :  { %v833_v3 = vpop.f32.mrf.mxu1  ;;  %v904_v4 = vpop.f32.mrf.mxu0 }
 0x293   :  { %v985_v5 = vmax.f32 %v832_v0, 0.0  ;;  %v987_v7 = vmax.f32 %v903_v2, 0.0  ;;  %v834_v8 = vadd.f32 %v833_v3, %v452_v60  ;;  %v905_v9 = vadd.f32 %v904_v4, %v460_v61 }
 0x295   :  { %998 = vst [vmem:[%s1770_s12 + $0x40] sm:$0xff] %v985_v5  ;;  %1000 = vst [vmem:[%s1770_s12 + $0x50] sm:$0xff] %v987_v7  ;;  %v986_v10 = vmax.f32 %v834_v8, 0.0  ;;  %v988_v11 = vmax.f32 %v905_v9, 0.0 }
 0x297   :  { %999 = vst [vmem:[%s1770_s12 + $0x48] sm:$0xff] %v986_v10  ;;  %1001 = vst [vmem:[%s1770_s12 + $0x58] sm:$0xff] %v988_v11 }
 0x2a1   :  { %v973_v13 = vpop.f32.mrf.mxu1 }
 0x2a2   :  { %v974_v14 = vadd.f32 %v973_v13, %v464_v12 }
 0x2a3   :  { %v1139_v15 = vpop.f32.mrf.mxu1 }
 0x2a4   :  { %v989_v1 = vmax.f32 %v974_v14, 0.0 }
 0x2a6   :  { %1003 = vst.msk [vmem:[%s1770_s12 + $0x60] sm:$0xff] %vm1002_vm3, %v989_v1 }
 0x2a7   :  { %1186 = dma.done.wait [#allocation3], 128  }
 0x2a8   :  { %1187 = vsyncadd [#allocation3], 4294967168 }
 0x2a9   :  { %1188 = dma.done.wait [#allocation5], 128  }
 0x2aa   :  { %1189 = vsyncadd [#allocation5], 4294967168 }
 0x2ab   :  { %1034 = vsyncpa [#allocation3], 1 }
 0x2ac   :  { %1035 = vsyncpa [#allocation5], 1 }

// kernel: vsc_forward.10
= control target key start
LH: loop header
LB: loop body
LE: loop exit
PB: predicated region body
PF: predicated region fallthrough
CT: control target
= control target key end

     0   :  { %v852_v0 = vmov 0.0   ;;  %vm853_vm0 = vmmov 0   ;;  %vm564_vm1 = vcmask 523264   ;;  %s1289_s1 = inlined_call_operand.vmem [shape: bf16[128,64], index: 1, kind: input, shape index: {}]   ;;  %s1290_s0 = inlined_call_operand.vmem [shape: bf16[392,128], index: 0, kind: input, shape index: {}]   ;;  %s1291_s2 = inlined_call_operand.vmem [shape: f32[1,64], index: 2, kind: input, shape index: {}]   ;;  %s1292_s3 = inlined_call_operand.vmem [shape: f32[392,64], index: 3, kind: output, shape index: {}]  }
   0x1   :  { %685 = vmatprep.subr.bf16.mxu0 %v852_v0  ;;  %v819_v1 = vld [vmem:[%s1289_s1 + $0x38] sm:$0xff]   ;;  %801 = vmatprep.subr.bf16.mxu1 %v852_v0  ;;  %v820_v2 = vld [vmem:[%s1289_s1 + $0x30] sm:$0xff]   ;;  %v821_v3 = vld [vmem:[%s1289_s1 + $0x28] sm:$0xff]  }
   0x2   :  { %701 = vmatprep.mubr.msk.bf16.mxu0 %vm853_vm0, %v852_v0  ;;  %753 = vmatprep.mubr.msk.bf16.mxu1 %vm853_vm0, %v852_v0  ;;  %v822_v4 = vld [vmem:[%s1289_s1 + $0x20] sm:$0xff]   ;;  %v823_v5 = vld [vmem:[%s1289_s1 + $0x18] sm:$0xff]   ;;  %v824_v6 = vld [vmem:[%s1289_s1 + $0x10] sm:$0xff]  }
   0x3   :  { %686 = vmatpush3.bf16.msra.mxu0 %v819_v1  ;;  %809 = vmatpush3.bf16.msra.mxu1 %v819_v1  ;;  %v825_v7 = vld [vmem:[%s1289_s1 + $0x8] sm:$0xff]   ;;  %v826_v8 = vld [vmem:[%s1289_s1] sm:$0xff]   ;;  %v830_v12 = vld [vmem:[%s1290_s0 + $0x70] sm:$0xff]  }
   0x4   :  { %687 = vmatprep.subr.bf16.mxu0 %v852_v0  ;;  %802 = vmatprep.subr.bf16.mxu1 %v852_v0  ;;  %v827_v9 = vld [vmem:[%s1290_s0] sm:$0xff]   ;;  %v828_v10 = vld [vmem:[%s1290_s0 + $0x68] sm:$0xff]   ;;  %v831_v13 = vld [vmem:[%s1290_s0 + $0x10] sm:$0xff]  }
   0x5   :  { %v829_v11 = vld [vmem:[%s1290_s0 + $0x8] sm:$0xff]   ;;  %v832_v14 = vld [vmem:[%s1290_s0 + $0x78] sm:$0xff]   ;;  %v834_v16 = vld [vmem:[%s1290_s0 + $0x80] sm:$0xff]  }
   0x6   :  { %v833_v15 = vld [vmem:[%s1290_s0 + $0x18] sm:$0xff]   ;;  %v835_v17 = vld [vmem:[%s1290_s0 + $0x20] sm:$0xff]   ;;  %v836_v18 = vld [vmem:[%s1290_s0 + $0x88] sm:$0xff]  }
   0x7   :  { %688 = vmatpush3.bf16.msra.mxu0 %v820_v2  ;;  %810 = vmatpush3.bf16.msra.mxu1 %v820_v2  ;;  %v837_v19 = vld [vmem:[%s1290_s0 + $0x28] sm:$0xff]   ;;  %v838_v20 = vld [vmem:[%s1290_s0 + $0x90] sm:$0xff]   ;;  %v840_v22 = vld [vmem:[%s1290_s0 + $0x98] sm:$0xff]  }
   0x8   :  { %689 = vmatprep.subr.bf16.mxu0 %v852_v0  ;;  %803 = vmatprep.subr.bf16.mxu1 %v852_v0  ;;  %v839_v21 = vld [vmem:[%s1290_s0 + $0x30] sm:$0xff]   ;;  %v841_v23 = vld [vmem:[%s1290_s0 + $0x38] sm:$0xff]   ;;  %v842_v24 = vld [vmem:[%s1290_s0 + $0xa0] sm:$0xff]  }
   0x9   :  { %v843_v25 = vld [vmem:[%s1290_s0 + $0x40] sm:$0xff]   ;;  %v844_v26 = vld [vmem:[%s1290_s0 + $0xa8] sm:$0xff]   ;;  %v846_v28 = vld [vmem:[%s1290_s0 + $0xb0] sm:$0xff]  }
   0xa   :  { %v845_v27 = vld [vmem:[%s1290_s0 + $0x48] sm:$0xff]   ;;  %v847_v29 = vld [vmem:[%s1290_s0 + $0x50] sm:$0xff]   ;;  %v848_v30 = vld [vmem:[%s1290_s0 + $0xb8] sm:$0xff]  }
   0xb   :  { %690 = vmatpush3.bf16.msra.mxu0 %v821_v3  ;;  %811 = vmatpush3.bf16.msra.mxu1 %v821_v3  ;;  %v849_v31 = vld [vmem:[%s1290_s0 + $0x58] sm:$0xff]   ;;  %v850_v32 = vld [vmem:[%s1290_s0 + $0xc0] ss:$0 sps:$4 sm:$0xff]  }
   0xc   :  { %691 = vmatprep.subr.bf16.mxu0 %v852_v0  ;;  %804 = vmatprep.subr.bf16.mxu1 %v852_v0  ;;  %v851_v33 = vld [vmem:[%s1290_s0 + $0x60] sm:$0xff]  }
   0xd   :  { %v1042_v34 = vld [vmem:[%s1291_s2] ss:$0 sm:$0xff] }
   0xf   :  { %692 = vmatpush3.bf16.msra.mxu0 %v822_v4  ;;  %812 = vmatpush3.bf16.msra.mxu1 %v822_v4 }
  0x10   :  { %693 = vmatprep.subr.bf16.mxu0 %v852_v0  ;;  %805 = vmatprep.subr.bf16.mxu1 %v852_v0 }
  0x13   :  { %694 = vmatpush3.bf16.msra.mxu0 %v823_v5  ;;  %813 = vmatpush3.bf16.msra.mxu1 %v823_v5 }
  0x14   :  { %695 = vmatprep.subr.bf16.mxu0 %v852_v0  ;;  %806 = vmatprep.subr.bf16.mxu1 %v852_v0 }
  0x17   :  { %696 = vmatpush3.bf16.msra.mxu0 %v824_v6  ;;  %814 = vmatpush3.bf16.msra.mxu1 %v824_v6 }
  0x18   :  { %697 = vmatprep.subr.bf16.mxu0 %v852_v0  ;;  %807 = vmatprep.subr.bf16.mxu1 %v852_v0 }
  0x1b   :  { %698 = vmatpush3.bf16.msra.mxu0 %v825_v7  ;;  %815 = vmatpush3.bf16.msra.mxu1 %v825_v7 }
  0x1c   :  { %699 = vmatprep.subr.bf16.mxu0 %v852_v0  ;;  %808 = vmatprep.subr.bf16.mxu1 %v852_v0 }
  0x1f   :  { %700 = vmatpush3.bf16.msra.mxu0 %v826_v8  ;;  %816 = vmatpush3.bf16.msra.mxu1 %v826_v8 }
  0x22   :  { %702 = vmatmul.mubr.bf16.vlgmr.msra.gmra.mxu0 %v827_v9  ;;  %754 = vmatmul.mubr.bf16.vlgmr.msra.gmra.mxu1 %v828_v10 }
  0x23   :  { %705 = vmatprep.mubr.msk.bf16.mxu0 %vm853_vm0, %v852_v0  ;;  %757 = vmatprep.mubr.msk.bf16.mxu1 %vm853_vm0, %v852_v0 }
  0x2a   :  { %706 = vmatmul.mubr.bf16.gmra.mxu0 %v829_v11  ;;  %758 = vmatmul.mubr.bf16.gmra.mxu1 %v830_v12 }
  0x2b   :  { %709 = vmatprep.mubr.msk.bf16.mxu0 %vm853_vm0, %v852_v0  ;;  %761 = vmatprep.mubr.msk.bf16.mxu1 %vm853_vm0, %v852_v0 }
  0x32   :  { %710 = vmatmul.mubr.bf16.gmra.mxu0 %v831_v13  ;;  %762 = vmatmul.mubr.bf16.gmra.mxu1 %v832_v14 }
  0x33   :  { %713 = vmatprep.mubr.msk.bf16.mxu0 %vm853_vm0, %v852_v0  ;;  %765 = vmatprep.mubr.msk.bf16.mxu1 %vm853_vm0, %v852_v0 }
  0x3a   :  { %714 = vmatmul.mubr.bf16.gmra.mxu0 %v833_v15  ;;  %766 = vmatmul.mubr.bf16.gmra.mxu1 %v834_v16 }
  0x3b   :  { %717 = vmatprep.mubr.msk.bf16.mxu0 %vm853_vm0, %v852_v0  ;;  %769 = vmatprep.mubr.msk.bf16.mxu1 %vm853_vm0, %v852_v0 }
  0x42   :  { %718 = vmatmul.mubr.bf16.gmra.mxu0 %v835_v17  ;;  %770 = vmatmul.mubr.bf16.gmra.mxu1 %v836_v18 }
  0x43   :  { %721 = vmatprep.mubr.msk.bf16.mxu0 %vm853_vm0, %v852_v0  ;;  %773 = vmatprep.mubr.msk.bf16.mxu1 %vm853_vm0, %v852_v0 }
  0x4a   :  { %722 = vmatmul.mubr.bf16.gmra.mxu0 %v837_v19  ;;  %774 = vmatmul.mubr.bf16.gmra.mxu1 %v838_v20 }
  0x4b   :  { %725 = vmatprep.mubr.msk.bf16.mxu0 %vm853_vm0, %v852_v0  ;;  %777 = vmatprep.mubr.msk.bf16.mxu1 %vm853_vm0, %v852_v0 }
  0x52   :  { %726 = vmatmul.mubr.bf16.gmra.mxu0 %v839_v21  ;;  %778 = vmatmul.mubr.bf16.gmra.mxu1 %v840_v22 }
  0x53   :  { %729 = vmatprep.mubr.msk.bf16.mxu0 %vm853_vm0, %v852_v0  ;;  %781 = vmatprep.mubr.msk.bf16.mxu1 %vm853_vm0, %v852_v0 }
  0x5a   :  { %730 = vmatmul.mubr.bf16.gmra.mxu0 %v841_v23  ;;  %782 = vmatmul.mubr.bf16.gmra.mxu1 %v842_v24 }
  0x5b   :  { %733 = vmatprep.mubr.msk.bf16.mxu0 %vm853_vm0, %v852_v0  ;;  %785 = vmatprep.mubr.msk.bf16.mxu1 %vm853_vm0, %v852_v0 }
  0x62   :  { %734 = vmatmul.mubr.bf16.gmra.mxu0 %v843_v25  ;;  %786 = vmatmul.mubr.bf16.gmra.mxu1 %v844_v26 }
  0x63   :  { %737 = vmatprep.mubr.msk.bf16.mxu0 %vm853_vm0, %v852_v0  ;;  %789 = vmatprep.mubr.msk.bf16.mxu1 %vm853_vm0, %v852_v0 }
  0x6a   :  { %738 = vmatmul.mubr.bf16.gmra.mxu0 %v845_v27  ;;  %790 = vmatmul.mubr.bf16.gmra.mxu1 %v846_v28 }
  0x6b   :  { %741 = vmatprep.mubr.msk.bf16.mxu0 %vm853_vm0, %v852_v0  ;;  %793 = vmatprep.mubr.msk.bf16.mxu1 %vm853_vm0, %v852_v0 }
  0x72   :  { %742 = vmatmul.mubr.bf16.gmra.mxu0 %v847_v29  ;;  %794 = vmatmul.mubr.bf16.gmra.mxu1 %v848_v30 }
  0x73   :  { %745 = vmatprep.mubr.msk.bf16.mxu0 %vm853_vm0, %v852_v0  ;;  %797 = vmatprep.mubr.msk.bf16.mxu1 %vm853_vm0, %v852_v0 }
  0x7a   :  { %746 = vmatmul.mubr.bf16.gmra.mxu0 %v849_v31  ;;  %798 = vmatmul.mubr.bf16.gmra.mxu1 %v850_v32 }
  0x7b   :  { %749 = vmatprep.mubr.msk.bf16.mxu0 %vm853_vm0, %v852_v0 }
  0x82   :  { %750 = vmatmul.mubr.bf16.gmra.mxu0 %v851_v33 }
  0xe2   :  { %v317_v35 = vpop.f32.mrf.mxu0  ;;  %v421_v36 = vpop.f32.mrf.mxu1 }
  0xe3   :  { %v318_v37 = vadd.f32 %v1042_v34, %v317_v35  ;;  %v422_v38 = vadd.f32 %v1042_v34, %v421_v36 }
  0xe4   :  { %v703_v39 = vpop.f32.mrf.mxu0  ;;  %v755_v40 = vpop.f32.mrf.mxu1 }
  0xe5   :  { %v515_v41 = vmax.f32 %v318_v37, 0.0  ;;  %v541_v42 = vmax.f32 %v422_v38, 0.0 }
  0xe6   :  { %v320_v43 = vpop.f32.mrf.mxu0  ;;  %v424_v44 = vpop.f32.mrf.mxu1 }
  0xe7   :  { %565 = vst.msk [vmem:[%s1292_s3] sm:$0xff] %vm564_vm1, %v515_v41  ;;  %v321_v45 = vadd.f32 %v1042_v34, %v320_v43  ;;  %591 = vst.msk [vmem:[%s1292_s3 + $0xd0] sm:$0xff] %vm564_vm1, %v541_v42  ;;  %v425_v46 = vadd.f32 %v1042_v34, %v424_v44 }
  0xe8   :  { %v704_v47 = vpop.f32.mrf.mxu0  ;;  %v756_v48 = vpop.f32.mrf.mxu1 }
  0xe9   :  { %v516_v49 = vmax.f32 %v321_v45, 0.0  ;;  %v542_v50 = vmax.f32 %v425_v46, 0.0 }
  0xea   :  { %v325_v51 = vpop.f32.mrf.mxu0  ;;  %v429_v52 = vpop.f32.mrf.mxu1 }
  0xeb   :  { %566 = vst.msk [vmem:[%s1292_s3 + $0x8] sm:$0xff] %vm564_vm1, %v516_v49  ;;  %v326_v53 = vadd.f32 %v1042_v34, %v325_v51  ;;  %592 = vst.msk [vmem:[%s1292_s3 + $0xd8] sm:$0xff] %vm564_vm1, %v542_v50  ;;  %v430_v54 = vadd.f32 %v1042_v34, %v429_v52 }
  0xec   :  { %v707_v55 = vpop.f32.mrf.mxu0  ;;  %v759_v56 = vpop.f32.mrf.mxu1 }
  0xed   :  { %v517_v57 = vmax.f32 %v326_v53, 0.0  ;;  %v543_v58 = vmax.f32 %v430_v54, 0.0 }
  0xee   :  { %v328_v59 = vpop.f32.mrf.mxu0  ;;  %v432_v60 = vpop.f32.mrf.mxu1 }
  0xef   :  { %567 = vst.msk [vmem:[%s1292_s3 + $0x10] sm:$0xff] %vm564_vm1, %v517_v57  ;;  %v329_v61 = vadd.f32 %v1042_v34, %v328_v59  ;;  %593 = vst.msk [vmem:[%s1292_s3 + $0xe0] sm:$0xff] %vm564_vm1, %v543_v58  ;;  %v433_v62 = vadd.f32 %v1042_v34, %v432_v60 }
  0xf0   :  { %v708_v63 = vpop.f32.mrf.mxu0  ;;  %v760_v0 = vpop.f32.mrf.mxu1 }
  0xf1   :  { %v518_v1 = vmax.f32 %v329_v61, 0.0  ;;  %v544_v2 = vmax.f32 %v433_v62, 0.0 }
  0xf2   :  { %v333_v3 = vpop.f32.mrf.mxu0  ;;  %v437_v4 = vpop.f32.mrf.mxu1 }
  0xf3   :  { %568 = vst.msk [vmem:[%s1292_s3 + $0x18] sm:$0xff] %vm564_vm1, %v518_v1  ;;  %v334_v5 = vadd.f32 %v1042_v34, %v333_v3  ;;  %594 = vst.msk [vmem:[%s1292_s3 + $0xe8] sm:$0xff] %vm564_vm1, %v544_v2  ;;  %v438_v6 = vadd.f32 %v1042_v34, %v437_v4 }
  0xf4   :  { %v711_v7 = vpop.f32.mrf.mxu0  ;;  %v763_v8 = vpop.f32.mrf.mxu1 }
  0xf5   :  { %v519_v9 = vmax.f32 %v334_v5, 0.0  ;;  %v545_v10 = vmax.f32 %v438_v6, 0.0 }
  0xf6   :  { %v336_v11 = vpop.f32.mrf.mxu0  ;;  %v440_v12 = vpop.f32.mrf.mxu1 }
  0xf7   :  { %569 = vst.msk [vmem:[%s1292_s3 + $0x20] sm:$0xff] %vm564_vm1, %v519_v9  ;;  %v337_v13 = vadd.f32 %v1042_v34, %v336_v11  ;;  %595 = vst.msk [vmem:[%s1292_s3 + $0xf0] sm:$0xff] %vm564_vm1, %v545_v10  ;;  %v441_v14 = vadd.f32 %v1042_v34, %v440_v12 }
  0xf8   :  { %v712_v15 = vpop.f32.mrf.mxu0  ;;  %v764_v16 = vpop.f32.mrf.mxu1 }
  0xf9   :  { %v520_v17 = vmax.f32 %v337_v13, 0.0  ;;  %v546_v18 = vmax.f32 %v441_v14, 0.0 }
  0xfa   :  { %v341_v19 = vpop.f32.mrf.mxu0  ;;  %v445_v20 = vpop.f32.mrf.mxu1 }
  0xfb   :  { %570 = vst.msk [vmem:[%s1292_s3 + $0x28] sm:$0xff] %vm564_vm1, %v520_v17  ;;  %v342_v21 = vadd.f32 %v1042_v34, %v341_v19  ;;  %596 = vst.msk [vmem:[%s1292_s3 + $0xf8] sm:$0xff] %vm564_vm1, %v546_v18  ;;  %v446_v22 = vadd.f32 %v1042_v34, %v445_v20 }
  0xfc   :  { %v715_v23 = vpop.f32.mrf.mxu0  ;;  %v767_v24 = vpop.f32.mrf.mxu1 }
  0xfd   :  { %v521_v25 = vmax.f32 %v342_v21, 0.0  ;;  %v547_v26 = vmax.f32 %v446_v22, 0.0 }
  0xfe   :  { %v344_v27 = vpop.f32.mrf.mxu0  ;;  %v448_v28 = vpop.f32.mrf.mxu1 }
  0xff   :  { %571 = vst.msk [vmem:[%s1292_s3 + $0x30] sm:$0xff] %vm564_vm1, %v521_v25  ;;  %v345_v29 = vadd.f32 %v1042_v34, %v344_v27  ;;  %597 = vst.msk [vmem:[%s1292_s3 + $0x100] sm:$0xff] %vm564_vm1, %v547_v26  ;;  %v449_v30 = vadd.f32 %v1042_v34, %v448_v28 }
 0x100   :  { %v716_v31 = vpop.f32.mrf.mxu0  ;;  %v768_v32 = vpop.f32.mrf.mxu1 }
 0x101   :  { %v522_v33 = vmax.f32 %v345_v29, 0.0  ;;  %v548_v35 = vmax.f32 %v449_v30, 0.0 }
 0x102   :  { %v349_v36 = vpop.f32.mrf.mxu0  ;;  %v453_v37 = vpop.f32.mrf.mxu1 }
 0x103   :  { %572 = vst.msk [vmem:[%s1292_s3 + $0x38] sm:$0xff] %vm564_vm1, %v522_v33  ;;  %v350_v38 = vadd.f32 %v1042_v34, %v349_v36  ;;  %598 = vst.msk [vmem:[%s1292_s3 + $0x108] sm:$0xff] %vm564_vm1, %v548_v35  ;;  %v454_v39 = vadd.f32 %v1042_v34, %v453_v37 }
 0x104   :  { %v719_v40 = vpop.f32.mrf.mxu0  ;;  %v771_v41 = vpop.f32.mrf.mxu1 }
 0x105   :  { %v523_v42 = vmax.f32 %v350_v38, 0.0  ;;  %v549_v43 = vmax.f32 %v454_v39, 0.0 }
 0x106   :  { %v352_v44 = vpop.f32.mrf.mxu0  ;;  %v456_v45 = vpop.f32.mrf.mxu1 }
 0x107   :  { %573 = vst.msk [vmem:[%s1292_s3 + $0x40] sm:$0xff] %vm564_vm1, %v523_v42  ;;  %v353_v46 = vadd.f32 %v1042_v34, %v352_v44  ;;  %599 = vst.msk [vmem:[%s1292_s3 + $0x110] sm:$0xff] %vm564_vm1, %v549_v43  ;;  %v457_v47 = vadd.f32 %v1042_v34, %v456_v45 }
 0x108   :  { %v720_v48 = vpop.f32.mrf.mxu0  ;;  %v772_v49 = vpop.f32.mrf.mxu1 }
 0x109   :  { %v524_v50 = vmax.f32 %v353_v46, 0.0  ;;  %v550_v51 = vmax.f32 %v457_v47, 0.0 }
 0x10a   :  { %v357_v52 = vpop.f32.mrf.mxu0  ;;  %v461_v53 = vpop.f32.mrf.mxu1 }
 0x10b   :  { %574 = vst.msk [vmem:[%s1292_s3 + $0x48] sm:$0xff] %vm564_vm1, %v524_v50  ;;  %v358_v54 = vadd.f32 %v1042_v34, %v357_v52  ;;  %600 = vst.msk [vmem:[%s1292_s3 + $0x118] sm:$0xff] %vm564_vm1, %v550_v51  ;;  %v462_v55 = vadd.f32 %v1042_v34, %v461_v53 }
 0x10c   :  { %v723_v56 = vpop.f32.mrf.mxu0  ;;  %v775_v57 = vpop.f32.mrf.mxu1 }
 0x10d   :  { %v525_v58 = vmax.f32 %v358_v54, 0.0  ;;  %v551_v59 = vmax.f32 %v462_v55, 0.0 }
 0x10e   :  { %v360_v60 = vpop.f32.mrf.mxu0  ;;  %v464_v61 = vpop.f32.mrf.mxu1 }
 0x10f   :  { %575 = vst.msk [vmem:[%s1292_s3 + $0x50] sm:$0xff] %vm564_vm1, %v525_v58  ;;  %v361_v62 = vadd.f32 %v1042_v34, %v360_v60  ;;  %601 = vst.msk [vmem:[%s1292_s3 + $0x120] sm:$0xff] %vm564_vm1, %v551_v59  ;;  %v465_v63 = vadd.f32 %v1042_v34, %v464_v61 }
 0x110   :  { %v724_v0 = vpop.f32.mrf.mxu0  ;;  %v776_v1 = vpop.f32.mrf.mxu1 }
 0x111   :  { %v526_v2 = vmax.f32 %v361_v62, 0.0  ;;  %v552_v3 = vmax.f32 %v465_v63, 0.0 }
 0x112   :  { %v365_v4 = vpop.f32.mrf.mxu0  ;;  %v469_v5 = vpop.f32.mrf.mxu1 }
 0x113   :  { %576 = vst.msk [vmem:[%s1292_s3 + $0x58] sm:$0xff] %vm564_vm1, %v526_v2  ;;  %v366_v6 = vadd.f32 %v1042_v34, %v365_v4  ;;  %602 = vst.msk [vmem:[%s1292_s3 + $0x128] sm:$0xff] %vm564_vm1, %v552_v3  ;;  %v470_v7 = vadd.f32 %v1042_v34, %v469_v5 }
 0x114   :  { %v727_v8 = vpop.f32.mrf.mxu0  ;;  %v779_v9 = vpop.f32.mrf.mxu1 }
 0x115   :  { %v527_v10 = vmax.f32 %v366_v6, 0.0  ;;  %v553_v11 = vmax.f32 %v470_v7, 0.0 }
 0x116   :  { %v368_v12 = vpop.f32.mrf.mxu0  ;;  %v472_v13 = vpop.f32.mrf.mxu1 }
 0x117   :  { %577 = vst.msk [vmem:[%s1292_s3 + $0x60] sm:$0xff] %vm564_vm1, %v527_v10  ;;  %v369_v14 = vadd.f32 %v1042_v34, %v368_v12  ;;  %603 = vst.msk [vmem:[%s1292_s3 + $0x130] sm:$0xff] %vm564_vm1, %v553_v11  ;;  %v473_v15 = vadd.f32 %v1042_v34, %v472_v13 }
 0x118   :  { %v728_v16 = vpop.f32.mrf.mxu0  ;;  %v780_v17 = vpop.f32.mrf.mxu1 }
 0x119   :  { %v528_v18 = vmax.f32 %v369_v14, 0.0  ;;  %v554_v19 = vmax.f32 %v473_v15, 0.0 }
 0x11a   :  { %v373_v20 = vpop.f32.mrf.mxu0  ;;  %v477_v21 = vpop.f32.mrf.mxu1 }
 0x11b   :  { %578 = vst.msk [vmem:[%s1292_s3 + $0x68] sm:$0xff] %vm564_vm1, %v528_v18  ;;  %v374_v22 = vadd.f32 %v1042_v34, %v373_v20  ;;  %604 = vst.msk [vmem:[%s1292_s3 + $0x138] sm:$0xff] %vm564_vm1, %v554_v19  ;;  %v478_v23 = vadd.f32 %v1042_v34, %v477_v21 }
 0x11c   :  { %v731_v24 = vpop.f32.mrf.mxu0  ;;  %v783_v25 = vpop.f32.mrf.mxu1 }
 0x11d   :  { %v529_v26 = vmax.f32 %v374_v22, 0.0  ;;  %v555_v27 = vmax.f32 %v478_v23, 0.0 }
 0x11e   :  { %v376_v28 = vpop.f32.mrf.mxu0  ;;  %v480_v29 = vpop.f32.mrf.mxu1 }
 0x11f   :  { %579 = vst.msk [vmem:[%s1292_s3 + $0x70] sm:$0xff] %vm564_vm1, %v529_v26  ;;  %v377_v30 = vadd.f32 %v1042_v34, %v376_v28  ;;  %605 = vst.msk [vmem:[%s1292_s3 + $0x140] sm:$0xff] %vm564_vm1, %v555_v27  ;;  %v481_v31 = vadd.f32 %v1042_v34, %v480_v29 }
 0x120   :  { %v732_v32 = vpop.f32.mrf.mxu0  ;;  %v784_v33 = vpop.f32.mrf.mxu1 }
 0x121   :  { %v530_v35 = vmax.f32 %v377_v30, 0.0  ;;  %v556_v36 = vmax.f32 %v481_v31, 0.0 }
 0x122   :  { %v381_v37 = vpop.f32.mrf.mxu0  ;;  %v485_v38 = vpop.f32.mrf.mxu1 }
 0x123   :  { %580 = vst.msk [vmem:[%s1292_s3 + $0x78] sm:$0xff] %vm564_vm1, %v530_v35  ;;  %v382_v39 = vadd.f32 %v1042_v34, %v381_v37  ;;  %606 = vst.msk [vmem:[%s1292_s3 + $0x148] sm:$0xff] %vm564_vm1, %v556_v36  ;;  %v486_v40 = vadd.f32 %v1042_v34, %v485_v38 }
 0x124   :  { %v735_v41 = vpop.f32.mrf.mxu0  ;;  %v787_v42 = vpop.f32.mrf.mxu1 }
 0x125   :  { %v531_v43 = vmax.f32 %v382_v39, 0.0  ;;  %v557_v44 = vmax.f32 %v486_v40, 0.0 }
 0x126   :  { %v384_v45 = vpop.f32.mrf.mxu0  ;;  %v488_v46 = vpop.f32.mrf.mxu1 }
 0x127   :  { %581 = vst.msk [vmem:[%s1292_s3 + $0x80] sm:$0xff] %vm564_vm1, %v531_v43  ;;  %v385_v47 = vadd.f32 %v1042_v34, %v384_v45  ;;  %607 = vst.msk [vmem:[%s1292_s3 + $0x150] sm:$0xff] %vm564_vm1, %v557_v44  ;;  %v489_v48 = vadd.f32 %v1042_v34, %v488_v46 }
 0x128   :  { %v736_v49 = vpop.f32.mrf.mxu0  ;;  %v788_v50 = vpop.f32.mrf.mxu1 }
 0x129   :  { %v532_v51 = vmax.f32 %v385_v47, 0.0  ;;  %v558_v52 = vmax.f32 %v489_v48, 0.0 }
 0x12a   :  { %v389_v53 = vpop.f32.mrf.mxu0  ;;  %v493_v54 = vpop.f32.mrf.mxu1 }
 0x12b   :  { %582 = vst.msk [vmem:[%s1292_s3 + $0x88] sm:$0xff] %vm564_vm1, %v532_v51  ;;  %v390_v55 = vadd.f32 %v1042_v34, %v389_v53  ;;  %608 = vst.msk [vmem:[%s1292_s3 + $0x158] sm:$0xff] %vm564_vm1, %v558_v52  ;;  %v494_v56 = vadd.f32 %v1042_v34, %v493_v54 }
 0x12c   :  { %v739_v57 = vpop.f32.mrf.mxu0  ;;  %v791_v58 = vpop.f32.mrf.mxu1 }
 0x12d   :  { %v533_v59 = vmax.f32 %v390_v55, 0.0  ;;  %v559_v60 = vmax.f32 %v494_v56, 0.0 }
 0x12e   :  { %v392_v61 = vpop.f32.mrf.mxu0  ;;  %v496_v62 = vpop.f32.mrf.mxu1 }
 0x12f   :  { %583 = vst.msk [vmem:[%s1292_s3 + $0x90] sm:$0xff] %vm564_vm1, %v533_v59  ;;  %v393_v63 = vadd.f32 %v1042_v34, %v392_v61  ;;  %609 = vst.msk [vmem:[%s1292_s3 + $0x160] sm:$0xff] %vm564_vm1, %v559_v60  ;;  %v497_v0 = vadd.f32 %v1042_v34, %v496_v62 }
 0x130   :  { %v740_v1 = vpop.f32.mrf.mxu0  ;;  %v792_v2 = vpop.f32.mrf.mxu1 }
 0x131   :  { %v534_v3 = vmax.f32 %v393_v63, 0.0  ;;  %v560_v4 = vmax.f32 %v497_v0, 0.0 }
 0x132   :  { %v397_v5 = vpop.f32.mrf.mxu0  ;;  %v501_v6 = vpop.f32.mrf.mxu1 }
 0x133   :  { %584 = vst.msk [vmem:[%s1292_s3 + $0x98] sm:$0xff] %vm564_vm1, %v534_v3  ;;  %v398_v7 = vadd.f32 %v1042_v34, %v397_v5  ;;  %610 = vst.msk [vmem:[%s1292_s3 + $0x168] sm:$0xff] %vm564_vm1, %v560_v4  ;;  %v502_v8 = vadd.f32 %v1042_v34, %v501_v6 }
 0x134   :  { %v743_v9 = vpop.f32.mrf.mxu0  ;;  %v795_v10 = vpop.f32.mrf.mxu1 }
 0x135   :  { %v535_v11 = vmax.f32 %v398_v7, 0.0  ;;  %v561_v12 = vmax.f32 %v502_v8, 0.0 }
 0x136   :  { %v400_v13 = vpop.f32.mrf.mxu0  ;;  %v504_v14 = vpop.f32.mrf.mxu1 }
 0x137   :  { %585 = vst.msk [vmem:[%s1292_s3 + $0xa0] sm:$0xff] %vm564_vm1, %v535_v11  ;;  %v401_v15 = vadd.f32 %v1042_v34, %v400_v13  ;;  %611 = vst.msk [vmem:[%s1292_s3 + $0x170] sm:$0xff] %vm564_vm1, %v561_v12  ;;  %v505_v16 = vadd.f32 %v1042_v34, %v504_v14 }
 0x138   :  { %v744_v17 = vpop.f32.mrf.mxu0  ;;  %v796_v18 = vpop.f32.mrf.mxu1 }
 0x139   :  { %v536_v19 = vmax.f32 %v401_v15, 0.0  ;;  %v562_v20 = vmax.f32 %v505_v16, 0.0 }
 0x13a   :  { %v405_v21 = vpop.f32.mrf.mxu0  ;;  %v509_v22 = vpop.f32.mrf.mxu1 }
 0x13b   :  { %586 = vst.msk [vmem:[%s1292_s3 + $0xa8] sm:$0xff] %vm564_vm1, %v536_v19  ;;  %v406_v23 = vadd.f32 %v1042_v34, %v405_v21  ;;  %612 = vst.msk [vmem:[%s1292_s3 + $0x178] sm:$0xff] %vm564_vm1, %v562_v20  ;;  %v510_v24 = vadd.f32 %v1042_v34, %v509_v22 }
 0x13c   :  { %v747_v25 = vpop.f32.mrf.mxu0  ;;  %v799_v26 = vpop.f32.mrf.mxu1 }
 0x13d   :  { %v537_v27 = vmax.f32 %v406_v23, 0.0  ;;  %v563_v28 = vmax.f32 %v510_v24, 0.0 }
 0x13e   :  { %v408_v29 = vpop.f32.mrf.mxu0  ;;  %v512_v30 = vpop.f32.mrf.mxu1 }
 0x13f   :  { %587 = vst.msk [vmem:[%s1292_s3 + $0xb0] sm:$0xff] %vm564_vm1, %v537_v27  ;;  %v409_v31 = vadd.f32 %v1042_v34, %v408_v29  ;;  %613 = vst.msk [vmem:[%s1292_s3 + $0x180] sm:$0xff] %vm564_vm1, %v563_v28 }
 0x140   :  { %v748_v32 = vpop.f32.mrf.mxu0  ;;  %v800_v33 = vpop.f32.mrf.mxu1 }
 0x141   :  { %v538_v35 = vmax.f32 %v409_v31, 0.0 }
 0x142   :  { %v413_v36 = vpop.f32.mrf.mxu0 }
 0x143   :  { %588 = vst.msk [vmem:[%s1292_s3 + $0xb8] sm:$0xff] %vm564_vm1, %v538_v35  ;;  %v414_v37 = vadd.f32 %v1042_v34, %v413_v36 }
 0x144   :  { %v751_v38 = vpop.f32.mrf.mxu0 }
 0x145   :  { %v539_v39 = vmax.f32 %v414_v37, 0.0 }
 0x146   :  { %v416_v40 = vpop.f32.mrf.mxu0 }
 0x147   :  { %589 = vst.msk [vmem:[%s1292_s3 + $0xc0] sm:$0xff] %vm564_vm1, %v539_v39  ;;  %v417_v41 = vadd.f32 %v1042_v34, %v416_v40 }
 0x148   :  { %v752_v42 = vpop.f32.mrf.mxu0 }
 0x149   :  { %v540_v43 = vmax.f32 %v417_v41, 0.0 }
 0x14b   :  { %590 = vst.msk [vmem:[%s1292_s3 + $0xc8] sm:$0xff] %vm564_vm1, %v540_v43 }

// kernel: vsc_forward.11
= control target key start
LH: loop header
LB: loop body
LE: loop exit
PB: predicated region body
PF: predicated region fallthrough
CT: control target
= control target key end

     0   :  { %s2834_s12 = smov 0   ;;  %s3379_s0 = inlined_call_operand.vmem [shape: bf16[1568,64], index: 0, kind: input, shape index: {}]   ;;  %s3380_s1 = inlined_call_operand.vmem [shape: bf16[64,4], index: 1, kind: input, shape index: {}]   ;;  %s3381_s2 = inlined_call_operand.vmem [shape: f32[1,4], index: 2, kind: input, shape index: {}]   ;;  %s3382_s3 = inlined_call_operand.vmem [shape: f32[1568,4], index: 3, kind: output, shape index: {}]  }
   0x1 LB: > { %s1873_s13 = sadd.s32 4294967295, %s2810_s12   ;;  %p1877_p0 = scmp.ge.s32.totalorder %s2810_s12, 1  ;;  %s2810_s12 = sphi %s2834_s12, %s13_s12  }
   0x2   : > { %p138_p1 = scmp.lt.s32.totalorder %s2810_s12, 3 }
   0x4   : > { %p139_p2 = pnand %p1877_p0, %p138_p1 }
   0x5   : > { %s162_s18 = smul.u32 (!%p139_p2), 98, %s1873_s13 }
   0x6   : > { %142 = sbr.rel (%p139_p2) target bundleno = 452 (0x1c4), region = 32 }
   0x7   : > { %p163_p3 = scmp.lt.s32.totalorder (!%p139_p2), %s162_s18, 195 }
   0xb   : > { %v2358_v0 = vld [vmem:[%s3380_s1 + $0x18] sm:$0xff]   ;;  %v2812_v1 = vmov 0.0   ;;  %v2359_v2 = vld [vmem:[%s3380_s1 + $0x10] sm:$0xff]   ;;  %vm2813_vm0 = vmmov 0   ;;  %v2360_v3 = vld [vmem:[%s3380_s1 + $0x8] sm:$0xff]   ;;  %s3384_s18 = smov (!%p163_p3, %s162_s18), 195 }
   0xc   : > { %2136 = vmatprep.subr.bf16.mxu0 %v2812_v1  ;;  %2340 = vmatprep.subr.bf16.mxu1 %v2812_v1  ;;  %s1878_s21 = sshll.u32 %s3384_s18, 2  ;;  %v2361_v4 = vld [vmem:[%s3380_s1] sm:$0xff]   ;;  %vm557_vm1 = vcmask 523264   ;;  %s1879_s29 = sshll.u32 %s3384_s18, 3  ;;  %vm1718_vm2 = vcmask 31744  }
   0xd   : > { %2137 = vmatpush3.bf16.msra.mxu0 %v2358_v0  ;;  %2344 = vmatpush3.bf16.msra.mxu1 %v2358_v0  ;;  %s2867_s24 = scalar_lea.vmem %s3379_s0, %s1878_s21  ;;  %v3068_v54 = vld [vmem:[%s3381_s2] ss:$0 sm:$0xff]  ;;  %s3091_s5 = scalar_lea.vmem %s3382_s3, %s1879_s29 }
   0xe   : > { %2138 = vmatprep.subr.bf16.mxu0 %v2812_v1  ;;  %2341 = vmatprep.subr.bf16.mxu1 %v2812_v1  ;;  %v2362_v5 = vld [vmem:[%s2867_s24] sm:$0xff]   ;;  %v2363_v6 = vld [vmem:[%s2867_s24 + $0xc8] sm:$0xff]   ;;  %v2365_v8 = vld [vmem:[%s2867_s24 + $0xd0] sm:$0xff]  }
   0xf   : > { %2144 = vmatprep.mubr.msk.bf16.mxu0 %vm2813_vm0, %v2812_v1  ;;  %2244 = vmatprep.mubr.msk.bf16.mxu1 %vm2813_vm0, %v2812_v1  ;;  %v2364_v7 = vld [vmem:[%s2867_s24 + $0x8] sm:$0xff]   ;;  %v2366_v9 = vld [vmem:[%s2867_s24 + $0x10] sm:$0xff]   ;;  %v2367_v10 = vld [vmem:[%s2867_s24 + $0xd8] sm:$0xff]  }
  0x10   : > { %v2368_v11 = vld [vmem:[%s2867_s24 + $0x18] sm:$0xff]   ;;  %v2369_v12 = vld [vmem:[%s2867_s24 + $0xe0] sm:$0xff]   ;;  %v2371_v14 = vld [vmem:[%s2867_s24 + $0xe8] sm:$0xff]  }
  0x11   : > { %2139 = vmatpush3.bf16.msra.mxu0 %v2359_v2  ;;  %2345 = vmatpush3.bf16.msra.mxu1 %v2359_v2  ;;  %v2370_v13 = vld [vmem:[%s2867_s24 + $0x20] sm:$0xff]   ;;  %v2372_v15 = vld [vmem:[%s2867_s24 + $0x28] sm:$0xff]   ;;  %v2373_v16 = vld [vmem:[%s2867_s24 + $0xf0] sm:$0xff]  }
  0x12   : > { %2140 = vmatprep.subr.bf16.mxu0 %v2812_v1  ;;  %2342 = vmatprep.subr.bf16.mxu1 %v2812_v1  ;;  %v2374_v17 = vld [vmem:[%s2867_s24 + $0x30] sm:$0xff]   ;;  %v2375_v18 = vld [vmem:[%s2867_s24 + $0xf8] sm:$0xff]   ;;  %v2377_v20 = vld [vmem:[%s2867_s24 + $0x100] sm:$0xff]  }
  0x13   : > { %v2376_v19 = vld [vmem:[%s2867_s24 + $0x38] sm:$0xff]   ;;  %v2378_v21 = vld [vmem:[%s2867_s24 + $0x40] sm:$0xff]   ;;  %v2379_v22 = vld [vmem:[%s2867_s24 + $0x108] sm:$0xff]  }
  0x14   : > { %v2380_v23 = vld [vmem:[%s2867_s24 + $0x48] sm:$0xff]   ;;  %v2381_v24 = vld [vmem:[%s2867_s24 + $0x110] sm:$0xff]   ;;  %v2383_v26 = vld [vmem:[%s2867_s24 + $0x118] sm:$0xff]  }
  0x15   : > { %2141 = vmatpush3.bf16.msra.mxu0 %v2360_v3  ;;  %2346 = vmatpush3.bf16.msra.mxu1 %v2360_v3  ;;  %v2382_v25 = vld [vmem:[%s2867_s24 + $0x50] sm:$0xff]   ;;  %v2384_v27 = vld [vmem:[%s2867_s24 + $0x58] sm:$0xff]   ;;  %v2385_v28 = vld [vmem:[%s2867_s24 + $0x120] sm:$0xff]  }
  0x16   : > { %2142 = vmatprep.subr.bf16.mxu0 %v2812_v1  ;;  %2343 = vmatprep.subr.bf16.mxu1 %v2812_v1  ;;  %v2386_v29 = vld [vmem:[%s2867_s24 + $0x60] sm:$0xff]   ;;  %v2387_v30 = vld [vmem:[%s2867_s24 + $0x128] sm:$0xff]   ;;  %v2389_v32 = vld [vmem:[%s2867_s24 + $0x130] sm:$0xff]  }
  0x17   : > { %v2388_v31 = vld [vmem:[%s2867_s24 + $0x68] sm:$0xff]   ;;  %v2390_v33 = vld [vmem:[%s2867_s24 + $0x70] sm:$0xff]   ;;  %v2391_v34 = vld [vmem:[%s2867_s24 + $0x138] sm:$0xff]  }
  0x18   : > { %v2392_v35 = vld [vmem:[%s2867_s24 + $0x78] sm:$0xff]   ;;  %v2393_v36 = vld [vmem:[%s2867_s24 + $0x140] sm:$0xff]   ;;  %v2395_v38 = vld [vmem:[%s2867_s24 + $0x148] sm:$0xff]  }
  0x19   : > { %2143 = vmatpush3.bf16.msra.mxu0 %v2361_v4  ;;  %2347 = vmatpush3.bf16.msra.mxu1 %v2361_v4  ;;  %v2394_v37 = vld [vmem:[%s2867_s24 + $0x80] sm:$0xff]   ;;  %v2396_v39 = vld [vmem:[%s2867_s24 + $0x88] sm:$0xff]   ;;  %v2397_v40 = vld [vmem:[%s2867_s24 + $0x150] sm:$0xff]  }
  0x1a   : > { %v2398_v41 = vld [vmem:[%s2867_s24 + $0x90] sm:$0xff]   ;;  %v2399_v42 = vld [vmem:[%s2867_s24 + $0x158] sm:$0xff]   ;;  %v2401_v44 = vld [vmem:[%s2867_s24 + $0x160] sm:$0xff]  }
  0x1b   : > { %v2400_v43 = vld [vmem:[%s2867_s24 + $0x98] sm:$0xff]   ;;  %v2402_v45 = vld [vmem:[%s2867_s24 + $0xa0] sm:$0xff]   ;;  %v2403_v46 = vld [vmem:[%s2867_s24 + $0x168] sm:$0xff]  }
  0x1c   : > { %2145 = vmatmul.mubr.msk.bf16.vlgmr.msra.gmra.mxu0 %vm557_vm1, %v2362_v5  ;;  %2245 = vmatmul.mubr.msk.bf16.vlgmr.msra.gmra.mxu1 %vm557_vm1, %v2363_v6  ;;  %v2404_v47 = vld [vmem:[%s2867_s24 + $0xa8] sm:$0xff]   ;;  %v2405_v48 = vld [vmem:[%s2867_s24 + $0x170] sm:$0xff]   ;;  %v2407_v50 = vld [vmem:[%s2867_s24 + $0x178] sm:$0xff]  }
  0x1d   : > { %2148 = vmatprep.mubr.msk.bf16.mxu0 %vm2813_vm0, %v2812_v1  ;;  %2248 = vmatprep.mubr.msk.bf16.mxu1 %vm2813_vm0, %v2812_v1  ;;  %v2406_v49 = vld [vmem:[%s2867_s24 + $0xb0] sm:$0xff]   ;;  %v2408_v51 = vld [vmem:[%s2867_s24 + $0xb8] sm:$0xff]   ;;  %v2409_v52 = vld [vmem:[%s2867_s24 + $0x180] sm:$0xff]  }
  0x1e   : > { %v2410_v53 = vld [vmem:[%s2867_s24 + $0xc0] sm:$0xff]  }
  0x24   : > { %2149 = vmatmul.mubr.msk.bf16.gmra.mxu0 %vm557_vm1, %v2364_v7  ;;  %2249 = vmatmul.mubr.msk.bf16.gmra.mxu1 %vm557_vm1, %v2365_v8 }
  0x25   : > { %2152 = vmatprep.mubr.msk.bf16.mxu0 %vm2813_vm0, %v2812_v1  ;;  %2252 = vmatprep.mubr.msk.bf16.mxu1 %vm2813_vm0, %v2812_v1 }
  0x2c   : > { %2153 = vmatmul.mubr.msk.bf16.gmra.mxu0 %vm557_vm1, %v2366_v9  ;;  %2253 = vmatmul.mubr.msk.bf16.gmra.mxu1 %vm557_vm1, %v2367_v10 }
  0x2d   : > { %2156 = vmatprep.mubr.msk.bf16.mxu0 %vm2813_vm0, %v2812_v1  ;;  %2256 = vmatprep.mubr.msk.bf16.mxu1 %vm2813_vm0, %v2812_v1 }
  0x34   : > { %2157 = vmatmul.mubr.msk.bf16.gmra.mxu0 %vm557_vm1, %v2368_v11  ;;  %2257 = vmatmul.mubr.msk.bf16.gmra.mxu1 %vm557_vm1, %v2369_v12 }
  0x35   : > { %2160 = vmatprep.mubr.msk.bf16.mxu0 %vm2813_vm0, %v2812_v1  ;;  %2260 = vmatprep.mubr.msk.bf16.mxu1 %vm2813_vm0, %v2812_v1 }
  0x3c   : > { %2161 = vmatmul.mubr.msk.bf16.gmra.mxu0 %vm557_vm1, %v2370_v13  ;;  %2261 = vmatmul.mubr.msk.bf16.gmra.mxu1 %vm557_vm1, %v2371_v14 }
  0x3d   : > { %2164 = vmatprep.mubr.msk.bf16.mxu0 %vm2813_vm0, %v2812_v1  ;;  %2264 = vmatprep.mubr.msk.bf16.mxu1 %vm2813_vm0, %v2812_v1 }
  0x44   : > { %2165 = vmatmul.mubr.msk.bf16.gmra.mxu0 %vm557_vm1, %v2372_v15  ;;  %2265 = vmatmul.mubr.msk.bf16.gmra.mxu1 %vm557_vm1, %v2373_v16 }
  0x45   : > { %2168 = vmatprep.mubr.msk.bf16.mxu0 %vm2813_vm0, %v2812_v1  ;;  %2268 = vmatprep.mubr.msk.bf16.mxu1 %vm2813_vm0, %v2812_v1 }
  0x4c   : > { %2169 = vmatmul.mubr.msk.bf16.gmra.mxu0 %vm557_vm1, %v2374_v17  ;;  %2269 = vmatmul.mubr.msk.bf16.gmra.mxu1 %vm557_vm1, %v2375_v18 }
  0x4d   : > { %2172 = vmatprep.mubr.msk.bf16.mxu0 %vm2813_vm0, %v2812_v1  ;;  %2272 = vmatprep.mubr.msk.bf16.mxu1 %vm2813_vm0, %v2812_v1 }
  0x54   : > { %2173 = vmatmul.mubr.msk.bf16.gmra.mxu0 %vm557_vm1, %v2376_v19  ;;  %2273 = vmatmul.mubr.msk.bf16.gmra.mxu1 %vm557_vm1, %v2377_v20 }
  0x55   : > { %2176 = vmatprep.mubr.msk.bf16.mxu0 %vm2813_vm0, %v2812_v1  ;;  %2276 = vmatprep.mubr.msk.bf16.mxu1 %vm2813_vm0, %v2812_v1 }
  0x5c   : > { %2177 = vmatmul.mubr.msk.bf16.gmra.mxu0 %vm557_vm1, %v2378_v21  ;;  %2277 = vmatmul.mubr.msk.bf16.gmra.mxu1 %vm557_vm1, %v2379_v22 }
  0x5d   : > { %2180 = vmatprep.mubr.msk.bf16.mxu0 %vm2813_vm0, %v2812_v1  ;;  %2280 = vmatprep.mubr.msk.bf16.mxu1 %vm2813_vm0, %v2812_v1 }
  0x64   : > { %2181 = vmatmul.mubr.msk.bf16.gmra.mxu0 %vm557_vm1, %v2380_v23  ;;  %2281 = vmatmul.mubr.msk.bf16.gmra.mxu1 %vm557_vm1, %v2381_v24 }
  0x65   : > { %2184 = vmatprep.mubr.msk.bf16.mxu0 %vm2813_vm0, %v2812_v1  ;;  %2284 = vmatprep.mubr.msk.bf16.mxu1 %vm2813_vm0, %v2812_v1 }
  0x6c   : > { %2185 = vmatmul.mubr.msk.bf16.gmra.mxu0 %vm557_vm1, %v2382_v25  ;;  %2285 = vmatmul.mubr.msk.bf16.gmra.mxu1 %vm557_vm1, %v2383_v26 }
  0x6d   : > { %2188 = vmatprep.mubr.msk.bf16.mxu0 %vm2813_vm0, %v2812_v1  ;;  %2288 = vmatprep.mubr.msk.bf16.mxu1 %vm2813_vm0, %v2812_v1 }
  0x74   : > { %2189 = vmatmul.mubr.msk.bf16.gmra.mxu0 %vm557_vm1, %v2384_v27  ;;  %2289 = vmatmul.mubr.msk.bf16.gmra.mxu1 %vm557_vm1, %v2385_v28 }
  0x75   : > { %2192 = vmatprep.mubr.msk.bf16.mxu0 %vm2813_vm0, %v2812_v1  ;;  %2292 = vmatprep.mubr.msk.bf16.mxu1 %vm2813_vm0, %v2812_v1 }
  0x7c   : > { %2193 = vmatmul.mubr.msk.bf16.gmra.mxu0 %vm557_vm1, %v2386_v29  ;;  %2293 = vmatmul.mubr.msk.bf16.gmra.mxu1 %vm557_vm1, %v2387_v30 }
  0x7d   : > { %2196 = vmatprep.mubr.msk.bf16.mxu0 %vm2813_vm0, %v2812_v1  ;;  %2296 = vmatprep.mubr.msk.bf16.mxu1 %vm2813_vm0, %v2812_v1 }
  0x84   : > { %2197 = vmatmul.mubr.msk.bf16.gmra.mxu0 %vm557_vm1, %v2388_v31  ;;  %2297 = vmatmul.mubr.msk.bf16.gmra.mxu1 %vm557_vm1, %v2389_v32 }
  0x85   : > { %2200 = vmatprep.mubr.msk.bf16.mxu0 %vm2813_vm0, %v2812_v1  ;;  %2300 = vmatprep.mubr.msk.bf16.mxu1 %vm2813_vm0, %v2812_v1 }
  0x8c   : > { %2201 = vmatmul.mubr.msk.bf16.gmra.mxu0 %vm557_vm1, %v2390_v33  ;;  %2301 = vmatmul.mubr.msk.bf16.gmra.mxu1 %vm557_vm1, %v2391_v34 }
  0x8d   : > { %2204 = vmatprep.mubr.msk.bf16.mxu0 %vm2813_vm0, %v2812_v1  ;;  %2304 = vmatprep.mubr.msk.bf16.mxu1 %vm2813_vm0, %v2812_v1 }
  0x94   : > { %2205 = vmatmul.mubr.msk.bf16.gmra.mxu0 %vm557_vm1, %v2392_v35  ;;  %2305 = vmatmul.mubr.msk.bf16.gmra.mxu1 %vm557_vm1, %v2393_v36 }
  0x95   : > { %2208 = vmatprep.mubr.msk.bf16.mxu0 %vm2813_vm0, %v2812_v1  ;;  %2308 = vmatprep.mubr.msk.bf16.mxu1 %vm2813_vm0, %v2812_v1 }
  0x9c   : > { %2209 = vmatmul.mubr.msk.bf16.gmra.mxu0 %vm557_vm1, %v2394_v37  ;;  %2309 = vmatmul.mubr.msk.bf16.gmra.mxu1 %vm557_vm1, %v2395_v38 }
  0x9d   : > { %2212 = vmatprep.mubr.msk.bf16.mxu0 %vm2813_vm0, %v2812_v1  ;;  %2312 = vmatprep.mubr.msk.bf16.mxu1 %vm2813_vm0, %v2812_v1 }
  0xa4   : > { %2213 = vmatmul.mubr.msk.bf16.gmra.mxu0 %vm557_vm1, %v2396_v39  ;;  %2313 = vmatmul.mubr.msk.bf16.gmra.mxu1 %vm557_vm1, %v2397_v40 }
  0xa5   : > { %2216 = vmatprep.mubr.msk.bf16.mxu0 %vm2813_vm0, %v2812_v1  ;;  %2316 = vmatprep.mubr.msk.bf16.mxu1 %vm2813_vm0, %v2812_v1 }
  0xac   : > { %2217 = vmatmul.mubr.msk.bf16.gmra.mxu0 %vm557_vm1, %v2398_v41  ;;  %2317 = vmatmul.mubr.msk.bf16.gmra.mxu1 %vm557_vm1, %v2399_v42 }
  0xad   : > { %2220 = vmatprep.mubr.msk.bf16.mxu0 %vm2813_vm0, %v2812_v1  ;;  %2320 = vmatprep.mubr.msk.bf16.mxu1 %vm2813_vm0, %v2812_v1 }
  0xb4   : > { %2221 = vmatmul.mubr.msk.bf16.gmra.mxu0 %vm557_vm1, %v2400_v43  ;;  %2321 = vmatmul.mubr.msk.bf16.gmra.mxu1 %vm557_vm1, %v2401_v44 }
  0xb5   : > { %2224 = vmatprep.mubr.msk.bf16.mxu0 %vm2813_vm0, %v2812_v1  ;;  %2324 = vmatprep.mubr.msk.bf16.mxu1 %vm2813_vm0, %v2812_v1 }
  0xbc   : > { %2225 = vmatmul.mubr.msk.bf16.gmra.mxu0 %vm557_vm1, %v2402_v45  ;;  %2325 = vmatmul.mubr.msk.bf16.gmra.mxu1 %vm557_vm1, %v2403_v46 }
  0xbd   : > { %2228 = vmatprep.mubr.msk.bf16.mxu0 %vm2813_vm0, %v2812_v1  ;;  %2328 = vmatprep.mubr.msk.bf16.mxu1 %vm2813_vm0, %v2812_v1 }
  0xc4   : > { %2229 = vmatmul.mubr.msk.bf16.gmra.mxu0 %vm557_vm1, %v2404_v47  ;;  %2329 = vmatmul.mubr.msk.bf16.gmra.mxu1 %vm557_vm1, %v2405_v48 }
  0xc5   : > { %2232 = vmatprep.mubr.msk.bf16.mxu0 %vm2813_vm0, %v2812_v1  ;;  %2332 = vmatprep.mubr.msk.bf16.mxu1 %vm2813_vm0, %v2812_v1 }
  0xcc   : > { %2233 = vmatmul.mubr.msk.bf16.gmra.mxu0 %vm557_vm1, %v2406_v49  ;;  %2333 = vmatmul.mubr.msk.bf16.gmra.mxu1 %vm557_vm1, %v2407_v50 }
  0xcd   : > { %2236 = vmatprep.mubr.msk.bf16.mxu0 %vm2813_vm0, %v2812_v1  ;;  %2336 = vmatprep.mubr.msk.bf16.mxu1 %vm2813_vm0, %v2812_v1 }
  0xd4   : > { %2237 = vmatmul.mubr.msk.bf16.gmra.mxu0 %vm557_vm1, %v2408_v51  ;;  %2337 = vmatmul.mubr.msk.bf16.gmra.mxu1 %vm557_vm1, %v2409_v52 }
  0xd5   : > { %2240 = vmatprep.mubr.msk.bf16.mxu0 %vm2813_vm0, %v2812_v1 }
  0xdc   : > { %v739_v55 = vpop.f32.mrf.mxu0  ;;  %2241 = vmatmul.mubr.msk.bf16.gmra.mxu0 %vm557_vm1, %v2410_v53  ;;  %v939_v56 = vpop.f32.mrf.mxu1 }
  0xdd   : > { %v740_v57 = vadd.f32 %v3068_v54, %v739_v55  ;;  %v940_v58 = vadd.f32 %v3068_v54, %v939_v56 }
  0xde   : > { %v2146_v59 = vpop.f32.mrf.mxu0  ;;  %v2246_v60 = vpop.f32.mrf.mxu1 }
  0xdf   : > { %v1983_v61 = vmul.f32 -1.442695, %v740_v57  ;;  %v2033_v62 = vmul.f32 -1.442695, %v940_v58 }
  0xe0   : > { %v742_v63 = vpop.f32.mrf.mxu0  ;;  %v942_v0 = vpop.f32.mrf.mxu1 }
  0xe1   : > { %2411 = vpow2.f32 %v1983_v61  ;;  %v743_v1 = vadd.f32 %v3068_v54, %v742_v63  ;;  %v943_v2 = vadd.f32 %v3068_v54, %v942_v0 }
  0xe2   : > { %2413 = vpow2.f32 %v2033_v62  ;;  %v2147_v3 = vpop.f32.mrf.mxu0  ;;  %v2247_v4 = vpop.f32.mrf.mxu1 }
  0xe3   : > { %v1984_v5 = vmul.f32 -1.442695, %v743_v1  ;;  %v2034_v6 = vmul.f32 -1.442695, %v943_v2 }
  0xe4   : > { %v747_v7 = vpop.f32.mrf.mxu0  ;;  %v947_v8 = vpop.f32.mrf.mxu1 }
  0xe5   : > { %2415 = vpow2.f32 %v1984_v5  ;;  %v748_v9 = vadd.f32 %v3068_v54, %v747_v7  ;;  %v948_v10 = vadd.f32 %v3068_v54, %v947_v8 }
  0xe6   : > { %2417 = vpow2.f32 %v2034_v6  ;;  %v2150_v11 = vpop.f32.mrf.mxu0  ;;  %v2250_v12 = vpop.f32.mrf.mxu1 }
  0xe7   : > { %v1985_v13 = vmul.f32 -1.442695, %v748_v9  ;;  %v2035_v14 = vmul.f32 -1.442695, %v948_v10 }
  0xe8   : > { %v750_v15 = vpop.f32.mrf.mxu0  ;;  %v950_v16 = vpop.f32.mrf.mxu1 }
  0xe9   : > { %2419 = vpow2.f32 %v1985_v13  ;;  %v751_v17 = vadd.f32 %v3068_v54, %v750_v15  ;;  %v951_v18 = vadd.f32 %v3068_v54, %v950_v16 }
  0xea   : > { %2421 = vpow2.f32 %v2035_v14  ;;  %v2151_v19 = vpop.f32.mrf.mxu0  ;;  %v2251_v20 = vpop.f32.mrf.mxu1 }
  0xeb   : > { %v1986_v21 = vmul.f32 -1.442695, %v751_v17  ;;  %v2036_v22 = vmul.f32 -1.442695, %v951_v18 }
  0xec   : > { %v755_v23 = vpop.f32.mrf.mxu0  ;;  %v955_v24 = vpop.f32.mrf.mxu1 }
  0xed   : > { %2423 = vpow2.f32 %v1986_v21  ;;  %v756_v25 = vadd.f32 %v3068_v54, %v755_v23  ;;  %v956_v26 = vadd.f32 %v3068_v54, %v955_v24 }
  0xee   : > { %v2412_v27 = vpop.eup %2411  ;;  %2425 = vpow2.f32 %v2036_v22  ;;  %v2154_v28 = vpop.f32.mrf.mxu0 }
  0xef   : > { %v2254_v29 = vpop.f32.mrf.mxu1  ;;  %v2414_v30 = vpop.eup %2413  ;;  %v1424_v31 = vadd.f32 1.0, %v2412_v27  ;;  %v1987_v32 = vmul.f32 -1.442695, %v756_v25  ;;  %v2037_v34 = vmul.f32 -1.442695, %v956_v26 }
  0xf0   : > { %v1474_v33 = vadd.f32 1.0, %v2414_v30  ;;  %v758_v35 = vpop.f32.mrf.mxu0 }
  0xf1   : > { %v958_v36 = vpop.f32.mrf.mxu1  ;;  %2427 = vrcp.f32 %v1424_v31  ;;  %v759_v37 = vadd.f32 %v3068_v54, %v758_v35 }
  0xf2   : > { %v959_v38 = vadd.f32 %v3068_v54, %v958_v36  ;;  %v2416_v39 = vpop.eup %2415  ;;  %2429 = vrcp.f32 %v1474_v33  ;;  %v2155_v40 = vpop.f32.mrf.mxu0 }
  0xf3   : > { %v2255_v41 = vpop.f32.mrf.mxu1  ;;  %v2418_v42 = vpop.eup %2417  ;;  %v1425_v43 = vadd.f32 1.0, %v2416_v39  ;;  %2431 = vpow2.f32 %v1987_v32  ;;  %v1988_v44 = vmul.f32 -1.442695, %v759_v37 }
  0xf4   : > { %v1475_v45 = vadd.f32 1.0, %v2418_v42  ;;  %2433 = vpow2.f32 %v2037_v34  ;;  %v2038_v46 = vmul.f32 -1.442695, %v959_v38  ;;  %v763_v47 = vpop.f32.mrf.mxu0 }
  0xf5   : > { %v963_v48 = vpop.f32.mrf.mxu1  ;;  %2435 = vrcp.f32 %v1425_v43  ;;  %v764_v49 = vadd.f32 %v3068_v54, %v763_v47 }
  0xf6   : > { %v964_v50 = vadd.f32 %v3068_v54, %v963_v48  ;;  %v2420_v51 = vpop.eup %2419  ;;  %2437 = vrcp.f32 %v1475_v45  ;;  %v2158_v52 = vpop.f32.mrf.mxu0 }
  0xf7   : > { %v2258_v53 = vpop.f32.mrf.mxu1  ;;  %v2422_v55 = vpop.eup %2421  ;;  %v1426_v56 = vadd.f32 1.0, %v2420_v51  ;;  %2439 = vpow2.f32 %v1988_v44  ;;  %v1989_v57 = vmul.f32 -1.442695, %v764_v49 }
  0xf8   : > { %v1476_v58 = vadd.f32 1.0, %v2422_v55  ;;  %2441 = vpow2.f32 %v2038_v46  ;;  %v2039_v59 = vmul.f32 -1.442695, %v964_v50  ;;  %v766_v60 = vpop.f32.mrf.mxu0 }
  0xf9   : > { %v966_v61 = vpop.f32.mrf.mxu1  ;;  %2443 = vrcp.f32 %v1426_v56  ;;  %v767_v62 = vadd.f32 %v3068_v54, %v766_v60 }
  0xfa   : > { %v967_v63 = vadd.f32 %v3068_v54, %v966_v61  ;;  %v2424_v0 = vpop.eup %2423  ;;  %2445 = vrcp.f32 %v1476_v58  ;;  %v2159_v1 = vpop.f32.mrf.mxu0 }
  0xfb   : > { %v2259_v2 = vpop.f32.mrf.mxu1  ;;  %v2426_v3 = vpop.eup %2425  ;;  %v1427_v4 = vadd.f32 1.0, %v2424_v0  ;;  %2447 = vpow2.f32 %v1989_v57  ;;  %v1990_v5 = vmul.f32 -1.442695, %v767_v62 }
  0xfc   : > { %v1477_v6 = vadd.f32 1.0, %v2426_v3  ;;  %2449 = vpow2.f32 %v2039_v59  ;;  %v2040_v7 = vmul.f32 -1.442695, %v967_v63  ;;  %v771_v8 = vpop.f32.mrf.mxu0 }
  0xfd   : > { %v971_v9 = vpop.f32.mrf.mxu1  ;;  %2451 = vrcp.f32 %v1427_v4  ;;  %v772_v10 = vadd.f32 %v3068_v54, %v771_v8 }
  0xfe   : > { %v972_v11 = vadd.f32 %v3068_v54, %v971_v9  ;;  %v2428_v12 = vpop.eup %2427  ;;  %2453 = vrcp.f32 %v1477_v6  ;;  %v2162_v13 = vpop.f32.mrf.mxu0 }
  0xff   : > { %v2262_v14 = vpop.f32.mrf.mxu1  ;;  %v2430_v15 = vpop.eup %2429  ;;  %1719 = vst.msk [vmem:[%s3091_s5] sm:$0xff] %vm1718_vm2, %v2428_v12  ;;  %2455 = vpow2.f32 %v1990_v5  ;;  %v1991_v16 = vmul.f32 -1.442695, %v772_v10 }
 0x100   : > { %v2041_v17 = vmul.f32 -1.442695, %v972_v11  ;;  %v2432_v18 = vpop.eup %2431  ;;  %1769 = vst.msk [vmem:[%s3091_s5 + $0x190] sm:$0xff] %vm1718_vm2, %v2430_v15  ;;  %2457 = vpow2.f32 %v2040_v7  ;;  %v774_v19 = vpop.f32.mrf.mxu0 }
 0x101   : > { %v974_v20 = vpop.f32.mrf.mxu1  ;;  %v2434_v21 = vpop.eup %2433  ;;  %v1428_v22 = vadd.f32 1.0, %v2432_v18  ;;  %2459 = vpow2.f32 %v1991_v16  ;;  %v775_v23 = vadd.f32 %v3068_v54, %v774_v19 }
 0x102   : > { %v975_v24 = vadd.f32 %v3068_v54, %v974_v20  ;;  %v2436_v25 = vpop.eup %2435  ;;  %v1478_v26 = vadd.f32 1.0, %v2434_v21  ;;  %2461 = vpow2.f32 %v2041_v17  ;;  %v2163_v27 = vpop.f32.mrf.mxu0 }
 0x103   : > { %v2263_v28 = vpop.f32.mrf.mxu1  ;;  %v2438_v29 = vpop.eup %2437  ;;  %1720 = vst.msk [vmem:[%s3091_s5 + $0x8] sm:$0xff] %vm1718_vm2, %v2436_v25  ;;  %2463 = vrcp.f32 %v1428_v22  ;;  %v1992_v30 = vmul.f32 -1.442695, %v775_v23 }
 0x104   : > { %v2042_v31 = vmul.f32 -1.442695, %v975_v24  ;;  %v2440_v32 = vpop.eup %2439  ;;  %1770 = vst.msk [vmem:[%s3091_s5 + $0x198] sm:$0xff] %vm1718_vm2, %v2438_v29  ;;  %2465 = vrcp.f32 %v1478_v26  ;;  %v779_v33 = vpop.f32.mrf.mxu0 }
 0x105   : > { %v979_v34 = vpop.f32.mrf.mxu1  ;;  %v2442_v35 = vpop.eup %2441  ;;  %v1429_v36 = vadd.f32 1.0, %v2440_v32  ;;  %2467 = vpow2.f32 %v1992_v30  ;;  %v780_v37 = vadd.f32 %v3068_v54, %v779_v33 }
 0x106   : > { %v980_v38 = vadd.f32 %v3068_v54, %v979_v34  ;;  %v2444_v39 = vpop.eup %2443  ;;  %v1479_v40 = vadd.f32 1.0, %v2442_v35  ;;  %2469 = vpow2.f32 %v2042_v31  ;;  %v2166_v41 = vpop.f32.mrf.mxu0 }
 0x107   : > { %v2266_v42 = vpop.f32.mrf.mxu1  ;;  %v2446_v43 = vpop.eup %2445  ;;  %1721 = vst.msk [vmem:[%s3091_s5 + $0x10] sm:$0xff] %vm1718_vm2, %v2444_v39  ;;  %2471 = vrcp.f32 %v1429_v36  ;;  %v1993_v44 = vmul.f32 -1.442695, %v780_v37 }
 0x108   : > { %v2043_v45 = vmul.f32 -1.442695, %v980_v38  ;;  %v2448_v46 = vpop.eup %2447  ;;  %1771 = vst.msk [vmem:[%s3091_s5 + $0x1a0] sm:$0xff] %vm1718_vm2, %v2446_v43  ;;  %2473 = vrcp.f32 %v1479_v40  ;;  %v782_v47 = vpop.f32.mrf.mxu0 }
 0x109   : > { %v982_v48 = vpop.f32.mrf.mxu1  ;;  %v2450_v49 = vpop.eup %2449  ;;  %v1430_v50 = vadd.f32 1.0, %v2448_v46  ;;  %2475 = vpow2.f32 %v1993_v44  ;;  %v783_v51 = vadd.f32 %v3068_v54, %v782_v47 }
 0x10a   : > { %v983_v52 = vadd.f32 %v3068_v54, %v982_v48  ;;  %v2452_v53 = vpop.eup %2451  ;;  %v1480_v55 = vadd.f32 1.0, %v2450_v49  ;;  %2477 = vpow2.f32 %v2043_v45  ;;  %v2167_v56 = vpop.f32.mrf.mxu0 }
 0x10b   : > { %v2267_v57 = vpop.f32.mrf.mxu1  ;;  %v2454_v58 = vpop.eup %2453  ;;  %1722 = vst.msk [vmem:[%s3091_s5 + $0x18] sm:$0xff] %vm1718_vm2, %v2452_v53  ;;  %2479 = vrcp.f32 %v1430_v50  ;;  %v1994_v59 = vmul.f32 -1.442695, %v783_v51 }
 0x10c   : > { %v2044_v60 = vmul.f32 -1.442695, %v983_v52  ;;  %v2456_v61 = vpop.eup %2455  ;;  %1772 = vst.msk [vmem:[%s3091_s5 + $0x1a8] sm:$0xff] %vm1718_vm2, %v2454_v58  ;;  %2481 = vrcp.f32 %v1480_v55  ;;  %v787_v62 = vpop.f32.mrf.mxu0 }
 0x10d   : > { %v987_v63 = vpop.f32.mrf.mxu1  ;;  %v2458_v0 = vpop.eup %2457  ;;  %v1431_v1 = vadd.f32 1.0, %v2456_v61  ;;  %2483 = vpow2.f32 %v1994_v59  ;;  %v788_v2 = vadd.f32 %v3068_v54, %v787_v62 }
 0x10e   : > { %v988_v3 = vadd.f32 %v3068_v54, %v987_v63  ;;  %v2460_v4 = vpop.eup %2459  ;;  %v1481_v5 = vadd.f32 1.0, %v2458_v0  ;;  %2485 = vpow2.f32 %v2044_v60  ;;  %v2170_v6 = vpop.f32.mrf.mxu0 }
 0x10f   : > { %v2270_v7 = vpop.f32.mrf.mxu1  ;;  %v2462_v8 = vpop.eup %2461  ;;  %2487 = vrcp.f32 %v1431_v1  ;;  %v1432_v9 = vadd.f32 1.0, %v2460_v4  ;;  %v1995_v10 = vmul.f32 -1.442695, %v788_v2 }
 0x110   : > { %v2464_v11 = vpop.eup %2463  ;;  %2489 = vrcp.f32 %v1481_v5  ;;  %v1482_v12 = vadd.f32 1.0, %v2462_v8  ;;  %v2045_v13 = vmul.f32 -1.442695, %v988_v3  ;;  %v790_v14 = vpop.f32.mrf.mxu0 }
 0x111   : > { %v990_v15 = vpop.f32.mrf.mxu1  ;;  %v2466_v16 = vpop.eup %2465  ;;  %1723 = vst.msk [vmem:[%s3091_s5 + $0x20] sm:$0xff] %vm1718_vm2, %v2464_v11  ;;  %2491 = vrcp.f32 %v1432_v9  ;;  %v791_v17 = vadd.f32 %v3068_v54, %v790_v14 }
 0x112   : > { %v991_v18 = vadd.f32 %v3068_v54, %v990_v15  ;;  %v2468_v19 = vpop.eup %2467  ;;  %1773 = vst.msk [vmem:[%s3091_s5 + $0x1b0] sm:$0xff] %vm1718_vm2, %v2466_v16  ;;  %2493 = vrcp.f32 %v1482_v12  ;;  %v2171_v20 = vpop.f32.mrf.mxu0 }
 0x113   : > { %v2271_v21 = vpop.f32.mrf.mxu1  ;;  %v2470_v22 = vpop.eup %2469  ;;  %v1433_v23 = vadd.f32 1.0, %v2468_v19  ;;  %2495 = vpow2.f32 %v1995_v10  ;;  %v1996_v24 = vmul.f32 -1.442695, %v791_v17 }
 0x114   : > { %v2472_v25 = vpop.eup %2471  ;;  %v1483_v26 = vadd.f32 1.0, %v2470_v22  ;;  %2497 = vpow2.f32 %v2045_v13  ;;  %v2046_v27 = vmul.f32 -1.442695, %v991_v18  ;;  %v795_v28 = vpop.f32.mrf.mxu0 }
 0x115   : > { %v995_v29 = vpop.f32.mrf.mxu1  ;;  %v2474_v30 = vpop.eup %2473  ;;  %1724 = vst.msk [vmem:[%s3091_s5 + $0x28] sm:$0xff] %vm1718_vm2, %v2472_v25  ;;  %2499 = vrcp.f32 %v1433_v23  ;;  %v796_v31 = vadd.f32 %v3068_v54, %v795_v28 }
 0x116   : > { %v996_v32 = vadd.f32 %v3068_v54, %v995_v29  ;;  %v2476_v33 = vpop.eup %2475  ;;  %1774 = vst.msk [vmem:[%s3091_s5 + $0x1b8] sm:$0xff] %vm1718_vm2, %v2474_v30  ;;  %2501 = vrcp.f32 %v1483_v26  ;;  %v2174_v34 = vpop.f32.mrf.mxu0 }
 0x117   : > { %v2274_v35 = vpop.f32.mrf.mxu1  ;;  %v2478_v36 = vpop.eup %2477  ;;  %v1434_v37 = vadd.f32 1.0, %v2476_v33  ;;  %2503 = vpow2.f32 %v1996_v24  ;;  %v1997_v38 = vmul.f32 -1.442695, %v796_v31 }
 0x118   : > { %v2480_v39 = vpop.eup %2479  ;;  %v1484_v40 = vadd.f32 1.0, %v2478_v36  ;;  %2505 = vpow2.f32 %v2046_v27  ;;  %v2047_v41 = vmul.f32 -1.442695, %v996_v32  ;;  %v798_v42 = vpop.f32.mrf.mxu0 }
 0x119   : > { %v998_v43 = vpop.f32.mrf.mxu1  ;;  %v2482_v44 = vpop.eup %2481  ;;  %1725 = vst.msk [vmem:[%s3091_s5 + $0x30] sm:$0xff] %vm1718_vm2, %v2480_v39  ;;  %2507 = vrcp.f32 %v1434_v37  ;;  %v799_v45 = vadd.f32 %v3068_v54, %v798_v42 }
 0x11a   : > { %v999_v46 = vadd.f32 %v3068_v54, %v998_v43  ;;  %v2484_v47 = vpop.eup %2483  ;;  %1775 = vst.msk [vmem:[%s3091_s5 + $0x1c0] sm:$0xff] %vm1718_vm2, %v2482_v44  ;;  %2509 = vrcp.f32 %v1484_v40  ;;  %v2175_v48 = vpop.f32.mrf.mxu0 }
 0x11b   : > { %v2275_v49 = vpop.f32.mrf.mxu1  ;;  %v2486_v50 = vpop.eup %2485  ;;  %v1435_v51 = vadd.f32 1.0, %v2484_v47  ;;  %2511 = vpow2.f32 %v1997_v38  ;;  %v1998_v52 = vmul.f32 -1.442695, %v799_v45 }
 0x11c   : > { %v2488_v53 = vpop.eup %2487  ;;  %v1485_v55 = vadd.f32 1.0, %v2486_v50  ;;  %2513 = vpow2.f32 %v2047_v41  ;;  %v2048_v56 = vmul.f32 -1.442695, %v999_v46  ;;  %v803_v57 = vpop.f32.mrf.mxu0 }
 0x11d   : > { %v1003_v58 = vpop.f32.mrf.mxu1  ;;  %v2490_v59 = vpop.eup %2489  ;;  %1726 = vst.msk [vmem:[%s3091_s5 + $0x38] sm:$0xff] %vm1718_vm2, %v2488_v53  ;;  %2515 = vrcp.f32 %v1435_v51  ;;  %v804_v60 = vadd.f32 %v3068_v54, %v803_v57 }
 0x11e   : > { %v1004_v61 = vadd.f32 %v3068_v54, %v1003_v58  ;;  %v2492_v62 = vpop.eup %2491  ;;  %1776 = vst.msk [vmem:[%s3091_s5 + $0x1c8] sm:$0xff] %vm1718_vm2, %v2490_v59  ;;  %2517 = vrcp.f32 %v1485_v55  ;;  %v2178_v63 = vpop.f32.mrf.mxu0 }
 0x11f   : > { %v2278_v0 = vpop.f32.mrf.mxu1  ;;  %v2494_v1 = vpop.eup %2493  ;;  %1727 = vst.msk [vmem:[%s3091_s5 + $0x40] sm:$0xff] %vm1718_vm2, %v2492_v62  ;;  %2519 = vpow2.f32 %v1998_v52  ;;  %v1999_v2 = vmul.f32 -1.442695, %v804_v60 }
 0x120   : > { %v2049_v3 = vmul.f32 -1.442695, %v1004_v61  ;;  %v2496_v4 = vpop.eup %2495  ;;  %1777 = vst.msk [vmem:[%s3091_s5 + $0x1d0] sm:$0xff] %vm1718_vm2, %v2494_v1  ;;  %2521 = vpow2.f32 %v2048_v56  ;;  %v806_v5 = vpop.f32.mrf.mxu0 }
 0x121   : > { %v1006_v6 = vpop.f32.mrf.mxu1  ;;  %v2498_v7 = vpop.eup %2497  ;;  %v1436_v8 = vadd.f32 1.0, %v2496_v4  ;;  %2523 = vpow2.f32 %v1999_v2  ;;  %v807_v9 = vadd.f32 %v3068_v54, %v806_v5 }
 0x122   : > { %v1007_v10 = vadd.f32 %v3068_v54, %v1006_v6  ;;  %v2500_v11 = vpop.eup %2499  ;;  %v1486_v12 = vadd.f32 1.0, %v2498_v7  ;;  %2525 = vpow2.f32 %v2049_v3  ;;  %v2179_v13 = vpop.f32.mrf.mxu0 }
 0x123   : > { %v2279_v14 = vpop.f32.mrf.mxu1  ;;  %v2502_v15 = vpop.eup %2501  ;;  %1728 = vst.msk [vmem:[%s3091_s5 + $0x48] sm:$0xff] %vm1718_vm2, %v2500_v11  ;;  %2527 = vrcp.f32 %v1436_v8  ;;  %v2000_v16 = vmul.f32 -1.442695, %v807_v9 }
 0x124   : > { %v2050_v17 = vmul.f32 -1.442695, %v1007_v10  ;;  %v2504_v18 = vpop.eup %2503  ;;  %1778 = vst.msk [vmem:[%s3091_s5 + $0x1d8] sm:$0xff] %vm1718_vm2, %v2502_v15  ;;  %2529 = vrcp.f32 %v1486_v12  ;;  %v811_v19 = vpop.f32.mrf.mxu0 }
 0x125   : > { %v1011_v20 = vpop.f32.mrf.mxu1  ;;  %v2506_v21 = vpop.eup %2505  ;;  %v1437_v22 = vadd.f32 1.0, %v2504_v18  ;;  %2531 = vpow2.f32 %v2000_v16  ;;  %v812_v23 = vadd.f32 %v3068_v54, %v811_v19 }
 0x126   : > { %v1012_v24 = vadd.f32 %v3068_v54, %v1011_v20  ;;  %v2508_v25 = vpop.eup %2507  ;;  %v1487_v26 = vadd.f32 1.0, %v2506_v21  ;;  %2533 = vpow2.f32 %v2050_v17  ;;  %v2182_v27 = vpop.f32.mrf.mxu0 }
 0x127   : > { %v2282_v28 = vpop.f32.mrf.mxu1  ;;  %v2510_v29 = vpop.eup %2509  ;;  %1729 = vst.msk [vmem:[%s3091_s5 + $0x50] sm:$0xff] %vm1718_vm2, %v2508_v25  ;;  %2535 = vrcp.f32 %v1437_v22  ;;  %v2001_v30 = vmul.f32 -1.442695, %v812_v23 }
 0x128   : > { %v2051_v31 = vmul.f32 -1.442695, %v1012_v24  ;;  %v2512_v32 = vpop.eup %2511  ;;  %1779 = vst.msk [vmem:[%s3091_s5 + $0x1e0] sm:$0xff] %vm1718_vm2, %v2510_v29  ;;  %2537 = vrcp.f32 %v1487_v26  ;;  %v814_v33 = vpop.f32.mrf.mxu0 }
 0x129   : > { %v1014_v34 = vpop.f32.mrf.mxu1  ;;  %v2514_v35 = vpop.eup %2513  ;;  %v1438_v36 = vadd.f32 1.0, %v2512_v32  ;;  %2539 = vpow2.f32 %v2001_v30  ;;  %v815_v37 = vadd.f32 %v3068_v54, %v814_v33 }
 0x12a   : > { %v1015_v38 = vadd.f32 %v3068_v54, %v1014_v34  ;;  %v2516_v39 = vpop.eup %2515  ;;  %v1488_v40 = vadd.f32 1.0, %v2514_v35  ;;  %2541 = vpow2.f32 %v2051_v31  ;;  %v2183_v41 = vpop.f32.mrf.mxu0 }
 0x12b   : > { %v2283_v42 = vpop.f32.mrf.mxu1  ;;  %v2518_v43 = vpop.eup %2517  ;;  %1730 = vst.msk [vmem:[%s3091_s5 + $0x58] sm:$0xff] %vm1718_vm2, %v2516_v39  ;;  %2543 = vrcp.f32 %v1438_v36  ;;  %v2002_v44 = vmul.f32 -1.442695, %v815_v37 }
 0x12c   : > { %v2052_v45 = vmul.f32 -1.442695, %v1015_v38  ;;  %v2520_v46 = vpop.eup %2519  ;;  %1780 = vst.msk [vmem:[%s3091_s5 + $0x1e8] sm:$0xff] %vm1718_vm2, %v2518_v43  ;;  %2545 = vrcp.f32 %v1488_v40  ;;  %v819_v47 = vpop.f32.mrf.mxu0 }
 0x12d   : > { %v1019_v48 = vpop.f32.mrf.mxu1  ;;  %v2522_v49 = vpop.eup %2521  ;;  %v1439_v50 = vadd.f32 1.0, %v2520_v46  ;;  %2547 = vpow2.f32 %v2002_v44  ;;  %v820_v51 = vadd.f32 %v3068_v54, %v819_v47 }
 0x12e   : > { %v1020_v52 = vadd.f32 %v3068_v54, %v1019_v48  ;;  %v2524_v53 = vpop.eup %2523  ;;  %v1489_v55 = vadd.f32 1.0, %v2522_v49  ;;  %2549 = vpow2.f32 %v2052_v45  ;;  %v2186_v56 = vpop.f32.mrf.mxu0 }
 0x12f   : > { %v2286_v57 = vpop.f32.mrf.mxu1  ;;  %v2526_v58 = vpop.eup %2525  ;;  %2551 = vrcp.f32 %v1439_v50  ;;  %v1440_v59 = vadd.f32 1.0, %v2524_v53  ;;  %v2003_v60 = vmul.f32 -1.442695, %v820_v51 }
 0x130   : > { %v2528_v61 = vpop.eup %2527  ;;  %2553 = vrcp.f32 %v1489_v55  ;;  %v1490_v62 = vadd.f32 1.0, %v2526_v58  ;;  %v2053_v63 = vmul.f32 -1.442695, %v1020_v52  ;;  %v822_v0 = vpop.f32.mrf.mxu0 }
 0x131   : > { %v1022_v1 = vpop.f32.mrf.mxu1  ;;  %v2530_v2 = vpop.eup %2529  ;;  %1731 = vst.msk [vmem:[%s3091_s5 + $0x60] sm:$0xff] %vm1718_vm2, %v2528_v61  ;;  %2555 = vrcp.f32 %v1440_v59  ;;  %v823_v3 = vadd.f32 %v3068_v54, %v822_v0 }
 0x132   : > { %v1023_v4 = vadd.f32 %v3068_v54, %v1022_v1  ;;  %v2532_v5 = vpop.eup %2531  ;;  %1781 = vst.msk [vmem:[%s3091_s5 + $0x1f0] sm:$0xff] %vm1718_vm2, %v2530_v2  ;;  %2557 = vrcp.f32 %v1490_v62  ;;  %v2187_v6 = vpop.f32.mrf.mxu0 }
 0x133   : > { %v2287_v7 = vpop.f32.mrf.mxu1  ;;  %v2534_v8 = vpop.eup %2533  ;;  %v1441_v9 = vadd.f32 1.0, %v2532_v5  ;;  %2559 = vpow2.f32 %v2003_v60  ;;  %v2004_v10 = vmul.f32 -1.442695, %v823_v3 }
 0x134   : > { %v2536_v11 = vpop.eup %2535  ;;  %v1491_v12 = vadd.f32 1.0, %v2534_v8  ;;  %2561 = vpow2.f32 %v2053_v63  ;;  %v2054_v13 = vmul.f32 -1.442695, %v1023_v4  ;;  %v827_v14 = vpop.f32.mrf.mxu0 }
 0x135   : > { %v1027_v15 = vpop.f32.mrf.mxu1  ;;  %v2538_v16 = vpop.eup %2537  ;;  %1732 = vst.msk [vmem:[%s3091_s5 + $0x68] sm:$0xff] %vm1718_vm2, %v2536_v11  ;;  %2563 = vrcp.f32 %v1441_v9  ;;  %v828_v17 = vadd.f32 %v3068_v54, %v827_v14 }
 0x136   : > { %v1028_v18 = vadd.f32 %v3068_v54, %v1027_v15  ;;  %v2540_v19 = vpop.eup %2539  ;;  %1782 = vst.msk [vmem:[%s3091_s5 + $0x1f8] sm:$0xff] %vm1718_vm2, %v2538_v16  ;;  %2565 = vrcp.f32 %v1491_v12  ;;  %v2190_v20 = vpop.f32.mrf.mxu0 }
 0x137   : > { %v2290_v21 = vpop.f32.mrf.mxu1  ;;  %v2542_v22 = vpop.eup %2541  ;;  %v1442_v23 = vadd.f32 1.0, %v2540_v19  ;;  %2567 = vpow2.f32 %v2004_v10  ;;  %v2005_v24 = vmul.f32 -1.442695, %v828_v17 }
 0x138   : > { %v2544_v25 = vpop.eup %2543  ;;  %v1492_v26 = vadd.f32 1.0, %v2542_v22  ;;  %2569 = vpow2.f32 %v2054_v13  ;;  %v2055_v27 = vmul.f32 -1.442695, %v1028_v18  ;;  %v830_v28 = vpop.f32.mrf.mxu0 }
 0x139   : > { %v1030_v29 = vpop.f32.mrf.mxu1  ;;  %v2546_v30 = vpop.eup %2545  ;;  %1733 = vst.msk [vmem:[%s3091_s5 + $0x70] sm:$0xff] %vm1718_vm2, %v2544_v25  ;;  %2571 = vrcp.f32 %v1442_v23  ;;  %v831_v31 = vadd.f32 %v3068_v54, %v830_v28 }
 0x13a   : > { %v1031_v32 = vadd.f32 %v3068_v54, %v1030_v29  ;;  %v2548_v33 = vpop.eup %2547  ;;  %1783 = vst.msk [vmem:[%s3091_s5 + $0x200] sm:$0xff] %vm1718_vm2, %v2546_v30  ;;  %2573 = vrcp.f32 %v1492_v26  ;;  %v2191_v34 = vpop.f32.mrf.mxu0 }
 0x13b   : > { %v2291_v35 = vpop.f32.mrf.mxu1  ;;  %v2550_v36 = vpop.eup %2549  ;;  %v1443_v37 = vadd.f32 1.0, %v2548_v33  ;;  %2575 = vpow2.f32 %v2005_v24  ;;  %v2006_v38 = vmul.f32 -1.442695, %v831_v31 }
 0x13c   : > { %v2552_v39 = vpop.eup %2551  ;;  %v1493_v40 = vadd.f32 1.0, %v2550_v36  ;;  %2577 = vpow2.f32 %v2055_v27  ;;  %v2056_v41 = vmul.f32 -1.442695, %v1031_v32  ;;  %v835_v42 = vpop.f32.mrf.mxu0 }
 0x13d   : > { %v1035_v43 = vpop.f32.mrf.mxu1  ;;  %v2554_v44 = vpop.eup %2553  ;;  %1734 = vst.msk [vmem:[%s3091_s5 + $0x78] sm:$0xff] %vm1718_vm2, %v2552_v39  ;;  %2579 = vrcp.f32 %v1443_v37  ;;  %v836_v45 = vadd.f32 %v3068_v54, %v835_v42 }
 0x13e   : > { %v1036_v46 = vadd.f32 %v3068_v54, %v1035_v43  ;;  %v2556_v47 = vpop.eup %2555  ;;  %1784 = vst.msk [vmem:[%s3091_s5 + $0x208] sm:$0xff] %vm1718_vm2, %v2554_v44  ;;  %2581 = vrcp.f32 %v1493_v40  ;;  %v2194_v48 = vpop.f32.mrf.mxu0 }
 0x13f   : > { %v2294_v49 = vpop.f32.mrf.mxu1  ;;  %v2558_v50 = vpop.eup %2557  ;;  %1735 = vst.msk [vmem:[%s3091_s5 + $0x80] sm:$0xff] %vm1718_vm2, %v2556_v47  ;;  %2583 = vpow2.f32 %v2006_v38  ;;  %v2007_v51 = vmul.f32 -1.442695, %v836_v45 }
 0x140   : > { %v2057_v52 = vmul.f32 -1.442695, %v1036_v46  ;;  %v2560_v53 = vpop.eup %2559  ;;  %1785 = vst.msk [vmem:[%s3091_s5 + $0x210] sm:$0xff] %vm1718_vm2, %v2558_v50  ;;  %2585 = vpow2.f32 %v2056_v41  ;;  %v838_v55 = vpop.f32.mrf.mxu0 }
 0x141   : > { %v1038_v56 = vpop.f32.mrf.mxu1  ;;  %v2562_v57 = vpop.eup %2561  ;;  %v1444_v58 = vadd.f32 1.0, %v2560_v53  ;;  %2587 = vpow2.f32 %v2007_v51  ;;  %v839_v59 = vadd.f32 %v3068_v54, %v838_v55 }
 0x142   : > { %v1039_v60 = vadd.f32 %v3068_v54, %v1038_v56  ;;  %v2564_v61 = vpop.eup %2563  ;;  %v1494_v62 = vadd.f32 1.0, %v2562_v57  ;;  %2589 = vpow2.f32 %v2057_v52  ;;  %v2195_v63 = vpop.f32.mrf.mxu0 }
 0x143   : > { %v2295_v0 = vpop.f32.mrf.mxu1  ;;  %v2566_v1 = vpop.eup %2565  ;;  %1736 = vst.msk [vmem:[%s3091_s5 + $0x88] sm:$0xff] %vm1718_vm2, %v2564_v61  ;;  %2591 = vrcp.f32 %v1444_v58  ;;  %v2008_v2 = vmul.f32 -1.442695, %v839_v59 }
 0x144   : > { %v2058_v3 = vmul.f32 -1.442695, %v1039_v60  ;;  %v2568_v4 = vpop.eup %2567  ;;  %1786 = vst.msk [vmem:[%s3091_s5 + $0x218] sm:$0xff] %vm1718_vm2, %v2566_v1  ;;  %2593 = vrcp.f32 %v1494_v62  ;;  %v843_v5 = vpop.f32.mrf.mxu0 }
 0x145   : > { %v1043_v6 = vpop.f32.mrf.mxu1  ;;  %v2570_v7 = vpop.eup %2569  ;;  %v1445_v8 = vadd.f32 1.0, %v2568_v4  ;;  %2595 = vpow2.f32 %v2008_v2  ;;  %v844_v9 = vadd.f32 %v3068_v54, %v843_v5 }
 0x146   : > { %v1044_v10 = vadd.f32 %v3068_v54, %v1043_v6  ;;  %v2572_v11 = vpop.eup %2571  ;;  %v1495_v12 = vadd.f32 1.0, %v2570_v7  ;;  %2597 = vpow2.f32 %v2058_v3  ;;  %v2198_v13 = vpop.f32.mrf.mxu0 }
 0x147   : > { %v2298_v14 = vpop.f32.mrf.mxu1  ;;  %v2574_v15 = vpop.eup %2573  ;;  %1737 = vst.msk [vmem:[%s3091_s5 + $0x90] sm:$0xff] %vm1718_vm2, %v2572_v11  ;;  %2599 = vrcp.f32 %v1445_v8  ;;  %v2009_v16 = vmul.f32 -1.442695, %v844_v9 }
 0x148   : > { %v2059_v17 = vmul.f32 -1.442695, %v1044_v10  ;;  %v2576_v18 = vpop.eup %2575  ;;  %1787 = vst.msk [vmem:[%s3091_s5 + $0x220] sm:$0xff] %vm1718_vm2, %v2574_v15  ;;  %2601 = vrcp.f32 %v1495_v12  ;;  %v846_v19 = vpop.f32.mrf.mxu0 }
 0x149   : > { %v1046_v20 = vpop.f32.mrf.mxu1  ;;  %v2578_v21 = vpop.eup %2577  ;;  %v1446_v22 = vadd.f32 1.0, %v2576_v18  ;;  %2603 = vpow2.f32 %v2009_v16  ;;  %v847_v23 = vadd.f32 %v3068_v54, %v846_v19 }
 0x14a   : > { %v1047_v24 = vadd.f32 %v3068_v54, %v1046_v20  ;;  %v2580_v25 = vpop.eup %2579  ;;  %v1496_v26 = vadd.f32 1.0, %v2578_v21  ;;  %2605 = vpow2.f32 %v2059_v17  ;;  %v2199_v27 = vpop.f32.mrf.mxu0 }
 0x14b   : > { %v2299_v28 = vpop.f32.mrf.mxu1  ;;  %v2582_v29 = vpop.eup %2581  ;;  %1738 = vst.msk [vmem:[%s3091_s5 + $0x98] sm:$0xff] %vm1718_vm2, %v2580_v25  ;;  %2607 = vrcp.f32 %v1446_v22  ;;  %v2010_v30 = vmul.f32 -1.442695, %v847_v23 }
 0x14c   : > { %v2060_v31 = vmul.f32 -1.442695, %v1047_v24  ;;  %v2584_v32 = vpop.eup %2583  ;;  %1788 = vst.msk [vmem:[%s3091_s5 + $0x228] sm:$0xff] %vm1718_vm2, %v2582_v29  ;;  %2609 = vrcp.f32 %v1496_v26  ;;  %v851_v33 = vpop.f32.mrf.mxu0 }
 0x14d   : > { %v1051_v34 = vpop.f32.mrf.mxu1  ;;  %v2586_v35 = vpop.eup %2585  ;;  %v1447_v36 = vadd.f32 1.0, %v2584_v32  ;;  %2611 = vpow2.f32 %v2010_v30  ;;  %v852_v37 = vadd.f32 %v3068_v54, %v851_v33 }
 0x14e   : > { %v1052_v38 = vadd.f32 %v3068_v54, %v1051_v34  ;;  %v2588_v39 = vpop.eup %2587  ;;  %v1497_v40 = vadd.f32 1.0, %v2586_v35  ;;  %2613 = vpow2.f32 %v2060_v31  ;;  %v2202_v41 = vpop.f32.mrf.mxu0  ;;  %v3220_v54 = vld [vmem:[%s3381_s2] ss:$0 sm:$0xff] }
 0x14f   : > { %v2302_v42 = vpop.f32.mrf.mxu1  ;;  %v2590_v43 = vpop.eup %2589  ;;  %2615 = vrcp.f32 %v1447_v36  ;;  %v1448_v44 = vadd.f32 1.0, %v2588_v39  ;;  %v2011_v45 = vmul.f32 -1.442695, %v852_v37 }
 0x150   : > { %v2592_v46 = vpop.eup %2591  ;;  %2617 = vrcp.f32 %v1497_v40  ;;  %v1498_v47 = vadd.f32 1.0, %v2590_v43  ;;  %v2061_v48 = vmul.f32 -1.442695, %v1052_v38  ;;  %v854_v49 = vpop.f32.mrf.mxu0 }
 0x151   : > { %v1054_v50 = vpop.f32.mrf.mxu1  ;;  %v2594_v51 = vpop.eup %2593  ;;  %1739 = vst.msk [vmem:[%s3091_s5 + $0xa0] sm:$0xff] %vm1718_vm2, %v2592_v46  ;;  %2619 = vrcp.f32 %v1448_v44  ;;  %v855_v52 = vadd.f32 %v3220_v54, %v854_v49 }
 0x152   : > { %v1055_v53 = vadd.f32 %v3220_v54, %v1054_v50  ;;  %v2596_v55 = vpop.eup %2595  ;;  %1789 = vst.msk [vmem:[%s3091_s5 + $0x230] sm:$0xff] %vm1718_vm2, %v2594_v51  ;;  %2621 = vrcp.f32 %v1498_v47  ;;  %v2203_v56 = vpop.f32.mrf.mxu0 }
 0x153   : > { %v2303_v57 = vpop.f32.mrf.mxu1  ;;  %v2598_v58 = vpop.eup %2597  ;;  %v1449_v59 = vadd.f32 1.0, %v2596_v55  ;;  %2623 = vpow2.f32 %v2011_v45  ;;  %v2012_v60 = vmul.f32 -1.442695, %v855_v52 }
 0x154   : > { %v2600_v61 = vpop.eup %2599  ;;  %v1499_v62 = vadd.f32 1.0, %v2598_v58  ;;  %2625 = vpow2.f32 %v2061_v48  ;;  %v2062_v63 = vmul.f32 -1.442695, %v1055_v53  ;;  %v859_v0 = vpop.f32.mrf.mxu0 }
 0x155   : > { %v1059_v1 = vpop.f32.mrf.mxu1  ;;  %v2602_v2 = vpop.eup %2601  ;;  %1740 = vst.msk [vmem:[%s3091_s5 + $0xa8] sm:$0xff] %vm1718_vm2, %v2600_v61  ;;  %2627 = vrcp.f32 %v1449_v59  ;;  %v860_v3 = vadd.f32 %v3220_v54, %v859_v0 }
 0x156   : > { %v1060_v4 = vadd.f32 %v3220_v54, %v1059_v1  ;;  %v2604_v5 = vpop.eup %2603  ;;  %1790 = vst.msk [vmem:[%s3091_s5 + $0x238] sm:$0xff] %vm1718_vm2, %v2602_v2  ;;  %2629 = vrcp.f32 %v1499_v62  ;;  %v2206_v6 = vpop.f32.mrf.mxu0 }
 0x157   : > { %v2306_v7 = vpop.f32.mrf.mxu1  ;;  %v2606_v8 = vpop.eup %2605  ;;  %v1450_v9 = vadd.f32 1.0, %v2604_v5  ;;  %2631 = vpow2.f32 %v2012_v60  ;;  %v2013_v10 = vmul.f32 -1.442695, %v860_v3 }
 0x158   : > { %v2608_v11 = vpop.eup %2607  ;;  %v1500_v12 = vadd.f32 1.0, %v2606_v8  ;;  %2633 = vpow2.f32 %v2062_v63  ;;  %v2063_v13 = vmul.f32 -1.442695, %v1060_v4  ;;  %v862_v14 = vpop.f32.mrf.mxu0 }
 0x159   : > { %v1062_v15 = vpop.f32.mrf.mxu1  ;;  %v2610_v16 = vpop.eup %2609  ;;  %1741 = vst.msk [vmem:[%s3091_s5 + $0xb0] sm:$0xff] %vm1718_vm2, %v2608_v11  ;;  %2635 = vrcp.f32 %v1450_v9  ;;  %v863_v17 = vadd.f32 %v3220_v54, %v862_v14 }
 0x15a   : > { %v1063_v18 = vadd.f32 %v3220_v54, %v1062_v15  ;;  %v2612_v19 = vpop.eup %2611  ;;  %1791 = vst.msk [vmem:[%s3091_s5 + $0x240] sm:$0xff] %vm1718_vm2, %v2610_v16  ;;  %2637 = vrcp.f32 %v1500_v12  ;;  %v2207_v20 = vpop.f32.mrf.mxu0 }
 0x15b   : > { %v2307_v21 = vpop.f32.mrf.mxu1  ;;  %v2614_v22 = vpop.eup %2613  ;;  %v1451_v23 = vadd.f32 1.0, %v2612_v19  ;;  %2639 = vpow2.f32 %v2013_v10  ;;  %v2014_v24 = vmul.f32 -1.442695, %v863_v17 }
 0x15c   : > { %v2616_v25 = vpop.eup %2615  ;;  %v1501_v26 = vadd.f32 1.0, %v2614_v22  ;;  %2641 = vpow2.f32 %v2063_v13  ;;  %v2064_v27 = vmul.f32 -1.442695, %v1063_v18  ;;  %v867_v28 = vpop.f32.mrf.mxu0 }
 0x15d   : > { %v1067_v29 = vpop.f32.mrf.mxu1  ;;  %v2618_v30 = vpop.eup %2617  ;;  %1742 = vst.msk [vmem:[%s3091_s5 + $0xb8] sm:$0xff] %vm1718_vm2, %v2616_v25  ;;  %2643 = vrcp.f32 %v1451_v23  ;;  %v868_v31 = vadd.f32 %v3220_v54, %v867_v28 }
 0x15e   : > { %v1068_v32 = vadd.f32 %v3220_v54, %v1067_v29  ;;  %v2620_v33 = vpop.eup %2619  ;;  %1792 = vst.msk [vmem:[%s3091_s5 + $0x248] sm:$0xff] %vm1718_vm2, %v2618_v30  ;;  %2645 = vrcp.f32 %v1501_v26  ;;  %v2210_v34 = vpop.f32.mrf.mxu0 }
 0x15f   : > { %v2310_v35 = vpop.f32.mrf.mxu1  ;;  %v2622_v36 = vpop.eup %2621  ;;  %1743 = vst.msk [vmem:[%s3091_s5 + $0xc0] sm:$0xff] %vm1718_vm2, %v2620_v33  ;;  %2647 = vpow2.f32 %v2014_v24  ;;  %v2015_v37 = vmul.f32 -1.442695, %v868_v31 }
 0x160   : > { %v2065_v38 = vmul.f32 -1.442695, %v1068_v32  ;;  %v2624_v39 = vpop.eup %2623  ;;  %1793 = vst.msk [vmem:[%s3091_s5 + $0x250] sm:$0xff] %vm1718_vm2, %v2622_v36  ;;  %2649 = vpow2.f32 %v2064_v27  ;;  %v870_v40 = vpop.f32.mrf.mxu0 }
 0x161   : > { %v1070_v41 = vpop.f32.mrf.mxu1  ;;  %v2626_v42 = vpop.eup %2625  ;;  %v1452_v43 = vadd.f32 1.0, %v2624_v39  ;;  %2651 = vpow2.f32 %v2015_v37  ;;  %v871_v44 = vadd.f32 %v3220_v54, %v870_v40 }
 0x162   : > { %v1071_v45 = vadd.f32 %v3220_v54, %v1070_v41  ;;  %v2628_v46 = vpop.eup %2627  ;;  %v1502_v47 = vadd.f32 1.0, %v2626_v42  ;;  %2653 = vpow2.f32 %v2065_v38  ;;  %v2211_v48 = vpop.f32.mrf.mxu0 }
 0x163   : > { %v2311_v49 = vpop.f32.mrf.mxu1  ;;  %v2630_v50 = vpop.eup %2629  ;;  %1744 = vst.msk [vmem:[%s3091_s5 + $0xc8] sm:$0xff] %vm1718_vm2, %v2628_v46  ;;  %2655 = vrcp.f32 %v1452_v43  ;;  %v2016_v51 = vmul.f32 -1.442695, %v871_v44 }
 0x164   : > { %v2066_v52 = vmul.f32 -1.442695, %v1071_v45  ;;  %v2632_v53 = vpop.eup %2631  ;;  %1794 = vst.msk [vmem:[%s3091_s5 + $0x258] sm:$0xff] %vm1718_vm2, %v2630_v50  ;;  %2657 = vrcp.f32 %v1502_v47  ;;  %v875_v55 = vpop.f32.mrf.mxu0 }
 0x165   : > { %v1075_v56 = vpop.f32.mrf.mxu1  ;;  %v2634_v57 = vpop.eup %2633  ;;  %v1453_v58 = vadd.f32 1.0, %v2632_v53  ;;  %2659 = vpow2.f32 %v2016_v51  ;;  %v876_v59 = vadd.f32 %v3220_v54, %v875_v55 }
 0x166   : > { %v1076_v60 = vadd.f32 %v3220_v54, %v1075_v56  ;;  %v2636_v61 = vpop.eup %2635  ;;  %v1503_v62 = vadd.f32 1.0, %v2634_v57  ;;  %2661 = vpow2.f32 %v2066_v52  ;;  %v2214_v63 = vpop.f32.mrf.mxu0 }
 0x167   : > { %v2314_v0 = vpop.f32.mrf.mxu1  ;;  %v2638_v1 = vpop.eup %2637  ;;  %1745 = vst.msk [vmem:[%s3091_s5 + $0xd0] sm:$0xff] %vm1718_vm2, %v2636_v61  ;;  %2663 = vrcp.f32 %v1453_v58  ;;  %v2017_v2 = vmul.f32 -1.442695, %v876_v59 }
 0x168   : > { %v2067_v3 = vmul.f32 -1.442695, %v1076_v60  ;;  %v2640_v4 = vpop.eup %2639  ;;  %1795 = vst.msk [vmem:[%s3091_s5 + $0x260] sm:$0xff] %vm1718_vm2, %v2638_v1  ;;  %2665 = vrcp.f32 %v1503_v62  ;;  %v878_v5 = vpop.f32.mrf.mxu0 }
 0x169   : > { %v1078_v6 = vpop.f32.mrf.mxu1  ;;  %v2642_v7 = vpop.eup %2641  ;;  %v1454_v8 = vadd.f32 1.0, %v2640_v4  ;;  %2667 = vpow2.f32 %v2017_v2  ;;  %v879_v9 = vadd.f32 %v3220_v54, %v878_v5 }
 0x16a   : > { %v1079_v10 = vadd.f32 %v3220_v54, %v1078_v6  ;;  %v2644_v11 = vpop.eup %2643  ;;  %v1504_v12 = vadd.f32 1.0, %v2642_v7  ;;  %2669 = vpow2.f32 %v2067_v3  ;;  %v2215_v13 = vpop.f32.mrf.mxu0 }
 0x16b   : > { %v2315_v14 = vpop.f32.mrf.mxu1  ;;  %v2646_v15 = vpop.eup %2645  ;;  %1746 = vst.msk [vmem:[%s3091_s5 + $0xd8] sm:$0xff] %vm1718_vm2, %v2644_v11  ;;  %2671 = vrcp.f32 %v1454_v8  ;;  %v2018_v16 = vmul.f32 -1.442695, %v879_v9 }
 0x16c   : > { %v2068_v17 = vmul.f32 -1.442695, %v1079_v10  ;;  %v2648_v18 = vpop.eup %2647  ;;  %1796 = vst.msk [vmem:[%s3091_s5 + $0x268] sm:$0xff] %vm1718_vm2, %v2646_v15  ;;  %2673 = vrcp.f32 %v1504_v12  ;;  %v883_v19 = vpop.f32.mrf.mxu0 }
 0x16d   : > { %v1083_v20 = vpop.f32.mrf.mxu1  ;;  %v2650_v21 = vpop.eup %2649  ;;  %v1455_v22 = vadd.f32 1.0, %v2648_v18  ;;  %2675 = vpow2.f32 %v2018_v16  ;;  %v884_v23 = vadd.f32 %v3220_v54, %v883_v19 }
 0x16e   : > { %v1084_v24 = vadd.f32 %v3220_v54, %v1083_v20  ;;  %v2652_v25 = vpop.eup %2651  ;;  %v1505_v26 = vadd.f32 1.0, %v2650_v21  ;;  %2677 = vpow2.f32 %v2068_v17  ;;  %v2218_v27 = vpop.f32.mrf.mxu0 }
 0x16f   : > { %v2318_v28 = vpop.f32.mrf.mxu1  ;;  %v2654_v29 = vpop.eup %2653  ;;  %2679 = vrcp.f32 %v1455_v22  ;;  %v1456_v30 = vadd.f32 1.0, %v2652_v25  ;;  %v2019_v31 = vmul.f32 -1.442695, %v884_v23 }
 0x170   : > { %v2656_v32 = vpop.eup %2655  ;;  %2681 = vrcp.f32 %v1505_v26  ;;  %v1506_v33 = vadd.f32 1.0, %v2654_v29  ;;  %v2069_v34 = vmul.f32 -1.442695, %v1084_v24  ;;  %v886_v35 = vpop.f32.mrf.mxu0 }
 0x171   : > { %v1086_v36 = vpop.f32.mrf.mxu1  ;;  %v2658_v37 = vpop.eup %2657  ;;  %1747 = vst.msk [vmem:[%s3091_s5 + $0xe0] sm:$0xff] %vm1718_vm2, %v2656_v32  ;;  %2683 = vrcp.f32 %v1456_v30  ;;  %v887_v38 = vadd.f32 %v3220_v54, %v886_v35 }
 0x172   : > { %v1087_v39 = vadd.f32 %v3220_v54, %v1086_v36  ;;  %v2660_v40 = vpop.eup %2659  ;;  %1797 = vst.msk [vmem:[%s3091_s5 + $0x270] sm:$0xff] %vm1718_vm2, %v2658_v37  ;;  %2685 = vrcp.f32 %v1506_v33  ;;  %v2219_v41 = vpop.f32.mrf.mxu0 }
 0x173   : > { %v2319_v42 = vpop.f32.mrf.mxu1  ;;  %v2662_v43 = vpop.eup %2661  ;;  %v1457_v44 = vadd.f32 1.0, %v2660_v40  ;;  %2687 = vpow2.f32 %v2019_v31  ;;  %v2020_v45 = vmul.f32 -1.442695, %v887_v38 }
 0x174   : > { %v2664_v46 = vpop.eup %2663  ;;  %v1507_v47 = vadd.f32 1.0, %v2662_v43  ;;  %2689 = vpow2.f32 %v2069_v34  ;;  %v2070_v48 = vmul.f32 -1.442695, %v1087_v39  ;;  %v891_v49 = vpop.f32.mrf.mxu0 }
 0x175   : > { %v1091_v50 = vpop.f32.mrf.mxu1  ;;  %v2666_v51 = vpop.eup %2665  ;;  %1748 = vst.msk [vmem:[%s3091_s5 + $0xe8] sm:$0xff] %vm1718_vm2, %v2664_v46  ;;  %2691 = vrcp.f32 %v1457_v44  ;;  %v892_v52 = vadd.f32 %v3220_v54, %v891_v49 }
 0x176   : > { %v1092_v53 = vadd.f32 %v3220_v54, %v1091_v50  ;;  %v2668_v55 = vpop.eup %2667  ;;  %1798 = vst.msk [vmem:[%s3091_s5 + $0x278] sm:$0xff] %vm1718_vm2, %v2666_v51  ;;  %2693 = vrcp.f32 %v1507_v47  ;;  %v2222_v56 = vpop.f32.mrf.mxu0 }
 0x177   : > { %v2322_v57 = vpop.f32.mrf.mxu1  ;;  %v2670_v58 = vpop.eup %2669  ;;  %v1458_v59 = vadd.f32 1.0, %v2668_v55  ;;  %2695 = vpow2.f32 %v2020_v45  ;;  %v2021_v60 = vmul.f32 -1.442695, %v892_v52 }
 0x178   : > { %v2672_v61 = vpop.eup %2671  ;;  %v1508_v62 = vadd.f32 1.0, %v2670_v58  ;;  %2697 = vpow2.f32 %v2070_v48  ;;  %v2071_v63 = vmul.f32 -1.442695, %v1092_v53  ;;  %v894_v0 = vpop.f32.mrf.mxu0 }
 0x179   : > { %v1094_v1 = vpop.f32.mrf.mxu1  ;;  %v2674_v2 = vpop.eup %2673  ;;  %1749 = vst.msk [vmem:[%s3091_s5 + $0xf0] sm:$0xff] %vm1718_vm2, %v2672_v61  ;;  %2699 = vrcp.f32 %v1458_v59  ;;  %v895_v3 = vadd.f32 %v3220_v54, %v894_v0 }
 0x17a   : > { %v1095_v4 = vadd.f32 %v3220_v54, %v1094_v1  ;;  %v2676_v5 = vpop.eup %2675  ;;  %1799 = vst.msk [vmem:[%s3091_s5 + $0x280] sm:$0xff] %vm1718_vm2, %v2674_v2  ;;  %2701 = vrcp.f32 %v1508_v62  ;;  %v2223_v6 = vpop.f32.mrf.mxu0 }
 0x17b   : > { %v2323_v7 = vpop.f32.mrf.mxu1  ;;  %v2678_v8 = vpop.eup %2677  ;;  %v1459_v9 = vadd.f32 1.0, %v2676_v5  ;;  %2703 = vpow2.f32 %v2021_v60  ;;  %v2022_v10 = vmul.f32 -1.442695, %v895_v3 }
 0x17c   : > { %v2680_v11 = vpop.eup %2679  ;;  %v1509_v12 = vadd.f32 1.0, %v2678_v8  ;;  %2705 = vpow2.f32 %v2071_v63  ;;  %v2072_v13 = vmul.f32 -1.442695, %v1095_v4  ;;  %v899_v14 = vpop.f32.mrf.mxu0 }
 0x17d   : > { %v1099_v15 = vpop.f32.mrf.mxu1  ;;  %v2682_v16 = vpop.eup %2681  ;;  %1750 = vst.msk [vmem:[%s3091_s5 + $0xf8] sm:$0xff] %vm1718_vm2, %v2680_v11  ;;  %2707 = vrcp.f32 %v1459_v9  ;;  %v900_v17 = vadd.f32 %v3220_v54, %v899_v14 }
 0x17e   : > { %v1100_v18 = vadd.f32 %v3220_v54, %v1099_v15  ;;  %v2684_v19 = vpop.eup %2683  ;;  %1800 = vst.msk [vmem:[%s3091_s5 + $0x288] sm:$0xff] %vm1718_vm2, %v2682_v16  ;;  %2709 = vrcp.f32 %v1509_v12  ;;  %v2226_v20 = vpop.f32.mrf.mxu0 }
 0x17f   : > { %v2326_v21 = vpop.f32.mrf.mxu1  ;;  %v2686_v22 = vpop.eup %2685  ;;  %1751 = vst.msk [vmem:[%s3091_s5 + $0x100] sm:$0xff] %vm1718_vm2, %v2684_v19  ;;  %2711 = vpow2.f32 %v2022_v10  ;;  %v2023_v23 = vmul.f32 -1.442695, %v900_v17 }
 0x180   : > { %v2073_v24 = vmul.f32 -1.442695, %v1100_v18  ;;  %v2688_v25 = vpop.eup %2687  ;;  %1801 = vst.msk [vmem:[%s3091_s5 + $0x290] sm:$0xff] %vm1718_vm2, %v2686_v22  ;;  %2713 = vpow2.f32 %v2072_v13  ;;  %v902_v26 = vpop.f32.mrf.mxu0 }
 0x181   : > { %v1102_v27 = vpop.f32.mrf.mxu1  ;;  %v2690_v28 = vpop.eup %2689  ;;  %v1460_v29 = vadd.f32 1.0, %v2688_v25  ;;  %2715 = vpow2.f32 %v2023_v23  ;;  %v903_v30 = vadd.f32 %v3220_v54, %v902_v26 }
 0x182   : > { %v1103_v31 = vadd.f32 %v3220_v54, %v1102_v27  ;;  %v2692_v32 = vpop.eup %2691  ;;  %v1510_v33 = vadd.f32 1.0, %v2690_v28  ;;  %2717 = vpow2.f32 %v2073_v24  ;;  %v2227_v34 = vpop.f32.mrf.mxu0 }
 0x183   : > { %v2327_v35 = vpop.f32.mrf.mxu1  ;;  %v2694_v36 = vpop.eup %2693  ;;  %1752 = vst.msk [vmem:[%s3091_s5 + $0x108] sm:$0xff] %vm1718_vm2, %v2692_v32  ;;  %2719 = vrcp.f32 %v1460_v29  ;;  %v2024_v37 = vmul.f32 -1.442695, %v903_v30 }
 0x184   : > { %v2074_v38 = vmul.f32 -1.442695, %v1103_v31  ;;  %v2696_v39 = vpop.eup %2695  ;;  %1802 = vst.msk [vmem:[%s3091_s5 + $0x298] sm:$0xff] %vm1718_vm2, %v2694_v36  ;;  %2721 = vrcp.f32 %v1510_v33  ;;  %v907_v40 = vpop.f32.mrf.mxu0 }
 0x185   : > { %v1107_v41 = vpop.f32.mrf.mxu1  ;;  %v2698_v42 = vpop.eup %2697  ;;  %v1461_v43 = vadd.f32 1.0, %v2696_v39  ;;  %2723 = vpow2.f32 %v2024_v37  ;;  %v908_v44 = vadd.f32 %v3220_v54, %v907_v40 }
 0x186   : > { %v1108_v45 = vadd.f32 %v3220_v54, %v1107_v41  ;;  %v2700_v46 = vpop.eup %2699  ;;  %v1511_v47 = vadd.f32 1.0, %v2698_v42  ;;  %2725 = vpow2.f32 %v2074_v38  ;;  %v2230_v48 = vpop.f32.mrf.mxu0 }
 0x187   : > { %v2330_v49 = vpop.f32.mrf.mxu1  ;;  %v2702_v50 = vpop.eup %2701  ;;  %1753 = vst.msk [vmem:[%s3091_s5 + $0x110] sm:$0xff] %vm1718_vm2, %v2700_v46  ;;  %2727 = vrcp.f32 %v1461_v43  ;;  %v2025_v51 = vmul.f32 -1.442695, %v908_v44 }
 0x188   : > { %v2075_v52 = vmul.f32 -1.442695, %v1108_v45  ;;  %v2704_v53 = vpop.eup %2703  ;;  %1803 = vst.msk [vmem:[%s3091_s5 + $0x2a0] sm:$0xff] %vm1718_vm2, %v2702_v50  ;;  %2729 = vrcp.f32 %v1511_v47  ;;  %v910_v55 = vpop.f32.mrf.mxu0 }
 0x189   : > { %v1110_v56 = vpop.f32.mrf.mxu1  ;;  %v2706_v57 = vpop.eup %2705  ;;  %v1462_v58 = vadd.f32 1.0, %v2704_v53  ;;  %2731 = vpow2.f32 %v2025_v51  ;;  %v911_v59 = vadd.f32 %v3220_v54, %v910_v55 }
 0x18a   : > { %v1111_v60 = vadd.f32 %v3220_v54, %v1110_v56  ;;  %v2708_v61 = vpop.eup %2707  ;;  %v1512_v62 = vadd.f32 1.0, %v2706_v57  ;;  %2733 = vpow2.f32 %v2075_v52  ;;  %v2231_v63 = vpop.f32.mrf.mxu0 }
 0x18b   : > { %v2331_v0 = vpop.f32.mrf.mxu1  ;;  %v2710_v1 = vpop.eup %2709  ;;  %1754 = vst.msk [vmem:[%s3091_s5 + $0x118] sm:$0xff] %vm1718_vm2, %v2708_v61  ;;  %2735 = vrcp.f32 %v1462_v58  ;;  %v2026_v2 = vmul.f32 -1.442695, %v911_v59 }
 0x18c   : > { %v2076_v3 = vmul.f32 -1.442695, %v1111_v60  ;;  %v2712_v4 = vpop.eup %2711  ;;  %1804 = vst.msk [vmem:[%s3091_s5 + $0x2a8] sm:$0xff] %vm1718_vm2, %v2710_v1  ;;  %2737 = vrcp.f32 %v1512_v62  ;;  %v915_v5 = vpop.f32.mrf.mxu0 }
 0x18d   : > { %v1115_v6 = vpop.f32.mrf.mxu1  ;;  %v2714_v7 = vpop.eup %2713  ;;  %v1463_v8 = vadd.f32 1.0, %v2712_v4  ;;  %2739 = vpow2.f32 %v2026_v2  ;;  %v916_v9 = vadd.f32 %v3220_v54, %v915_v5 }
 0x18e   : > { %v1116_v10 = vadd.f32 %v3220_v54, %v1115_v6  ;;  %v2716_v11 = vpop.eup %2715  ;;  %v1513_v12 = vadd.f32 1.0, %v2714_v7  ;;  %2741 = vpow2.f32 %v2076_v3  ;;  %v2234_v13 = vpop.f32.mrf.mxu0 }
 0x18f   : > { %v2334_v14 = vpop.f32.mrf.mxu1  ;;  %v2718_v15 = vpop.eup %2717  ;;  %2743 = vrcp.f32 %v1463_v8  ;;  %v1464_v16 = vadd.f32 1.0, %v2716_v11  ;;  %v2027_v17 = vmul.f32 -1.442695, %v916_v9 }
 0x190   : > { %v2720_v18 = vpop.eup %2719  ;;  %2745 = vrcp.f32 %v1513_v12  ;;  %v1514_v19 = vadd.f32 1.0, %v2718_v15  ;;  %v2077_v20 = vmul.f32 -1.442695, %v1116_v10  ;;  %v918_v21 = vpop.f32.mrf.mxu0 }
 0x191   : > { %v1118_v22 = vpop.f32.mrf.mxu1  ;;  %v2722_v23 = vpop.eup %2721  ;;  %1755 = vst.msk [vmem:[%s3091_s5 + $0x120] sm:$0xff] %vm1718_vm2, %v2720_v18  ;;  %2747 = vrcp.f32 %v1464_v16  ;;  %v919_v24 = vadd.f32 %v3220_v54, %v918_v21 }
 0x192   : > { %v1119_v25 = vadd.f32 %v3220_v54, %v1118_v22  ;;  %v2724_v26 = vpop.eup %2723  ;;  %1805 = vst.msk [vmem:[%s3091_s5 + $0x2b0] sm:$0xff] %vm1718_vm2, %v2722_v23  ;;  %2749 = vrcp.f32 %v1514_v19  ;;  %v2235_v27 = vpop.f32.mrf.mxu0 }
 0x193   : > { %v2335_v28 = vpop.f32.mrf.mxu1  ;;  %v2726_v29 = vpop.eup %2725  ;;  %v1465_v30 = vadd.f32 1.0, %v2724_v26  ;;  %2751 = vpow2.f32 %v2027_v17  ;;  %v2028_v31 = vmul.f32 -1.442695, %v919_v24 }
 0x194   : > { %v2728_v32 = vpop.eup %2727  ;;  %v1515_v33 = vadd.f32 1.0, %v2726_v29  ;;  %2753 = vpow2.f32 %v2077_v20  ;;  %v2078_v34 = vmul.f32 -1.442695, %v1119_v25  ;;  %v923_v35 = vpop.f32.mrf.mxu0 }
 0x195   : > { %v1123_v36 = vpop.f32.mrf.mxu1  ;;  %v2730_v37 = vpop.eup %2729  ;;  %1756 = vst.msk [vmem:[%s3091_s5 + $0x128] sm:$0xff] %vm1718_vm2, %v2728_v32  ;;  %2755 = vrcp.f32 %v1465_v30  ;;  %v924_v38 = vadd.f32 %v3220_v54, %v923_v35 }
 0x196   : > { %v1124_v39 = vadd.f32 %v3220_v54, %v1123_v36  ;;  %v2732_v40 = vpop.eup %2731  ;;  %1806 = vst.msk [vmem:[%s3091_s5 + $0x2b8] sm:$0xff] %vm1718_vm2, %v2730_v37  ;;  %2757 = vrcp.f32 %v1515_v33  ;;  %v2238_v41 = vpop.f32.mrf.mxu0 }
 0x197   : > { %v2338_v42 = vpop.f32.mrf.mxu1  ;;  %v2734_v43 = vpop.eup %2733  ;;  %v1466_v44 = vadd.f32 1.0, %v2732_v40  ;;  %2759 = vpow2.f32 %v2028_v31  ;;  %v2029_v45 = vmul.f32 -1.442695, %v924_v38 }
 0x198   : > { %v2736_v46 = vpop.eup %2735  ;;  %v1516_v47 = vadd.f32 1.0, %v2734_v43  ;;  %2761 = vpow2.f32 %v2078_v34  ;;  %v2079_v48 = vmul.f32 -1.442695, %v1124_v39  ;;  %v926_v49 = vpop.f32.mrf.mxu0 }
 0x199   : > { %v1126_v50 = vpop.f32.mrf.mxu1  ;;  %v2738_v51 = vpop.eup %2737  ;;  %1757 = vst.msk [vmem:[%s3091_s5 + $0x130] sm:$0xff] %vm1718_vm2, %v2736_v46  ;;  %2763 = vrcp.f32 %v1466_v44  ;;  %v927_v52 = vadd.f32 %v3220_v54, %v926_v49 }
 0x19a   : > { %v1127_v53 = vadd.f32 %v3220_v54, %v1126_v50  ;;  %v2740_v55 = vpop.eup %2739  ;;  %1807 = vst.msk [vmem:[%s3091_s5 + $0x2c0] sm:$0xff] %vm1718_vm2, %v2738_v51  ;;  %2765 = vrcp.f32 %v1516_v47  ;;  %v2239_v56 = vpop.f32.mrf.mxu0 }
 0x19b   : > { %v2339_v57 = vpop.f32.mrf.mxu1  ;;  %v2742_v58 = vpop.eup %2741  ;;  %v1467_v59 = vadd.f32 1.0, %v2740_v55  ;;  %2767 = vpow2.f32 %v2029_v45  ;;  %v2030_v60 = vmul.f32 -1.442695, %v927_v52 }
 0x19c   : > { %v2744_v61 = vpop.eup %2743  ;;  %v1517_v62 = vadd.f32 1.0, %v2742_v58  ;;  %2769 = vpow2.f32 %v2079_v48  ;;  %v2080_v63 = vmul.f32 -1.442695, %v1127_v53  ;;  %v931_v0 = vpop.f32.mrf.mxu0 }
 0x19d   : > { %v2746_v1 = vpop.eup %2745  ;;  %1758 = vst.msk [vmem:[%s3091_s5 + $0x138] sm:$0xff] %vm1718_vm2, %v2744_v61  ;;  %2771 = vrcp.f32 %v1467_v59  ;;  %v932_v2 = vadd.f32 %v3220_v54, %v931_v0 }
 0x19e   : > { %v2748_v3 = vpop.eup %2747  ;;  %1808 = vst.msk [vmem:[%s3091_s5 + $0x2c8] sm:$0xff] %vm1718_vm2, %v2746_v1  ;;  %2773 = vrcp.f32 %v1517_v62  ;;  %v2242_v4 = vpop.f32.mrf.mxu0 }
 0x19f   : > { %v2750_v5 = vpop.eup %2749  ;;  %1759 = vst.msk [vmem:[%s3091_s5 + $0x140] sm:$0xff] %vm1718_vm2, %v2748_v3  ;;  %2775 = vpow2.f32 %v2030_v60  ;;  %v2031_v6 = vmul.f32 -1.442695, %v932_v2 }
 0x1a0   : > { %v2752_v7 = vpop.eup %2751  ;;  %1809 = vst.msk [vmem:[%s3091_s5 + $0x2d0] sm:$0xff] %vm1718_vm2, %v2750_v5  ;;  %2777 = vpow2.f32 %v2080_v63  ;;  %v934_v8 = vpop.f32.mrf.mxu0 }
 0x1a1   : > { %v2754_v9 = vpop.eup %2753  ;;  %v1468_v10 = vadd.f32 1.0, %v2752_v7  ;;  %2779 = vpow2.f32 %v2031_v6  ;;  %v935_v11 = vadd.f32 %v3220_v54, %v934_v8 }
 0x1a2   : > { %v2756_v12 = vpop.eup %2755  ;;  %v1518_v13 = vadd.f32 1.0, %v2754_v9  ;;  %v2243_v14 = vpop.f32.mrf.mxu0 }
 0x1a3   : > { %v2758_v15 = vpop.eup %2757  ;;  %1760 = vst.msk [vmem:[%s3091_s5 + $0x148] sm:$0xff] %vm1718_vm2, %v2756_v12  ;;  %2781 = vrcp.f32 %v1468_v10  ;;  %v2032_v16 = vmul.f32 -1.442695, %v935_v11 }
 0x1a4   : > { %v2760_v17 = vpop.eup %2759  ;;  %1810 = vst.msk [vmem:[%s3091_s5 + $0x2d8] sm:$0xff] %vm1718_vm2, %v2758_v15  ;;  %2783 = vrcp.f32 %v1518_v13 }
 0x1a5   : > { %v2762_v18 = vpop.eup %2761  ;;  %v1469_v19 = vadd.f32 1.0, %v2760_v17  ;;  %2785 = vpow2.f32 %v2032_v16 }
 0x1a6   : > { %v2764_v20 = vpop.eup %2763  ;;  %v1519_v54 = vadd.f32 1.0, %v2762_v18 }
 0x1a7   : > { %v2766_v21 = vpop.eup %2765  ;;  %1761 = vst.msk [vmem:[%s3091_s5 + $0x150] sm:$0xff] %vm1718_vm2, %v2764_v20  ;;  %2787 = vrcp.f32 %v1469_v19 }
 0x1a8   : > { %v2768_v22 = vpop.eup %2767  ;;  %1811 = vst.msk [vmem:[%s3091_s5 + $0x2e0] sm:$0xff] %vm1718_vm2, %v2766_v21  ;;  %2789 = vrcp.f32 %v1519_v54 }
 0x1a9   : > { %v2770_v23 = vpop.eup %2769  ;;  %v1470_v24 = vadd.f32 1.0, %v2768_v22 }
 0x1aa   : > { %v2772_v25 = vpop.eup %2771  ;;  %v1520_v26 = vadd.f32 1.0, %v2770_v23 }
 0x1ab   : > { %v2774_v27 = vpop.eup %2773  ;;  %1762 = vst.msk [vmem:[%s3091_s5 + $0x158] sm:$0xff] %vm1718_vm2, %v2772_v25  ;;  %2791 = vrcp.f32 %v1470_v24 }
 0x1ac   : > { %v2776_v28 = vpop.eup %2775  ;;  %1812 = vst.msk [vmem:[%s3091_s5 + $0x2e8] sm:$0xff] %vm1718_vm2, %v2774_v27  ;;  %2793 = vrcp.f32 %v1520_v26 }
 0x1ad   : > { %v2778_v29 = vpop.eup %2777  ;;  %v1471_v30 = vadd.f32 1.0, %v2776_v28 }
 0x1ae   : > { %v2780_v31 = vpop.eup %2779  ;;  %v1521_v32 = vadd.f32 1.0, %v2778_v29 }
 0x1af   : > { %2795 = vrcp.f32 %v1471_v30  ;;  %v1472_v33 = vadd.f32 1.0, %v2780_v31 }
 0x1b0   : > { %v2782_v34 = vpop.eup %2781  ;;  %2797 = vrcp.f32 %v1521_v32 }
 0x1b1   : > { %v2784_v35 = vpop.eup %2783  ;;  %1763 = vst.msk [vmem:[%s3091_s5 + $0x160] sm:$0xff] %vm1718_vm2, %v2782_v34  ;;  %2799 = vrcp.f32 %v1472_v33 }
 0x1b2   : > { %v2786_v36 = vpop.eup %2785  ;;  %1813 = vst.msk [vmem:[%s3091_s5 + $0x2f0] sm:$0xff] %vm1718_vm2, %v2784_v35 }
 0x1b3   : > { %v1473_v37 = vadd.f32 1.0, %v2786_v36 }
 0x1b4   : > { %v2788_v38 = vpop.eup %2787 }
 0x1b5   : > { %v2790_v39 = vpop.eup %2789  ;;  %1764 = vst.msk [vmem:[%s3091_s5 + $0x168] sm:$0xff] %vm1718_vm2, %v2788_v38  ;;  %2801 = vrcp.f32 %v1473_v37 }
 0x1b6   : > { %1814 = vst.msk [vmem:[%s3091_s5 + $0x2f8] sm:$0xff] %vm1718_vm2, %v2790_v39 }
 0x1b8   : > { %v2792_v40 = vpop.eup %2791 }
 0x1b9   : > { %v2794_v41 = vpop.eup %2793  ;;  %1765 = vst.msk [vmem:[%s3091_s5 + $0x170] sm:$0xff] %vm1718_vm2, %v2792_v40 }
 0x1ba   : > { %1815 = vst.msk [vmem:[%s3091_s5 + $0x300] sm:$0xff] %vm1718_vm2, %v2794_v41 }
 0x1bc   : > { %v2796_v42 = vpop.eup %2795 }
 0x1bd   : > { %v2798_v43 = vpop.eup %2797  ;;  %1766 = vst.msk [vmem:[%s3091_s5 + $0x178] sm:$0xff] %vm1718_vm2, %v2796_v42 }
 0x1be   : > { %v2800_v44 = vpop.eup %2799  ;;  %1816 = vst.msk [vmem:[%s3091_s5 + $0x308] sm:$0xff] %vm1718_vm2, %v2798_v43 }
 0x1bf   : > { %1767 = vst.msk [vmem:[%s3091_s5 + $0x180] sm:$0xff] %vm1718_vm2, %v2800_v44 }
 0x1c2   : > { %v2802_v45 = vpop.eup %2801 }
 0x1c3   : > { %1768 = vst.msk [vmem:[%s3091_s5 + $0x188] sm:$0xff] %vm1718_vm2, %v2802_v45 }
 0x1c4 PF: > { %s13_s12 = sadd.s32 1, %s2810_s12  }
 0x1c5   : > { %p10_p4 = scmp.ge.s32.totalorder %s13_s12, 4  }
 0x1c7   :  { %12 = sbr.rel (!%p10_p4) target bundleno = 1 (0x1), region = 62 }

</bundles_post_ra>
